<compile_context>
chip_gen: v6e
topology: v6e:2x2x1
jax: 0.10.0
libtpu: 0.0.40
codegen_flags: <defaults>
</compile_context>

<pallas_src>
import functools

import jax
import jax.numpy as jnp
from jax import lax
from jax.experimental import pallas as pl
from jax.experimental.pallas import tpu as pltpu


def _round_up(x, m):
    return pl.cdiv(x, m) * m


def cross_modal_attention_kernel(q_ref, kv_ref, wq_ref, wk_ref, wv_ref, wo_ref,
                                 g_ref, out_ref, *, num_heads, d_k, d_real,
                                 t_real, eps):
    # q_ref / kv_ref: (1, T_pad, D_pad) f32 ; weights: (D_pad, D_pad) (f32 or bf16)
    q_in = q_ref[0]                       # (T_pad, D_pad) f32 (also the residual)
    kv_in = kv_ref[0]
    t_pad, d_pad = q_in.shape

    # Projections on the MXU; bf16 weights promote, accumulation is f32.
    Q = jnp.dot(q_in, wq_ref[...], preferred_element_type=jnp.float32)
    K = jnp.dot(kv_in, wk_ref[...], preferred_element_type=jnp.float32)
    V = jnp.dot(kv_in, wv_ref[...], preferred_element_type=jnp.float32)

    scale = d_k ** -0.5

    # Mask padded key positions (only materialized if T was padded).
    if t_real < t_pad:
        key_pos = lax.broadcasted_iota(jnp.int32, (t_pad, t_pad), 1)
        mask_bias = jnp.where(key_pos < t_real, 0.0, -1e30).astype(jnp.float32)
    else:
        mask_bias = None

    # Unrolled per-head attention (heads are static; tiny dots stay on MXU).
    # NOTE: for long sequences a flash-style T-tiled variant would be preferred.
    head_outs = []
    for h in range(num_heads):
        lo = h * d_k
        qh = Q[:, lo:lo + d_k]
        kh = K[:, lo:lo + d_k]
        vh = V[:, lo:lo + d_k]
        s = lax.dot_general(qh, kh, (((1,), (1,)), ((), ())),
                            preferred_element_type=jnp.float32) * scale
        if mask_bias is not None:
            s = s + mask_bias
        s = s - jnp.max(s, axis=-1, keepdims=True)
        p = jnp.exp(s)
        p = p / jnp.sum(p, axis=-1, keepdims=True)
        head_outs.append(jnp.dot(p, vh, preferred_element_type=jnp.float32))

    if d_pad > d_real:
        head_outs.append(jnp.zeros((t_pad, d_pad - d_real), jnp.float32))
    attn_out = jnp.concatenate(head_outs, axis=-1)          # (T_pad, D_pad)

    attended = jnp.dot(attn_out, wo_ref[...], preferred_element_type=jnp.float32)

    # Dropout is identity at inference; residual + RMSNorm in f32.
    y = q_in + attended
    # Padded feature columns of y are exactly zero, so the sum of squares over
    # D_pad equals the sum over the real d_model; the scale uses the real dim.
    norm = jnp.sqrt(jnp.sum(y * y, axis=-1, keepdims=True)) * (d_real ** -0.5)
    out_ref[0] = (y / (norm + eps) * g_ref[...]).astype(out_ref.dtype)


def cross_modal_attention(query, key_value, params, *, num_heads, eps=1e-6,
                          param_dtype=jnp.bfloat16):
    """query, key_value: (B, T, D) f32. params: dict of (in,out) weights + gain."""
    B, T, D = query.shape
    assert D % num_heads == 0
    d_k = D // num_heads

    d_pad = _round_up(D, 128)   # lane-dense feature dim
    t_pad = _round_up(T, 8)     # sublane-aligned seq dim

    qp = jnp.pad(query.astype(jnp.float32),
                 ((0, 0), (0, t_pad - T), (0, d_pad - D)))
    kvp = jnp.pad(key_value.astype(jnp.float32),
                  ((0, 0), (0, t_pad - T), (0, d_pad - D)))

    def pad_w(w):
        w = jnp.pad(w, ((0, d_pad - D), (0, d_pad - D)))
        return w.astype(param_dtype)

    wq, wk, wv, wo = (pad_w(params[k]) for k in ("wq", "wk", "wv", "wo"))
    g = jnp.pad(params["g"].astype(jnp.float32), (0, d_pad - D)).reshape(1, d_pad)

    # Explicit VMEM budget: 4 resident weights (x2 buffers), pipelined
    # activation tiles + temporaries, capped so it is safe on v7x (64 MiB).
    wbytes = jnp.dtype(param_dtype).itemsize
    need = (4 * d_pad * d_pad * wbytes * 2          # weights (double-buffered)
            + 3 * t_pad * d_pad * 4 * 2             # q/kv/out tiles, 2 buffers
            + 10 * t_pad * d_pad * 4                # Q/K/V/attn temporaries
            + (2 << 20))                            # slack
    vmem_limit = int(min(max(need, 16 << 20), 32 << 20))

    kernel = functools.partial(
        cross_modal_attention_kernel,
        num_heads=num_heads, d_k=d_k, d_real=D, t_real=T, eps=eps)

    out = pl.pallas_call(
        kernel,
        out_shape=jax.ShapeDtypeStruct((B, t_pad, d_pad), jnp.float32),
        grid=(B,),
        in_specs=[
            pl.BlockSpec((1, t_pad, d_pad), lambda b: (b, 0, 0)),   # query
            pl.BlockSpec((1, t_pad, d_pad), lambda b: (b, 0, 0)),   # key_value
            pl.BlockSpec((d_pad, d_pad), lambda b: (0, 0)),         # Wq (resident)
            pl.BlockSpec((d_pad, d_pad), lambda b: (0, 0)),         # Wk
            pl.BlockSpec((d_pad, d_pad), lambda b: (0, 0)),         # Wv
            pl.BlockSpec((d_pad, d_pad), lambda b: (0, 0)),         # Wo
            pl.BlockSpec((1, d_pad), lambda b: (0, 0)),             # RMSNorm gain
        ],
        out_specs=pl.BlockSpec((1, t_pad, d_pad), lambda b: (b, 0, 0)),
        compiler_params=pltpu.CompilerParams(
            dimension_semantics=("parallel",),
            vmem_limit_bytes=vmem_limit),
    )(qp, kvp, wq, wk, wv, wo, g)

    return out[:, :T, :D]


def init_params(key, d_model):
    ks = jax.random.split(key, 4)
    bound = d_model ** -0.5

    def lin(k):
        # torch nn.Linear(d, d, bias=False): weight (out,in) ~ U(-1/sqrt(in),..)
        # stored here already transposed to (in, out) so the kernel does x @ W.
        return jax.random.uniform(k, (d_model, d_model), jnp.float32, -bound, bound)

    return {"wq": lin(ks[0]), "wk": lin(ks[1]), "wv": lin(ks[2]), "wo": lin(ks[3]),
            "g": jnp.ones((d_model,), jnp.float32)}


def reference_forward(query, key_value, p, *, num_heads, eps=1e-6):
    B, T, D = query.shape
    dk = D // num_heads

    def split(x):
        return x.reshape(B, T, num_heads, dk).transpose(0, 2, 1, 3)

    Q = split(query @ p["wq"])
    K = split(key_value @ p["wk"])
    V = split(key_value @ p["wv"])
    s = jnp.einsum("bhqd,bhkd->bhqk", Q, K) / (dk ** 0.5)
    a = jax.nn.softmax(s, axis=-1)
    o = jnp.einsum("bhqk,bhkd->bhqd", a, V).transpose(0, 2, 1, 3).reshape(B, T, D)
    attended = o @ p["wo"]
    y = query + attended
    norm = jnp.sqrt(jnp.sum(y * y, axis=-1, keepdims=True)) * (D ** -0.5)
    return y / (norm + eps) * p["g"]


if __name__ == "__main__":
    # Keep the pure-JAX reference at full f32 matmul precision so the exact
    # (f32-weight) kernel path can be checked tightly.
    jax.config.update("jax_default_matmul_precision", "highest")

    B, T, D, H = 2, 8, 32, 8
    key = jax.random.PRNGKey(0)
    kq, kkv, kp = jax.random.split(key, 3)
    query = jax.random.normal(kq, (B, T, D), jnp.float32)
    key_value = jax.random.normal(kkv, (B, T, D), jnp.float32)
    params = init_params(kp, D)

    ref = reference_forward(query, key_value, params, num_heads=H)

    # Exact-precision path (f32 weights) — tight check.
    out_f32 = jax.block_until_ready(
        cross_modal_attention(query, key_value, params, num_heads=H,
                              param_dtype=jnp.float32))
    assert out_f32.shape == (B, T, D)
    assert jnp.allclose(out_f32, ref, rtol=1e-3, atol=1e-3), "f32 mismatch vs reference"

    # Perf path: bf16 weight streaming with f32 accumulation — looser check
    # (only the weight quantization differs from the f32 reference).
    out_bf16 = jax.block_until_ready(
        cross_modal_attention(query, key_value, params, num_heads=H,
                              param_dtype=jnp.bfloat16))
    assert out_bf16.shape == (B, T, D)
    assert jnp.allclose(out_bf16, ref, rtol=5e-2, atol=5e-2), "bf16 mismatch vs reference"

    print("KERNEL_OK")
</pallas_src>

<mosaic_0001>
module attributes {stable_mosaic.version = 11 : i64} {
  func.func @cross_modal_attention_kernel(%arg0: i32, %arg1: memref<1x8x128xf32, #tpu.memory_space<vmem>>, %arg2: memref<1x8x128xf32, #tpu.memory_space<vmem>>, %arg3: memref<128x128xf32, #tpu.memory_space<vmem>>, %arg4: memref<128x128xf32, #tpu.memory_space<vmem>>, %arg5: memref<128x128xf32, #tpu.memory_space<vmem>>, %arg6: memref<128x128xf32, #tpu.memory_space<vmem>>, %arg7: memref<1x128xf32, #tpu.memory_space<vmem>>, %arg8: memref<1x8x128xf32, #tpu.memory_space<vmem>>) attributes {dimension_semantics = [#tpu.dimension_semantics<parallel>], iteration_bounds = array<i64: 2>, scalar_prefetch = 0 : i64, scratch_operands = 0 : i64, tpu.core_type = #tpu.core_type<tc>, window_params = [{transform_indices = @transform_0, window_bounds = array<i64: 1, 8, 128>}, {transform_indices = @transform_1, window_bounds = array<i64: 1, 8, 128>}, {pipeline_mode = #tpu.pipeline_mode<synchronous>, transform_indices = @transform_2, window_bounds = array<i64: 128, 128>}, {pipeline_mode = #tpu.pipeline_mode<synchronous>, transform_indices = @transform_3, window_bounds = array<i64: 128, 128>}, {pipeline_mode = #tpu.pipeline_mode<synchronous>, transform_indices = @transform_4, window_bounds = array<i64: 128, 128>}, {pipeline_mode = #tpu.pipeline_mode<synchronous>, transform_indices = @transform_5, window_bounds = array<i64: 128, 128>}, {pipeline_mode = #tpu.pipeline_mode<synchronous>, transform_indices = @transform_6, window_bounds = array<i64: 1, 128>}, {transform_indices = @transform_7, window_bounds = array<i64: 1, 8, 128>}]} {
    %c0 = arith.constant 0 : index
    %c0_0 = arith.constant 0 : index
    %c0_1 = arith.constant 0 : index
    %0 = vector.load %arg1[%c0, %c0_0, %c0_1] : memref<1x8x128xf32, #tpu.memory_space<vmem>>, vector<1x8x128xf32>
    %1 = vector.shape_cast %0 : vector<1x8x128xf32> to vector<8x128xf32>
    %c0_2 = arith.constant 0 : index
    %c0_3 = arith.constant 0 : index
    %c0_4 = arith.constant 0 : index
    %2 = vector.load %arg2[%c0_2, %c0_3, %c0_4] : memref<1x8x128xf32, #tpu.memory_space<vmem>>, vector<1x8x128xf32>
    %3 = vector.shape_cast %2 : vector<1x8x128xf32> to vector<8x128xf32>
    %c0_5 = arith.constant 0 : index
    %c0_6 = arith.constant 0 : index
    %4 = vector.load %arg3[%c0_5, %c0_6] : memref<128x128xf32, #tpu.memory_space<vmem>>, vector<128x128xf32>
    %cst = arith.constant dense<0.000000e+00> : vector<8x128xf32>
    %5 = tpu.matmul %1, %4, %cst {dimension_numbers = #tpu.dot_dimension_numbers<[1], [0], [0], [1], [0, 0, 1, 1], [], []>, precision = #tpu.contract_precision<fp32>} : vector<8x128xf32>, vector<128x128xf32>, vector<8x128xf32> -> vector<8x128xf32>
    %c0_7 = arith.constant 0 : index
    %c0_8 = arith.constant 0 : index
    %6 = vector.load %arg4[%c0_7, %c0_8] : memref<128x128xf32, #tpu.memory_space<vmem>>, vector<128x128xf32>
    %cst_9 = arith.constant dense<0.000000e+00> : vector<8x128xf32>
    %7 = tpu.matmul %3, %6, %cst_9 {dimension_numbers = #tpu.dot_dimension_numbers<[1], [0], [0], [1], [0, 0, 1, 1], [], []>, precision = #tpu.contract_precision<fp32>} : vector<8x128xf32>, vector<128x128xf32>, vector<8x128xf32> -> vector<8x128xf32>
    %c0_10 = arith.constant 0 : index
    %c0_11 = arith.constant 0 : index
    %8 = vector.load %arg5[%c0_10, %c0_11] : memref<128x128xf32, #tpu.memory_space<vmem>>, vector<128x128xf32>
    %cst_12 = arith.constant dense<0.000000e+00> : vector<8x128xf32>
    %9 = tpu.matmul %3, %8, %cst_12 {dimension_numbers = #tpu.dot_dimension_numbers<[1], [0], [0], [1], [0, 0, 1, 1], [], []>, precision = #tpu.contract_precision<fp32>} : vector<8x128xf32>, vector<128x128xf32>, vector<8x128xf32> -> vector<8x128xf32>
    %10 = vector.extract_strided_slice %5 {offsets = [0, 0], sizes = [8, 4], strides = [1, 1]} : vector<8x128xf32> to vector<8x4xf32>
    %11 = vector.extract_strided_slice %7 {offsets = [0, 0], sizes = [8, 4], strides = [1, 1]} : vector<8x128xf32> to vector<8x4xf32>
    %12 = vector.extract_strided_slice %9 {offsets = [0, 0], sizes = [8, 4], strides = [1, 1]} : vector<8x128xf32> to vector<8x4xf32>
    %cst_13 = arith.constant dense<0.000000e+00> : vector<8x8xf32>
    %13 = tpu.matmul %10, %11, %cst_13 {dimension_numbers = #tpu.dot_dimension_numbers<[1], [1], [0], [0], [0, 0, 1, 0], [], []>, precision = #tpu.contract_precision<fp32>} : vector<8x4xf32>, vector<8x4xf32>, vector<8x8xf32> -> vector<8x8xf32>
    %cst_14 = arith.constant 5.000000e-01 : f32
    %14 = vector.broadcast %cst_14 : f32 to vector<8x8xf32>
    %15 = arith.mulf %13, %14 : vector<8x8xf32>
    %cst_15 = arith.constant dense<0xFF800000> : vector<8xf32>
    %16 = vector.multi_reduction <maximumf>, %15, %cst_15 [1] : vector<8x8xf32> to vector<8xf32>
    %17 = vector.shape_cast %16 : vector<8xf32> to vector<8x1xf32>
    %18 = vector.broadcast %17 : vector<8x1xf32> to vector<8x8xf32>
    %19 = arith.subf %15, %18 : vector<8x8xf32>
    %20 = math.exp %19 : vector<8x8xf32>
    %cst_16 = arith.constant dense<0.000000e+00> : vector<8xf32>
    %21 = vector.multi_reduction <add>, %20, %cst_16 [1] : vector<8x8xf32> to vector<8xf32>
    %22 = vector.shape_cast %21 : vector<8xf32> to vector<8x1xf32>
    %23 = vector.broadcast %22 : vector<8x1xf32> to vector<8x8xf32>
    %24 = arith.divf %20, %23 : vector<8x8xf32>
    %cst_17 = arith.constant dense<0.000000e+00> : vector<8x4xf32>
    %25 = tpu.matmul %24, %12, %cst_17 {dimension_numbers = #tpu.dot_dimension_numbers<[1], [0], [0], [1], [0, 0, 1, 1], [], []>, precision = #tpu.contract_precision<fp32>} : vector<8x8xf32>, vector<8x4xf32>, vector<8x4xf32> -> vector<8x4xf32>
    %26 = vector.extract_strided_slice %5 {offsets = [0, 4], sizes = [8, 4], strides = [1, 1]} : vector<8x128xf32> to vector<8x4xf32>
    %27 = vector.extract_strided_slice %7 {offsets = [0, 4], sizes = [8, 4], strides = [1, 1]} : vector<8x128xf32> to vector<8x4xf32>
    %28 = vector.extract_strided_slice %9 {offsets = [0, 4], sizes = [8, 4], strides = [1, 1]} : vector<8x128xf32> to vector<8x4xf32>
    %cst_18 = arith.constant dense<0.000000e+00> : vector<8x8xf32>
    %29 = tpu.matmul %26, %27, %cst_18 {dimension_numbers = #tpu.dot_dimension_numbers<[1], [1], [0], [0], [0, 0, 1, 0], [], []>, precision = #tpu.contract_precision<fp32>} : vector<8x4xf32>, vector<8x4xf32>, vector<8x8xf32> -> vector<8x8xf32>
    %cst_19 = arith.constant 5.000000e-01 : f32
    %30 = vector.broadcast %cst_19 : f32 to vector<8x8xf32>
    %31 = arith.mulf %29, %30 : vector<8x8xf32>
    %cst_20 = arith.constant dense<0xFF800000> : vector<8xf32>
    %32 = vector.multi_reduction <maximumf>, %31, %cst_20 [1] : vector<8x8xf32> to vector<8xf32>
    %33 = vector.shape_cast %32 : vector<8xf32> to vector<8x1xf32>
    %34 = vector.broadcast %33 : vector<8x1xf32> to vector<8x8xf32>
    %35 = arith.subf %31, %34 : vector<8x8xf32>
    %36 = math.exp %35 : vector<8x8xf32>
    %cst_21 = arith.constant dense<0.000000e+00> : vector<8xf32>
    %37 = vector.multi_reduction <add>, %36, %cst_21 [1] : vector<8x8xf32> to vector<8xf32>
    %38 = vector.shape_cast %37 : vector<8xf32> to vector<8x1xf32>
    %39 = vector.broadcast %38 : vector<8x1xf32> to vector<8x8xf32>
    %40 = arith.divf %36, %39 : vector<8x8xf32>
    %cst_22 = arith.constant dense<0.000000e+00> : vector<8x4xf32>
    %41 = tpu.matmul %40, %28, %cst_22 {dimension_numbers = #tpu.dot_dimension_numbers<[1], [0], [0], [1], [0, 0, 1, 1], [], []>, precision = #tpu.contract_precision<fp32>} : vector<8x8xf32>, vector<8x4xf32>, vector<8x4xf32> -> vector<8x4xf32>
    %42 = vector.extract_strided_slice %5 {offsets = [0, 8], sizes = [8, 4], strides = [1, 1]} : vector<8x128xf32> to vector<8x4xf32>
    %43 = vector.extract_strided_slice %7 {offsets = [0, 8], sizes = [8, 4], strides = [1, 1]} : vector<8x128xf32> to vector<8x4xf32>
    %44 = vector.extract_strided_slice %9 {offsets = [0, 8], sizes = [8, 4], strides = [1, 1]} : vector<8x128xf32> to vector<8x4xf32>
    %cst_23 = arith.constant dense<0.000000e+00> : vector<8x8xf32>
    %45 = tpu.matmul %42, %43, %cst_23 {dimension_numbers = #tpu.dot_dimension_numbers<[1], [1], [0], [0], [0, 0, 1, 0], [], []>, precision = #tpu.contract_precision<fp32>} : vector<8x4xf32>, vector<8x4xf32>, vector<8x8xf32> -> vector<8x8xf32>
    %cst_24 = arith.constant 5.000000e-01 : f32
    %46 = vector.broadcast %cst_24 : f32 to vector<8x8xf32>
    %47 = arith.mulf %45, %46 : vector<8x8xf32>
    %cst_25 = arith.constant dense<0xFF800000> : vector<8xf32>
    %48 = vector.multi_reduction <maximumf>, %47, %cst_25 [1] : vector<8x8xf32> to vector<8xf32>
    %49 = vector.shape_cast %48 : vector<8xf32> to vector<8x1xf32>
    %50 = vector.broadcast %49 : vector<8x1xf32> to vector<8x8xf32>
    %51 = arith.subf %47, %50 : vector<8x8xf32>
    %52 = math.exp %51 : vector<8x8xf32>
    %cst_26 = arith.constant dense<0.000000e+00> : vector<8xf32>
    %53 = vector.multi_reduction <add>, %52, %cst_26 [1] : vector<8x8xf32> to vector<8xf32>
    %54 = vector.shape_cast %53 : vector<8xf32> to vector<8x1xf32>
    %55 = vector.broadcast %54 : vector<8x1xf32> to vector<8x8xf32>
    %56 = arith.divf %52, %55 : vector<8x8xf32>
    %cst_27 = arith.constant dense<0.000000e+00> : vector<8x4xf32>
    %57 = tpu.matmul %56, %44, %cst_27 {dimension_numbers = #tpu.dot_dimension_numbers<[1], [0], [0], [1], [0, 0, 1, 1], [], []>, precision = #tpu.contract_precision<fp32>} : vector<8x8xf32>, vector<8x4xf32>, vector<8x4xf32> -> vector<8x4xf32>
    %58 = vector.extract_strided_slice %5 {offsets = [0, 12], sizes = [8, 4], strides = [1, 1]} : vector<8x128xf32> to vector<8x4xf32>
    %59 = vector.extract_strided_slice %7 {offsets = [0, 12], sizes = [8, 4], strides = [1, 1]} : vector<8x128xf32> to vector<8x4xf32>
    %60 = vector.extract_strided_slice %9 {offsets = [0, 12], sizes = [8, 4], strides = [1, 1]} : vector<8x128xf32> to vector<8x4xf32>
    %cst_28 = arith.constant dense<0.000000e+00> : vector<8x8xf32>
    %61 = tpu.matmul %58, %59, %cst_28 {dimension_numbers = #tpu.dot_dimension_numbers<[1], [1], [0], [0], [0, 0, 1, 0], [], []>, precision = #tpu.contract_precision<fp32>} : vector<8x4xf32>, vector<8x4xf32>, vector<8x8xf32> -> vector<8x8xf32>
    %cst_29 = arith.constant 5.000000e-01 : f32
    %62 = vector.broadcast %cst_29 : f32 to vector<8x8xf32>
    %63 = arith.mulf %61, %62 : vector<8x8xf32>
    %cst_30 = arith.constant dense<0xFF800000> : vector<8xf32>
    %64 = vector.multi_reduction <maximumf>, %63, %cst_30 [1] : vector<8x8xf32> to vector<8xf32>
    %65 = vector.shape_cast %64 : vector<8xf32> to vector<8x1xf32>
    %66 = vector.broadcast %65 : vector<8x1xf32> to vector<8x8xf32>
    %67 = arith.subf %63, %66 : vector<8x8xf32>
    %68 = math.exp %67 : vector<8x8xf32>
    %cst_31 = arith.constant dense<0.000000e+00> : vector<8xf32>
    %69 = vector.multi_reduction <add>, %68, %cst_31 [1] : vector<8x8xf32> to vector<8xf32>
    %70 = vector.shape_cast %69 : vector<8xf32> to vector<8x1xf32>
    %71 = vector.broadcast %70 : vector<8x1xf32> to vector<8x8xf32>
    %72 = arith.divf %68, %71 : vector<8x8xf32>
    %cst_32 = arith.constant dense<0.000000e+00> : vector<8x4xf32>
    %73 = tpu.matmul %72, %60, %cst_32 {dimension_numbers = #tpu.dot_dimension_numbers<[1], [0], [0], [1], [0, 0, 1, 1], [], []>, precision = #tpu.contract_precision<fp32>} : vector<8x8xf32>, vector<8x4xf32>, vector<8x4xf32> -> vector<8x4xf32>
    %74 = vector.extract_strided_slice %5 {offsets = [0, 16], sizes = [8, 4], strides = [1, 1]} : vector<8x128xf32> to vector<8x4xf32>
    %75 = vector.extract_strided_slice %7 {offsets = [0, 16], sizes = [8, 4], strides = [1, 1]} : vector<8x128xf32> to vector<8x4xf32>
    %76 = vector.extract_strided_slice %9 {offsets = [0, 16], sizes = [8, 4], strides = [1, 1]} : vector<8x128xf32> to vector<8x4xf32>
    %cst_33 = arith.constant dense<0.000000e+00> : vector<8x8xf32>
    %77 = tpu.matmul %74, %75, %cst_33 {dimension_numbers = #tpu.dot_dimension_numbers<[1], [1], [0], [0], [0, 0, 1, 0], [], []>, precision = #tpu.contract_precision<fp32>} : vector<8x4xf32>, vector<8x4xf32>, vector<8x8xf32> -> vector<8x8xf32>
    %cst_34 = arith.constant 5.000000e-01 : f32
    %78 = vector.broadcast %cst_34 : f32 to vector<8x8xf32>
    %79 = arith.mulf %77, %78 : vector<8x8xf32>
    %cst_35 = arith.constant dense<0xFF800000> : vector<8xf32>
    %80 = vector.multi_reduction <maximumf>, %79, %cst_35 [1] : vector<8x8xf32> to vector<8xf32>
    %81 = vector.shape_cast %80 : vector<8xf32> to vector<8x1xf32>
    %82 = vector.broadcast %81 : vector<8x1xf32> to vector<8x8xf32>
    %83 = arith.subf %79, %82 : vector<8x8xf32>
    %84 = math.exp %83 : vector<8x8xf32>
    %cst_36 = arith.constant dense<0.000000e+00> : vector<8xf32>
    %85 = vector.multi_reduction <add>, %84, %cst_36 [1] : vector<8x8xf32> to vector<8xf32>
    %86 = vector.shape_cast %85 : vector<8xf32> to vector<8x1xf32>
    %87 = vector.broadcast %86 : vector<8x1xf32> to vector<8x8xf32>
    %88 = arith.divf %84, %87 : vector<8x8xf32>
    %cst_37 = arith.constant dense<0.000000e+00> : vector<8x4xf32>
    %89 = tpu.matmul %88, %76, %cst_37 {dimension_numbers = #tpu.dot_dimension_numbers<[1], [0], [0], [1], [0, 0, 1, 1], [], []>, precision = #tpu.contract_precision<fp32>} : vector<8x8xf32>, vector<8x4xf32>, vector<8x4xf32> -> vector<8x4xf32>
    %90 = vector.extract_strided_slice %5 {offsets = [0, 20], sizes = [8, 4], strides = [1, 1]} : vector<8x128xf32> to vector<8x4xf32>
    %91 = vector.extract_strided_slice %7 {offsets = [0, 20], sizes = [8, 4], strides = [1, 1]} : vector<8x128xf32> to vector<8x4xf32>
    %92 = vector.extract_strided_slice %9 {offsets = [0, 20], sizes = [8, 4], strides = [1, 1]} : vector<8x128xf32> to vector<8x4xf32>
    %cst_38 = arith.constant dense<0.000000e+00> : vector<8x8xf32>
    %93 = tpu.matmul %90, %91, %cst_38 {dimension_numbers = #tpu.dot_dimension_numbers<[1], [1], [0], [0], [0, 0, 1, 0], [], []>, precision = #tpu.contract_precision<fp32>} : vector<8x4xf32>, vector<8x4xf32>, vector<8x8xf32> -> vector<8x8xf32>
    %cst_39 = arith.constant 5.000000e-01 : f32
    %94 = vector.broadcast %cst_39 : f32 to vector<8x8xf32>
    %95 = arith.mulf %93, %94 : vector<8x8xf32>
    %cst_40 = arith.constant dense<0xFF800000> : vector<8xf32>
    %96 = vector.multi_reduction <maximumf>, %95, %cst_40 [1] : vector<8x8xf32> to vector<8xf32>
    %97 = vector.shape_cast %96 : vector<8xf32> to vector<8x1xf32>
    %98 = vector.broadcast %97 : vector<8x1xf32> to vector<8x8xf32>
    %99 = arith.subf %95, %98 : vector<8x8xf32>
    %100 = math.exp %99 : vector<8x8xf32>
    %cst_41 = arith.constant dense<0.000000e+00> : vector<8xf32>
    %101 = vector.multi_reduction <add>, %100, %cst_41 [1] : vector<8x8xf32> to vector<8xf32>
    %102 = vector.shape_cast %101 : vector<8xf32> to vector<8x1xf32>
    %103 = vector.broadcast %102 : vector<8x1xf32> to vector<8x8xf32>
    %104 = arith.divf %100, %103 : vector<8x8xf32>
    %cst_42 = arith.constant dense<0.000000e+00> : vector<8x4xf32>
    %105 = tpu.matmul %104, %92, %cst_42 {dimension_numbers = #tpu.dot_dimension_numbers<[1], [0], [0], [1], [0, 0, 1, 1], [], []>, precision = #tpu.contract_precision<fp32>} : vector<8x8xf32>, vector<8x4xf32>, vector<8x4xf32> -> vector<8x4xf32>
    %106 = vector.extract_strided_slice %5 {offsets = [0, 24], sizes = [8, 4], strides = [1, 1]} : vector<8x128xf32> to vector<8x4xf32>
    %107 = vector.extract_strided_slice %7 {offsets = [0, 24], sizes = [8, 4], strides = [1, 1]} : vector<8x128xf32> to vector<8x4xf32>
    %108 = vector.extract_strided_slice %9 {offsets = [0, 24], sizes = [8, 4], strides = [1, 1]} : vector<8x128xf32> to vector<8x4xf32>
    %cst_43 = arith.constant dense<0.000000e+00> : vector<8x8xf32>
    %109 = tpu.matmul %106, %107, %cst_43 {dimension_numbers = #tpu.dot_dimension_numbers<[1], [1], [0], [0], [0, 0, 1, 0], [], []>, precision = #tpu.contract_precision<fp32>} : vector<8x4xf32>, vector<8x4xf32>, vector<8x8xf32> -> vector<8x8xf32>
    %cst_44 = arith.constant 5.000000e-01 : f32
    %110 = vector.broadcast %cst_44 : f32 to vector<8x8xf32>
    %111 = arith.mulf %109, %110 : vector<8x8xf32>
    %cst_45 = arith.constant dense<0xFF800000> : vector<8xf32>
    %112 = vector.multi_reduction <maximumf>, %111, %cst_45 [1] : vector<8x8xf32> to vector<8xf32>
    %113 = vector.shape_cast %112 : vector<8xf32> to vector<8x1xf32>
    %114 = vector.broadcast %113 : vector<8x1xf32> to vector<8x8xf32>
    %115 = arith.subf %111, %114 : vector<8x8xf32>
    %116 = math.exp %115 : vector<8x8xf32>
    %cst_46 = arith.constant dense<0.000000e+00> : vector<8xf32>
    %117 = vector.multi_reduction <add>, %116, %cst_46 [1] : vector<8x8xf32> to vector<8xf32>
    %118 = vector.shape_cast %117 : vector<8xf32> to vector<8x1xf32>
    %119 = vector.broadcast %118 : vector<8x1xf32> to vector<8x8xf32>
    %120 = arith.divf %116, %119 : vector<8x8xf32>
    %cst_47 = arith.constant dense<0.000000e+00> : vector<8x4xf32>
    %121 = tpu.matmul %120, %108, %cst_47 {dimension_numbers = #tpu.dot_dimension_numbers<[1], [0], [0], [1], [0, 0, 1, 1], [], []>, precision = #tpu.contract_precision<fp32>} : vector<8x8xf32>, vector<8x4xf32>, vector<8x4xf32> -> vector<8x4xf32>
    %122 = vector.extract_strided_slice %5 {offsets = [0, 28], sizes = [8, 4], strides = [1, 1]} : vector<8x128xf32> to vector<8x4xf32>
    %123 = vector.extract_strided_slice %7 {offsets = [0, 28], sizes = [8, 4], strides = [1, 1]} : vector<8x128xf32> to vector<8x4xf32>
    %124 = vector.extract_strided_slice %9 {offsets = [0, 28], sizes = [8, 4], strides = [1, 1]} : vector<8x128xf32> to vector<8x4xf32>
    %cst_48 = arith.constant dense<0.000000e+00> : vector<8x8xf32>
    %125 = tpu.matmul %122, %123, %cst_48 {dimension_numbers = #tpu.dot_dimension_numbers<[1], [1], [0], [0], [0, 0, 1, 0], [], []>, precision = #tpu.contract_precision<fp32>} : vector<8x4xf32>, vector<8x4xf32>, vector<8x8xf32> -> vector<8x8xf32>
    %cst_49 = arith.constant 5.000000e-01 : f32
    %126 = vector.broadcast %cst_49 : f32 to vector<8x8xf32>
    %127 = arith.mulf %125, %126 : vector<8x8xf32>
    %cst_50 = arith.constant dense<0xFF800000> : vector<8xf32>
    %128 = vector.multi_reduction <maximumf>, %127, %cst_50 [1] : vector<8x8xf32> to vector<8xf32>
    %129 = vector.shape_cast %128 : vector<8xf32> to vector<8x1xf32>
    %130 = vector.broadcast %129 : vector<8x1xf32> to vector<8x8xf32>
    %131 = arith.subf %127, %130 : vector<8x8xf32>
    %132 = math.exp %131 : vector<8x8xf32>
    %cst_51 = arith.constant dense<0.000000e+00> : vector<8xf32>
    %133 = vector.multi_reduction <add>, %132, %cst_51 [1] : vector<8x8xf32> to vector<8xf32>
    %134 = vector.shape_cast %133 : vector<8xf32> to vector<8x1xf32>
    %135 = vector.broadcast %134 : vector<8x1xf32> to vector<8x8xf32>
    %136 = arith.divf %132, %135 : vector<8x8xf32>
    %cst_52 = arith.constant dense<0.000000e+00> : vector<8x4xf32>
    %137 = tpu.matmul %136, %124, %cst_52 {dimension_numbers = #tpu.dot_dimension_numbers<[1], [0], [0], [1], [0, 0, 1, 1], [], []>, precision = #tpu.contract_precision<fp32>} : vector<8x8xf32>, vector<8x4xf32>, vector<8x4xf32> -> vector<8x4xf32>
    %cst_53 = arith.constant 0.000000e+00 : f32
    %138 = vector.broadcast %cst_53 : f32 to vector<8x96xf32>
    %139 = tpu.concatenate %25, %41, %57, %73, %89, %105, %121, %137, %138 in 1 : vector<8x4xf32>, vector<8x4xf32>, vector<8x4xf32>, vector<8x4xf32>, vector<8x4xf32>, vector<8x4xf32>, vector<8x4xf32>, vector<8x4xf32>, vector<8x96xf32> -> vector<8x128xf32>
    %c0_54 = arith.constant 0 : index
    %c0_55 = arith.constant 0 : index
    %140 = vector.load %arg6[%c0_54, %c0_55] : memref<128x128xf32, #tpu.memory_space<vmem>>, vector<128x128xf32>
    %cst_56 = arith.constant dense<0.000000e+00> : vector<8x128xf32>
    %141 = tpu.matmul %139, %140, %cst_56 {dimension_numbers = #tpu.dot_dimension_numbers<[1], [0], [0], [1], [0, 0, 1, 1], [], []>, precision = #tpu.contract_precision<fp32>} : vector<8x128xf32>, vector<128x128xf32>, vector<8x128xf32> -> vector<8x128xf32>
    %142 = arith.addf %1, %141 : vector<8x128xf32>
    %143 = arith.mulf %142, %142 : vector<8x128xf32>
    %cst_57 = arith.constant dense<0.000000e+00> : vector<8xf32>
    %144 = vector.multi_reduction <add>, %143, %cst_57 [1] : vector<8x128xf32> to vector<8xf32>
    %145 = vector.shape_cast %144 : vector<8xf32> to vector<8x1xf32>
    %146 = math.sqrt %145 : vector<8x1xf32>
    %cst_58 = arith.constant 0.176776692 : f32
    %147 = vector.broadcast %cst_58 : f32 to vector<8x1xf32>
    %148 = arith.mulf %146, %147 : vector<8x1xf32>
    %cst_59 = arith.constant 9.99999997E-7 : f32
    %149 = vector.broadcast %cst_59 : f32 to vector<8x1xf32>
    %150 = arith.addf %148, %149 : vector<8x1xf32>
    %151 = vector.broadcast %150 : vector<8x1xf32> to vector<8x128xf32>
    %152 = arith.divf %142, %151 : vector<8x128xf32>
    %c0_60 = arith.constant 0 : index
    %c0_61 = arith.constant 0 : index
    %153 = vector.load %arg7[%c0_60, %c0_61] : memref<1x128xf32, #tpu.memory_space<vmem>>, vector<1x128xf32>
    %154 = vector.broadcast %153 : vector<1x128xf32> to vector<8x128xf32>
    %155 = arith.mulf %152, %154 : vector<8x128xf32>
    %c0_62 = arith.constant 0 : index
    %c0_63 = arith.constant 0 : index
    %c0_64 = arith.constant 0 : index
    %156 = vector.load %arg8[%c0_62, %c0_63, %c0_64] : memref<1x8x128xf32, #tpu.memory_space<vmem>>, vector<1x8x128xf32>
    %157 = vector.shape_cast %156 : vector<1x8x128xf32> to vector<8x128xf32>
    %158 = vector.shape_cast %155 : vector<8x128xf32> to vector<1x8x128xf32>
    tpu.vector_store %arg8[%c0_62, %c0_63, %c0_64], %158 {strides = array<i32>} : memref<1x8x128xf32, #tpu.memory_space<vmem>>, vector<1x8x128xf32>,
    return
  }
  func.func @transform_0(%arg0: i32) -> (i32, i32, i32) {
    %c0_i32 = arith.constant 0 : i32
    %c0_i32_0 = arith.constant 0 : i32
    %c0_i32_1 = arith.constant 0 : i32
    return %arg0, %c0_i32, %c0_i32_0 : i32, i32, i32
  }
  func.func @transform_1(%arg0: i32) -> (i32, i32, i32) {
    %c0_i32 = arith.constant 0 : i32
    %c0_i32_0 = arith.constant 0 : i32
    %c0_i32_1 = arith.constant 0 : i32
    return %arg0, %c0_i32, %c0_i32_0 : i32, i32, i32
  }
  func.func @transform_2(%arg0: i32) -> (i32, i32) {
    %c0_i32 = arith.constant 0 : i32
    %c0_i32_0 = arith.constant 0 : i32
    %c0_i32_1 = arith.constant 0 : i32
    return %c0_i32, %c0_i32_0 : i32, i32
  }
  func.func @transform_3(%arg0: i32) -> (i32, i32) {
    %c0_i32 = arith.constant 0 : i32
    %c0_i32_0 = arith.constant 0 : i32
    %c0_i32_1 = arith.constant 0 : i32
    return %c0_i32, %c0_i32_0 : i32, i32
  }
  func.func @transform_4(%arg0: i32) -> (i32, i32) {
    %c0_i32 = arith.constant 0 : i32
    %c0_i32_0 = arith.constant 0 : i32
    %c0_i32_1 = arith.constant 0 : i32
    return %c0_i32, %c0_i32_0 : i32, i32
  }
  func.func @transform_5(%arg0: i32) -> (i32, i32) {
    %c0_i32 = arith.constant 0 : i32
    %c0_i32_0 = arith.constant 0 : i32
    %c0_i32_1 = arith.constant 0 : i32
    return %c0_i32, %c0_i32_0 : i32, i32
  }
  func.func @transform_6(%arg0: i32) -> (i32, i32) {
    %c0_i32 = arith.constant 0 : i32
    %c0_i32_0 = arith.constant 0 : i32
    %c0_i32_1 = arith.constant 0 : i32
    return %c0_i32, %c0_i32_0 : i32, i32
  }
  func.func @transform_7(%arg0: i32) -> (i32, i32, i32) {
    %c0_i32 = arith.constant 0 : i32
    %c0_i32_0 = arith.constant 0 : i32
    %c0_i32_1 = arith.constant 0 : i32
    return %arg0, %c0_i32, %c0_i32_0 : i32, i32, i32
  }
}

</mosaic_0001>

<bundles_post_ra>
// kernel: tpu_custom_call.1
= control target key start
LH: loop header
LB: loop body
LE: loop exit
PB: predicated region body
PF: predicated region fallthrough
CT: control target
= control target key end

     0   :  { %s15152_s0 = inlined_call_operand.hbm [shape: f32[2,8,128], index: 0, kind: input, shape index: {}]   ;;  %s15153_s1 = inlined_call_operand.hbm [shape: f32[2,8,128], index: 1, kind: input, shape index: {}]   ;;  %s15154_s2 = inlined_call_operand.hbm [shape: f32[128,128], index: 2, kind: input, shape index: {}]   ;;  %s15155_s3 = inlined_call_operand.hbm [shape: f32[128,128], index: 3, kind: input, shape index: {}]   ;;  %s15156_s4 = inlined_call_operand.hbm [shape: f32[128,128], index: 4, kind: input, shape index: {}]   ;;  %s15157_s5 = inlined_call_operand.hbm [shape: f32[128,128], index: 5, kind: input, shape index: {}]   ;;  %s15158_s6 = inlined_call_operand.vmem [shape: f32[1,128], index: 6, kind: input, shape index: {}]   ;;  %s15159_s7 = inlined_call_operand.hbm [shape: f32[2,8,128], index: 7, kind: output, shape index: {}]  }
   0x1   :  { %15168 = sst [smem:[#allocation20_spill]] %s15154_s2 }
   0x2   :  { %15169 = sst [smem:[#allocation21_spill]] %s15155_s3 }
   0x3   :  { %15170 = sst [smem:[#allocation22_spill]] %s15156_s4 }
   0x4   :  { %15171 = sst [smem:[#allocation23_spill]] %s15157_s5 }
   0x5   :  { %12 = vsyncpa [#allocation3], 0 }
   0x6   :  { %14 = vsyncpa [#allocation3 + $0x1], 0 }
   0x7   :  { %15 = vsyncpa [#allocation6], 0 }
   0x8   :  { %17 = vsyncpa [#allocation6 + $0x1], 0 }
   0x9   :  { %18 = vsyncpa [#allocation9], 0 }
   0xa   :  { %19 = vsyncpa [#allocation12], 0 }
   0xb   :  { %20 = vsyncpa [#allocation4], 0 }
   0xc   :  { %22 = vsyncpa [#allocation4 + $0x1], 0  ;;  %s12970_s24 = smov 0   ;;  %s12972_s25 = smov 0  }
   0xd   :  { %s12974_s26 = smov 0   ;;  %s12976_s27 = smov 0  }
   0xe LB: > { %s12905_s28 = smov [#allocation7]   ;;  %s12991_s30 = sadd.s32 4294967295, %s12903_s27   ;;  %s12903_s27 = sphi %s12976_s27, %s15201_s27   ;;  %s12899_s26 = sphi %s12974_s26, %s15200_s26   ;;  %s12895_s25 = sphi %s12972_s25, %s15199_s25   ;;  %s12891_s24 = sphi %s12970_s24, %s15198_s24  }
   0xf   : > { %s228_s29 = sshll.u32 %s12905_s28, 4  ;;  %p10573_p0 = scmp.ge.s32.totalorder %s12903_s27, 1  ;;  %s229_s29 = int_to_ptr.vmem [resolvable:$true] %s228_s29 }
  0x10   : > { %p15160_p1 = scmp.eq.s32.totalorder %s12991_s30, 0  ;;  %p216_p2 = scmp.lt.s32.totalorder %s12903_s27, 3 }
  0x11   : > { %s12906_s9 = smov [#allocation8]   ;;  %s12907_s12 = smov [#allocation10]  }
  0x12   : > { %p12996_p3 = pnand %p10573_p0, %p216_p2  ;;  %s241_s10 = sshll.u32 %s12906_s9, 4  ;;  %s13009_s10 = int_to_ptr.vmem [resolvable:$true] %s241_s10 }
  0x13   : > { %s254_s13 = sshll.u32 %s12907_s12, 4  ;;  %s12674_s14 = scalar_lea.vmem %s229_s29, 2048  ;;  %s13011_s13 = int_to_ptr.vmem [resolvable:$true] %s254_s13 }
  0x14   : > { %s15172_s8 = scalar_select %p12996_p3, 1, 0 }
  0x15   : > { %p12538_p5 = pneg %p12996_p3  ;;  %p12675_p8 = scmp.ne.s32.totalorder %s229_s29, %s12674_s14 }
  0x16   : > { %p12682_p11 = scmp.lt.s32.totalorder %s229_s29, %s229_s29  ;;  %p12683_p12 = scmp.lt.s32.totalorder %s12674_s14, %s12674_s14 }
  0x17   : > { %p13005_p6 = pnand %p12538_p5, %p15160_p1 }
  0x18   : > { %p12684_p13 = por %p12683_p12, %p12682_p11 }
  0x19   : > { %p12665_p7 = pneg %p13005_p6 }
  0x1b   : > { %p12677_p9 = pnand %p12675_p8, %p12665_p7 }
  0x1d   : > { %p12678_p10 = pneg %p12677_p9 }
  0x1f   : > { %p12685_p0 = pnand %p12684_p13, %p12678_p10 }
  0x21   : > { %12688 = shalt.err (!%p12685_p0)
}
  0x22   : > { %s12908_s15 = smov 128   ;;  %s12909_s16 = smov 8  }
  0x23   : > { %s15174_s2 = sld [smem:[#allocation20_spill]]  ;;  %s12700_s19 = scalar_lea.vmem %s13009_s10, 2048 }
  0x24   : > { %p12701_p2 = scmp.ne.s32.totalorder %s13009_s10, %s12700_s19  ;;  %p12708_p9 = scmp.lt.s32.totalorder %s13009_s10, %s13009_s10 }
  0x25   : > { %p12709_p10 = scmp.lt.s32.totalorder %s12700_s19, %s12700_s19 }
  0x26   : > { %p12703_p5 = pnand %p12701_p2, %p12665_p7 }
  0x27   : > { %p12710_p11 = por %p12709_p10, %p12708_p9 }
  0x28   : > { %p12704_p8 = pneg %p12703_p5 }
  0x29   : > { %12541 = dma.hbm_to_vmem [thread:$0]  (!%p13005_p6), %s15174_s2, 2048, %s229_s29, [#allocation6], %s12908_s15, %s12908_s15, %s12909_s16  }
  0x2a   : > { %p12711_p12 = pnand %p12710_p11, %p12704_p8 }
  0x2c   : > { %12714 = shalt.err (!%p12711_p12)
}
  0x2d   : > { %s15175_s3 = sld [smem:[#allocation21_spill]]  ;;  %s12726_s22 = scalar_lea.vmem %s13011_s13, 2048 }
  0x2e   : > { %p12727_p13 = scmp.ne.s32.totalorder %s13011_s13, %s12726_s22  ;;  %p12734_p5 = scmp.lt.s32.totalorder %s13011_s13, %s13011_s13 }
  0x2f   : > { %p12735_p8 = scmp.lt.s32.totalorder %s12726_s22, %s12726_s22 }
  0x30   : > { %p12729_p0 = pnand %p12727_p13, %p12665_p7 }
  0x31   : > { %p12736_p9 = por %p12735_p8, %p12734_p5 }
  0x32   : > { %p12730_p2 = pneg %p12729_p0 }
  0x33   : > { %12544 = dma.hbm_to_vmem [thread:$0]  (!%p13005_p6), %s15175_s3, 2048, %s13009_s10, [#allocation9], %s12908_s15, %s12908_s15, %s12909_s16  }
  0x34   : > { %p12737_p10 = pnand %p12736_p9, %p12730_p2 }
  0x36   : > { %12740 = shalt.err (!%p12737_p10)
}
  0x37   : > { %s15176_s4 = sld [smem:[#allocation22_spill]]  ;;  %s12910_s29 = smov [#allocation11]  }
  0x38   : > { %s267_s9 = sshll.u32 %s12910_s29, 4  ;;  %s268_s9 = int_to_ptr.vmem [resolvable:$true] %s267_s9 }
  0x39   : > { %s12752_s10 = scalar_lea.vmem %s268_s9, 2048  ;;  %p12760_p0 = scmp.lt.s32.totalorder %s268_s9, %s268_s9 }
  0x3a   : > { %p12753_p11 = scmp.ne.s32.totalorder %s268_s9, %s12752_s10  ;;  %p12761_p2 = scmp.lt.s32.totalorder %s12752_s10, %s12752_s10 }
  0x3c   : > { %p12755_p12 = pnand %p12753_p11, %p12665_p7  ;;  %p12762_p5 = por %p12761_p2, %p12760_p0 }
  0x3d   : > { %12547 = dma.hbm_to_vmem [thread:$0]  (!%p13005_p6), %s15176_s4, 2048, %s13011_s13, [#allocation9], %s12908_s15, %s12908_s15, %s12909_s16  }
  0x3e   : > { %p12756_p13 = pneg %p12755_p12 }
  0x40   : > { %p12763_p8 = pnand %p12762_p5, %p12756_p13 }
  0x42   : > { %12766 = shalt.err (!%p12763_p8)
}
  0x43   : > { %s15177_s5 = sld [smem:[#allocation23_spill]]  ;;  %s10572_s11 = sadd.s32 4294967294, %s12903_s27  }
  0x44   : > { %s13071_s14 = sadd.s32 1, %s12903_s27   ;;  %s35_s18 = sadd.s32 1, %s12899_s26 }
  0x45   : > { %s32_s17 = ssub.s32 %s12903_s27, %s13071_s14  ;;  %p42_p9 = scmp.ne.s32.totalorder %s12899_s26, %s12895_s25 }
  0x46   : > { %p33_p7 = scmp.eq.s32.totalorder %s32_s17, 0  ;;  %p43_p10 = scmp.eq.s32.totalorder %s12903_s27, 0 }
  0x47   : > { %p48_p11 = scmp.ne.s32.totalorder %s12895_s25, %s12891_s24  ;;  %p203_p13 = scmp.eq.s32.totalorder %s12991_s30, 1 }
  0x48   : > { %s13082_s19 = scalar_select %p33_p7, %s12899_s26, %s35_s18  }
  0x49   : > { %12550 = dma.hbm_to_vmem [thread:$0]  (!%p13005_p6), %s15177_s5, 2048, %s268_s9, [#allocation12], %s12908_s15, %s12908_s15, %s12909_s16  }
  0x4a   : > { %p13084_p12 = por %p43_p10, %p42_p9  ;;  %p13090_p6 = por %p15160_p1, %p48_p11 }
  0x4b   : > { %p209_p0 = scmp.eq.s32.totalorder %s10572_s11, 1  ;;  %p12566_p2 = scmp.lt.s32.totalorder %s12903_s27, 2 }
  0x4c   : > { %s15179_s15 = scalar_select %p13090_p6, 1, 0 }
  0x4d   : > { %s284_s16 = sand.u32 1, %s12899_s26   ;;  %p13097_p5 = por %p203_p13, %p42_p9 }
  0x4e   : > { %p13101_p8 = por %p209_p0, %p48_p11  ;;  %s13105_s23 = sshll.u32 %s284_s16, 3 }
  0x4f   : > { %s15180_s21 = scalar_select %p13097_p5, 1, 0 }
  0x50   : > { %s15181_s22 = scalar_select %p13101_p8, 1, 0 }
  0x51   : > { %s10580_s28 = sshll.u32 %s12903_s27, 7  ;;  %s288_s12 = scalar_lea.vmem [#allocation2], %s13105_s23 }
  0x52   : > { %s13111_s10 = scalar_lea.hbm %s15152_s0, %s10580_s28  ;;  %s295_s13 = sshll.u32 %s288_s12, 4  ;;  %s13114_s13 = int_to_ptr.vmem [resolvable:$true] %s295_s13 }
  0x53   : > { %p13118_p7 = pnand %p12566_p2, %p13084_p12  ;;  %s13125_s29 = scalar_lea.hbm %s15153_s1, %s10580_s28 }
  0x54   : > { %s302_s9 = sand.u32 1, %s12903_s27   ;;  %s285_s2 = scalar_lea.sflag [#allocation3], %s284_s16 }
  0x55   : > { %s12767_s3 = scalar_lea.hbm %s13111_s10, 128  ;;  %p12769_p10 = pneg %p13118_p7 }
  0x56   : > { %p12768_p9 = scmp.ne.s32.totalorder %s13111_s10, %s12767_s3  ;;  %s12772_s4 = scalar_lea.hbm %s15152_s0, 256 }
  0x57   : > { %p12773_p13 = scmp.lt.s32.totalorder %s13111_s10, %s15152_s0  ;;  %p12774_p0 = scmp.lt.s32.totalorder %s12772_s4, %s12767_s3 }
  0x58   : > { %p12770_p11 = pnand %p12769_p10, %p12768_p9 }
  0x59   : > { %p12775_p2 = por %p12774_p0, %p12773_p13 }
  0x5a   : > { %p12771_p12 = pneg %p12770_p11 }
  0x5c   : > { %p12776_p4 = pnand %p12775_p2, %p12771_p12 }
  0x5e   : > { %12779 = shalt.err (!%p12776_p4)
}
  0x5f   : > { %s12780_s16 = scalar_lea.vmem %s13114_s13, 128  ;;  %s12911_s28 = smov [#allocation2]  }
  0x60   : > { %p12781_p1 = scmp.ne.s32.totalorder %s13114_s13, %s12780_s16  ;;  %s12785_s18 = sshll.u32 %s12911_s28, 4  ;;  %s12786_s18 = int_to_ptr.vmem [resolvable:$false] %s12785_s18 }
  0x61   : > { %s12787_s20 = scalar_lea.vmem %s12786_s18, 256  ;;  %p12788_p8 = scmp.lt.s32.totalorder %s13114_s13, %s12786_s18 }
  0x62   : > { %p12783_p9 = pnand %p12781_p1, %p12769_p10  ;;  %p12789_p5 = scmp.lt.s32.totalorder %s12787_s20, %s12780_s16 }
  0x64   : > { %p12784_p11 = pneg %p12783_p9  ;;  %p12790_p6 = por %p12789_p5, %p12788_p8 }
  0x66   : > { %p12791_p13 = pnand %p12790_p6, %p12784_p11 }
  0x68   : > { %12794 = shalt.err (!%p12791_p13)
}
  0x69   : > { %12554 = dma.hbm_to_vmem [thread:$0]  (!%p13118_p7), %s13111_s10, 128, %s13114_s13, %s285_s2  }
  0x6a   : > { %s306_s3 = scalar_lea.vmem [#allocation5], %s13105_s23  ;;  %s303_s5 = scalar_lea.sflag [#allocation6], %s302_s9 }
  0x6b   : > { %s313_s4 = sshll.u32 %s306_s3, 4  ;;  %s12795_s12 = scalar_lea.hbm %s13125_s29, 128  ;;  %s314_s4 = int_to_ptr.vmem [resolvable:$true] %s313_s4 }
  0x6c   : > { %p12796_p1 = scmp.ne.s32.totalorder %s13125_s29, %s12795_s12  ;;  %s12800_s28 = scalar_lea.hbm %s15153_s1, 256 }
  0x6d   : > { %p12801_p5 = scmp.lt.s32.totalorder %s13125_s29, %s15153_s1  ;;  %p12802_p8 = scmp.lt.s32.totalorder %s12800_s28, %s12795_s12 }
  0x6e   : > { %p12798_p4 = pnand %p12796_p1, %p12769_p10 }
  0x6f   : > { %p12803_p12 = por %p12802_p8, %p12801_p5 }
  0x70   : > { %p12799_p6 = pneg %p12798_p4 }
  0x72   : > { %p12804_p0 = pnand %p12803_p12, %p12799_p6 }
  0x74   : > { %12807 = shalt.err (!%p12804_p0)
}
  0x75   : > { %s12808_s2 = scalar_lea.vmem %s314_s4, 128  ;;  %s12912_s23 = smov [#allocation5]  }
  0x76   : > { %p12809_p2 = scmp.ne.s32.totalorder %s314_s4, %s12808_s2  ;;  %s12813_s10 = sshll.u32 %s12912_s23, 4  ;;  %s12814_s10 = int_to_ptr.vmem [resolvable:$false] %s12813_s10 }
  0x77   : > { %s12815_s13 = scalar_lea.vmem %s12814_s10, 256  ;;  %p12816_p13 = scmp.lt.s32.totalorder %s314_s4, %s12814_s10 }
  0x78   : > { %p12811_p9 = pnand %p12809_p2, %p12769_p10  ;;  %p12817_p1 = scmp.lt.s32.totalorder %s12815_s13, %s12808_s2 }
  0x7a   : > { %p12812_p11 = pneg %p12811_p9  ;;  %p12818_p4 = por %p12817_p1, %p12816_p13 }
  0x7c   : > { %p12819_p3 = pnand %p12818_p4, %p12812_p11 }
  0x7e   : > { %12822 = shalt.err (!%p12819_p3)
}
  0x7f   : > { %12557 = dma.hbm_to_vmem [thread:$0]  (!%p13118_p7), %s13125_s29, 128, %s314_s4, %s303_s5  }
  0x80   : > { %p15183_p6 = scmp.ne.s32.totalorder %s15172_s8, 0 }
  0x81   : > { %s13176_s9 = sand.u32 (!%p15183_p6), 1, %s12895_s25   ;;  %p15184_p10 = scmp.ne.s32.totalorder (!%p15183_p6), %s15179_s15, 0 }
  0x82   : > { %322 = sbr.rel (%p15183_p6) target bundleno = 5681 (0x1631), region = 48  ;;  %s13179_s3 = sshll.u32 (!%p15183_p6), %s13176_s9, 3 }
  0x83   : > { %s325_s12 = scalar_lea.sflag (!%p15183_p6), [#allocation3], %s13176_s9  ;;  %s328_s17 = scalar_lea.vmem (!%p15183_p6), [#allocation2], %s13179_s3 }
  0x87   : > { %12866 = dma.done.wait (%p15184_p10), %s325_s12, 128  }
  0x88   : > { %12868 = vsyncadd (%p15184_p10), %s325_s12, 4294967168  ;;  %s333_s8 = sand.u32 1, %s12991_s30   ;;  %s337_s29 = scalar_lea.vmem [#allocation5], %s13179_s3 }
  0x89   : > { %s334_s11 = scalar_lea.sflag [#allocation6], %s333_s8 }
  0x8a   : > { %12870 = dma.done.wait (%p15184_p10), %s334_s11, 128  }
  0x8b   : > { %12872 = vsyncadd (%p15184_p10), %s334_s11, 4294967168  ;;  %p15185_p3 = scmp.eq.s32.totalorder %s12991_s30, 0 }
  0x8d   : > { %12874 = dma.done.wait (%p15185_p3), [#allocation6], 2048   ;;  %p15186_p7 = pmov %p15185_p3 }
  0x8e   : > { %p15187_p5 = pmov %p15185_p3 }
  0x8f   : > { %12876 = vsyncadd (%p15186_p7), [#allocation6], 4294965248 }
  0x90   : > { %12878 = dma.done.wait (%p15187_p5), [#allocation9], 4096   ;;  %p15188_p8 = pmov %p15185_p3 }
  0x91   : > { %p15189_p12 = pmov %p15185_p3 }
  0x92   : > { %12880 = vsyncadd (%p15188_p8), [#allocation9], 4294963200 }
  0x93   : > { %12882 = dma.done.wait (%p15189_p12), [#allocation12], 2048   ;;  %p15190_p0 = pmov %p15185_p3 }
  0x94   : > { %v12913_v0 = vmov 0.0   ;;  %vm12914_vm0 = vmmov 0   ;;  %v406_v1 = vld [vmem:[#allocation7 + $0x78] sm:$0xff]  ;;  %v405_v2 = vld [vmem:[#allocation7 + $0x70] sm:$0xff]  ;;  %v404_v3 = vld [vmem:[#allocation7 + $0x68] sm:$0xff]  ;;  %vm2362_vm1 = vcmask 31744  }
  0x95   : > { %12884 = vsyncadd (%p15190_p0), [#allocation12], 4294965248  ;;  %11196 = vmatprep.subr.mxu0 %v12913_v0  ;;  %11231 = vmatprep.subr.mxu1 %v12913_v0  ;;  %v13211_v4 = vand.u32 4294901760, %v406_v1  ;;  %v13213_v5 = vand.u32 4294901760, %v405_v2  ;;  %v13215_v6 = vand.u32 4294901760, %v404_v3  ;;  %v403_v7 = vld [vmem:[#allocation7 + $0x60] sm:$0xff] }
  0x96   : > { %11228 = vmatprep.mubr.msk.f32.mxu0 %vm12914_vm0, %v12913_v0  ;;  %11263 = vmatprep.mubr.msk.f32.mxu1 %vm12914_vm0, %v12913_v0  ;;  %v402_v8 = vld [vmem:[#allocation7 + $0x58] sm:$0xff]  ;;  %v401_v9 = vld [vmem:[#allocation7 + $0x50] sm:$0xff]  ;;  %v13217_v10 = vand.u32 4294901760, %v403_v7  ;;  %v400_v13 = vld [vmem:[#allocation7 + $0x48] sm:$0xff]  ;;  %s12915_s15 = smov 124   ;;  %vm2816_vm2 = vcmask 64512  }
  0x97   : > { %v13219_v11 = vand.u32 4294901760, %v402_v8  ;;  %v13221_v12 = vand.u32 4294901760, %v401_v9  ;;  %v399_v14 = vld [vmem:[#allocation7 + $0x40] sm:$0xff]  ;;  %11197 = vmatpush3.msra.mxu0 %v13211_v4  ;;  %v13225_v15 = vsub.f32 %v406_v1, %v13211_v4  ;;  %v13228_v16 = vsub.f32 %v405_v2, %v13213_v5  ;;  %v398_v19 = vld [vmem:[#allocation7 + $0x38] sm:$0xff]  ;;  %v397_v26 = vld [vmem:[#allocation7 + $0x30] sm:$0xff]  ;;  %s12916_s4 = smov 120  }
  0x98   : > { %v13230_v17 = vand.u32 4294901760, %v400_v13  ;;  %v13233_v18 = vsub.f32 %v404_v3, %v13215_v6  ;;  %11198 = vmatprep.subr.mxu0 %v12913_v0  ;;  %v13237_v20 = vsub.f32 %v403_v7, %v13217_v10  ;;  %v13246_v25 = vand.u32 4294901760, %v399_v14  ;;  %v396_v36 = vld [vmem:[#allocation7 + $0x28] sm:$0xff]  ;;  %v395_v41 = vld [vmem:[#allocation7 + $0x20] sm:$0xff]  ;;  %v394_v49 = vld [vmem:[#allocation7 + $0x18] sm:$0xff]  ;;  %s12917_s5 = smov 116  }
  0x99   : > { %v13240_v21 = vsub.f32 %v402_v8, %v13219_v11  ;;  %11199 = vmatpush3.msra.mxu0 %v13213_v5  ;;  %v501_v22 = vand.u32 4294901760, %v13225_v15  ;;  %v508_v23 = vand.u32 4294901760, %v13228_v16  ;;  %v13250_v28 = vand.u32 4294901760, %v398_v19  ;;  %v389_v50 = vld [vmem:[%s328_s17] sm:$0xff]  ;;  %v393_v54 = vld [vmem:[#allocation7 + $0x10] sm:$0xff]  ;;  %s12918_s16 = smov 112  }
  0x9a   : > { %v515_v24 = vand.u32 4294901760, %v13233_v18  ;;  %11200 = vmatprep.subr.mxu0 %v12913_v0  ;;  %v522_v27 = vand.u32 4294901760, %v13237_v20  ;;  %v13254_v30 = vsub.f32 %v401_v9, %v13221_v12  ;;  %v13267_v34 = vsub.f32 %v400_v13, %v13230_v17  ;;  %v392_v60 = vld [vmem:[#allocation7 + $0x8] sm:$0xff]  ;;  %v391_v7 = vld [vmem:[#allocation7] sm:$0xff]  ;;  %s12919_s28 = smov 108   ;;  %s12920_s18 = smov 104  }
  0x9b   : > { %v529_v29 = vand.u32 4294901760, %v13240_v21  ;;  %11201 = vmatpush3.msra.mxu0 %v13215_v6  ;;  %v502_v31 = vsub.f32 %v13225_v15, %v501_v22  ;;  %v509_v32 = vsub.f32 %v13228_v16, %v508_v23  ;;  %v13270_v35 = vand.u32 4294901760, %v397_v26  ;;  %s12921_s20 = smov 100   ;;  %s12922_s2 = smov 4  }
  0x9c   : > { %v516_v33 = vsub.f32 %v13233_v18, %v515_v24  ;;  %11202 = vmatprep.subr.mxu0 %v12913_v0  ;;  %v523_v39 = vsub.f32 %v13237_v20, %v522_v27  ;;  %v536_v40 = vand.u32 4294901760, %v13254_v30  ;;  %v13282_v43 = vsub.f32 %v399_v14, %v13246_v25  ;;  %s12923_s23 = smov 8   ;;  %s12924_s10 = smov 12  }
  0x9d   : > { %11203 = vmatpush3.msra.mxu0 %v13217_v10  ;;  %v503_v37 = vand.u32 4294901760, %v502_v31  ;;  %v510_v38 = vand.u32 4294901760, %v509_v32  ;;  %v530_v42 = vsub.f32 %v13240_v21, %v529_v29  ;;  %v13285_v45 = vand.u32 4294901760, %v396_v36  ;;  %s12925_s13 = smov 20   ;;  %s12926_s12 = smov 24  }
  0x9e   : > { %11204 = vmatprep.subr.mxu0 %v12913_v0  ;;  %v517_v44 = vand.u32 4294901760, %v516_v33  ;;  %v543_v46 = vand.u32 4294901760, %v13267_v34  ;;  %v13289_v47 = vsub.f32 %v398_v19, %v13250_v28  ;;  %v13293_v48 = vand.u32 4294901760, %v395_v41  ;;  %s12927_s8 = smov 16   ;;  %s12928_s11 = smov 28  }
  0x9f   : > { %11205 = vmatpush3.msra.mxu0 %v13219_v11  ;;  %11232 = vmatpush3.msra.mxu1 %v503_v37  ;;  %v524_v51 = vand.u32 4294901760, %v523_v39  ;;  %v537_v52 = vsub.f32 %v13254_v30, %v536_v40  ;;  %v550_v53 = vand.u32 4294901760, %v13282_v43  ;;  %v13303_v55 = vsub.f32 %v397_v26, %v13270_v35  ;;  %p15195_p9 = scmp.ne.s32.totalorder %s15180_s21, 0 }
  0xa0   : > { %11206 = vmatprep.subr.mxu0 %v12913_v0  ;;  %11233 = vmatprep.subr.mxu1 %v12913_v0  ;;  %v531_v56 = vand.u32 4294901760, %v530_v42  ;;  %v557_v57 = vand.u32 4294901760, %v13289_v47  ;;  %v544_v58 = vsub.f32 %v13267_v34, %v543_v46  ;;  %v13312_v59 = vand.u32 4294901760, %v394_v49 }
  0xa1   : > { %11207 = vmatpush3.msra.mxu0 %v13221_v12  ;;  %11234 = vmatpush3.msra.mxu1 %v510_v38  ;;  %v13315_v61 = vsub.f32 %v396_v36, %v13285_v45  ;;  %v13317_v62 = vand.u32 4294901760, %v389_v50  ;;  %v13321_v63 = vand.u32 4294901760, %v393_v54  ;;  %v538_v1 = vand.u32 4294901760, %v537_v52 }
  0xa2   : > { %11208 = vmatprep.subr.mxu0 %v12913_v0  ;;  %11235 = vmatprep.subr.mxu1 %v12913_v0  ;;  %v551_v2 = vsub.f32 %v13282_v43, %v550_v53  ;;  %v564_v3 = vand.u32 4294901760, %v13303_v55  ;;  %v13329_v8 = vsub.f32 %v395_v41, %v13293_v48  ;;  %v558_v9 = vsub.f32 %v13289_v47, %v557_v57 }
  0xa3   : > { %11209 = vmatpush3.msra.mxu0 %v13230_v17  ;;  %11236 = vmatpush3.msra.mxu1 %v517_v44  ;;  %v13336_v13 = vand.u32 4294901760, %v392_v60  ;;  %v545_v14 = vand.u32 4294901760, %v544_v58  ;;  %v571_v19 = vand.u32 4294901760, %v13315_v61  ;;  %v13341_v26 = vsub.f32 %v389_v50, %v13317_v62 }
  0xa4   : > { %11210 = vmatprep.subr.mxu0 %v12913_v0  ;;  %11237 = vmatprep.subr.mxu1 %v12913_v0  ;;  %v13344_v31 = vsub.f32 %v394_v49, %v13312_v59  ;;  %v13348_v32 = vand.u32 4294901760, %v391_v7  ;;  %v552_v33 = vand.u32 4294901760, %v551_v2  ;;  %v565_v36 = vsub.f32 %v13303_v55, %v564_v3 }
  0xa5   : > { %11211 = vmatpush3.msra.mxu0 %v13246_v25  ;;  %11238 = vmatpush3.msra.mxu1 %v524_v51  ;;  %v578_v37 = vand.u32 4294901760, %v13329_v8  ;;  %v13356_v38 = vsub.f32 %v393_v54, %v13321_v63  ;;  %v559_v39 = vand.u32 4294901760, %v558_v9  ;;  %v572_v41 = vsub.f32 %v13315_v61, %v571_v19 }
  0xa6   : > { %11212 = vmatprep.subr.mxu0 %v12913_v0  ;;  %11239 = vmatprep.subr.mxu1 %v12913_v0  ;;  %v490_v42 = vand.u32 4294901760, %v13341_v26  ;;  %v585_v44 = vand.u32 4294901760, %v13344_v31  ;;  %v13367_v49 = vsub.f32 %v392_v60, %v13336_v13  ;;  %v566_v50 = vand.u32 4294901760, %v565_v36 }
  0xa7   : > { %11213 = vmatpush3.msra.mxu0 %v13250_v28  ;;  %11240 = vmatpush3.msra.mxu1 %v531_v56  ;;  %v579_v51 = vsub.f32 %v13329_v8, %v578_v37  ;;  %v592_v52 = vand.u32 4294901760, %v13356_v38  ;;  %v13377_v54 = vsub.f32 %v391_v7, %v13348_v32  ;;  %v573_v56 = vand.u32 4294901760, %v572_v41 }
  0xa8   : > { %11214 = vmatprep.subr.mxu0 %v12913_v0  ;;  %11241 = vmatprep.subr.mxu1 %v12913_v0  ;;  %v491_v58 = vsub.f32 %v13341_v26, %v490_v42  ;;  %v586_v60 = vsub.f32 %v13344_v31, %v585_v44  ;;  %vm9734_vm3 = vcmask 97280   ;;  %vm9736_vm4 = vcmask 130048  }
  0xa9   : > { %11215 = vmatpush3.msra.mxu0 %v13270_v35  ;;  %11242 = vmatpush3.msra.mxu1 %v538_v1  ;;  %v599_v1 = vand.u32 4294901760, %v13367_v49  ;;  %v580_v2 = vand.u32 4294901760, %v579_v51  ;;  %v593_v7 = vsub.f32 %v13356_v38, %v592_v52  ;;  %v606_v9 = vand.u32 4294901760, %v13377_v54 }
  0xaa   : > { %11216 = vmatprep.subr.mxu0 %v12913_v0  ;;  %11243 = vmatprep.subr.mxu1 %v12913_v0  ;;  %vm9738_vm5 = vcmask 162816   ;;  %vm9740_vm6 = vcmask 195584   ;;  %vm9742_vm7 = vcmask 228352   ;;  %vm9744_vm8 = vcmask 261120  }
  0xab   : > { %11217 = vmatpush3.msra.mxu0 %v13285_v45  ;;  %11244 = vmatpush3.msra.mxu1 %v545_v14  ;;  %v492_v14 = vand.u32 4294901760, %v491_v58  ;;  %v600_v36 = vsub.f32 %v13367_v49, %v599_v1  ;;  %v607_v41 = vsub.f32 %v13377_v54, %v606_v9 }
  0xac   : > { %11218 = vmatprep.subr.mxu0 %v12913_v0  ;;  %11245 = vmatprep.subr.mxu1 %v12913_v0 }
  0xad   : > { %11219 = vmatpush3.msra.mxu0 %v13293_v48  ;;  %11246 = vmatpush3.msra.mxu1 %v552_v33  ;;  %v587_v33 = vand.u32 4294901760, %v586_v60  ;;  %v608_v51 = vand.u32 4294901760, %v607_v41 }
  0xae   : > { %11220 = vmatprep.subr.mxu0 %v12913_v0  ;;  %11247 = vmatprep.subr.mxu1 %v12913_v0 }
  0xaf   : > { %11221 = vmatpush3.msra.mxu0 %v13312_v59  ;;  %11248 = vmatpush3.msra.mxu1 %v559_v39  ;;  %v594_v39 = vand.u32 4294901760, %v593_v7 }
  0xb0   : > { %11222 = vmatprep.subr.mxu0 %v12913_v0  ;;  %11249 = vmatprep.subr.mxu1 %v12913_v0 }
  0xb1   : > { %11223 = vmatpush3.msra.mxu0 %v13321_v63  ;;  %11250 = vmatpush3.msra.mxu1 %v566_v50  ;;  %v601_v50 = vand.u32 4294901760, %v600_v36  ;;  %v1050_v36 = vld [vmem:[#allocation8 + $0x10] sm:$0xff] }
  0xb2   : > { %11224 = vmatprep.subr.mxu0 %v12913_v0  ;;  %11251 = vmatprep.subr.mxu1 %v12913_v0 }
  0xb3   : > { %11225 = vmatpush3.msra.mxu0 %v13336_v13  ;;  %11252 = vmatpush3.msra.mxu1 %v573_v56 }
  0xb4   : > { %11226 = vmatprep.subr.mxu0 %v12913_v0  ;;  %11253 = vmatprep.subr.mxu1 %v12913_v0 }
  0xb5   : > { %11227 = vmatpush3.msra.mxu0 %v13348_v32  ;;  %11254 = vmatpush3.msra.mxu1 %v580_v2  ;;  %v1051_v2 = vld [vmem:[#allocation8 + $0x18] sm:$0xff] }
  0xb6   : > { %11255 = vmatprep.subr.mxu1 %v12913_v0  ;;  %11266 = vmatprep.subr.mxu0 %v12913_v0  ;;  %v13680_v41 = vand.u32 4294901760, %v1051_v2 }
  0xb7   : > { %11229 = vmatmul.mubr.f32.vlgmr.msra.gmra.mxu0 %v492_v14  ;;  %11256 = vmatpush3.msra.mxu1 %v587_v33 }
  0xb8   : > { %11267 = vmatpush3.msra.mxu0 %v13225_v15  ;;  %11257 = vmatprep.subr.mxu1 %v12913_v0 }
  0xb9   : > { %11268 = vmatprep.subr.mxu0 %v12913_v0  ;;  %11258 = vmatpush3.msra.mxu1 %v594_v39 }
  0xba   : > { %11269 = vmatpush3.msra.mxu0 %v13228_v16  ;;  %11259 = vmatprep.subr.mxu1 %v12913_v0 }
  0xbb   : > { %11270 = vmatprep.subr.mxu0 %v12913_v0  ;;  %11260 = vmatpush3.msra.mxu1 %v601_v50 }
  0xbc   : > { %11271 = vmatpush3.msra.mxu0 %v13233_v18  ;;  %11261 = vmatprep.subr.mxu1 %v12913_v0 }
  0xbd   : > { %11272 = vmatprep.subr.mxu0 %v12913_v0  ;;  %11262 = vmatpush3.msra.mxu1 %v608_v51 }
  0xbe   : > { %11273 = vmatpush3.msra.mxu0 %v13237_v20  ;;  %11264 = vmatmul.mubr.f32.vlgmr.msra.gmra.mxu1 %v13317_v62 }
  0xbf   : > { %11274 = vmatprep.subr.mxu0 %v12913_v0  ;;  %11301 = vmatprep.subr.mxu1 %v12913_v0 }
  0xc0   : > { %11275 = vmatpush3.msra.mxu0 %v13240_v21  ;;  %11302 = vmatpush3.msra.mxu1 %v13211_v4 }
  0xc1   : > { %11276 = vmatprep.subr.mxu0 %v12913_v0  ;;  %11303 = vmatprep.subr.mxu1 %v12913_v0 }
  0xc2   : > { %11277 = vmatpush3.msra.mxu0 %v13254_v30  ;;  %11304 = vmatpush3.msra.mxu1 %v13213_v5 }
  0xc3   : > { %11278 = vmatprep.subr.mxu0 %v12913_v0  ;;  %11305 = vmatprep.subr.mxu1 %v12913_v0 }
  0xc4   : > { %11279 = vmatpush3.msra.mxu0 %v13267_v34  ;;  %11306 = vmatpush3.msra.mxu1 %v13215_v6  ;;  %v1056_v34 = vld [vmem:[#allocation8 + $0x40] sm:$0xff] }
  0xc5   : > { %11280 = vmatprep.subr.mxu0 %v12913_v0  ;;  %11307 = vmatprep.subr.mxu1 %v12913_v0 }
  0xc6   : > { %11281 = vmatpush3.msra.mxu0 %v13282_v43  ;;  %11308 = vmatpush3.msra.mxu1 %v13217_v10 }
  0xc7   : > { %11282 = vmatprep.subr.mxu0 %v12913_v0  ;;  %11309 = vmatprep.subr.mxu1 %v12913_v0 }
  0xc8   : > { %11283 = vmatpush3.msra.mxu0 %v13289_v47  ;;  %11310 = vmatpush3.msra.mxu1 %v13219_v11 }
  0xc9   : > { %11284 = vmatprep.subr.mxu0 %v12913_v0  ;;  %11311 = vmatprep.subr.mxu1 %v12913_v0 }
  0xca   : > { %11285 = vmatpush3.msra.mxu0 %v13303_v55  ;;  %11312 = vmatpush3.msra.mxu1 %v13221_v12 }
  0xcb   : > { %11286 = vmatprep.subr.mxu0 %v12913_v0  ;;  %11313 = vmatprep.subr.mxu1 %v12913_v0 }
  0xcc   : > { %11287 = vmatpush3.msra.mxu0 %v13315_v61  ;;  %11314 = vmatpush3.msra.mxu1 %v13230_v17 }
  0xcd   : > { %11288 = vmatprep.subr.mxu0 %v12913_v0  ;;  %11315 = vmatprep.subr.mxu1 %v12913_v0 }
  0xce   : > { %11289 = vmatpush3.msra.mxu0 %v13329_v8  ;;  %11316 = vmatpush3.msra.mxu1 %v13246_v25 }
  0xcf   : > { %11290 = vmatprep.subr.mxu0 %v12913_v0  ;;  %11317 = vmatprep.subr.mxu1 %v12913_v0 }
  0xd0   : > { %11291 = vmatpush3.msra.mxu0 %v13344_v31  ;;  %11318 = vmatpush3.msra.mxu1 %v13250_v28 }
  0xd1   : > { %11292 = vmatprep.subr.mxu0 %v12913_v0  ;;  %11319 = vmatprep.subr.mxu1 %v12913_v0 }
  0xd2   : > { %11293 = vmatpush3.msra.mxu0 %v13356_v38  ;;  %11320 = vmatpush3.msra.mxu1 %v13270_v35  ;;  %v1052_v38 = vld [vmem:[#allocation8 + $0x20] sm:$0xff] }
  0xd3   : > { %11294 = vmatprep.subr.mxu0 %v12913_v0  ;;  %11321 = vmatprep.subr.mxu1 %v12913_v0  ;;  %v13663_v60 = vand.u32 4294901760, %v1052_v38 }
  0xd4   : > { %11295 = vmatpush3.msra.mxu0 %v13367_v49  ;;  %11322 = vmatpush3.msra.mxu1 %v13285_v45 }
  0xd5   : > { %11296 = vmatprep.subr.mxu0 %v12913_v0  ;;  %11323 = vmatprep.subr.mxu1 %v12913_v0  ;;  %v13684_v51 = vsub.f32 %v1052_v38, %v13663_v60 }
  0xd6   : > { %11297 = vmatpush3.msra.mxu0 %v13377_v54  ;;  %11298 = vmatprep.mubr.msk.f32.mxu0 %vm12914_vm0, %v12913_v0  ;;  %v390_v54 = vld [vmem:[%s337_s29] sm:$0xff] }
  0xd7   : > { %11324 = vmatpush3.msra.mxu1 %v13293_v48  ;;  %11299 = vmatmul.mubr.f32.vlgmr.msra.gmra.mxu0 %v13341_v26  ;;  %v13676_v39 = vand.u32 4294901760, %v390_v54 }
  0xd8   : > { %11325 = vmatprep.subr.mxu1 %v12913_v0  ;;  %11336 = vmatprep.subr.mxu0 %v12913_v0 }
  0xd9   : > { %11326 = vmatpush3.msra.mxu1 %v13312_v59  ;;  %11337 = vmatpush3.msra.mxu0 %v501_v22  ;;  %v1058_v22 = vld [vmem:[#allocation8 + $0x50] sm:$0xff] }
  0xda   : > { %11327 = vmatprep.subr.mxu1 %v12913_v0  ;;  %11338 = vmatprep.subr.mxu0 %v12913_v0 }
  0xdb   : > { %11328 = vmatpush3.msra.mxu1 %v13321_v63  ;;  %11339 = vmatpush3.msra.mxu0 %v508_v23 }
  0xdc   : > { %11329 = vmatprep.subr.mxu1 %v12913_v0  ;;  %11340 = vmatprep.subr.mxu0 %v12913_v0 }
  0xdd   : > { %11330 = vmatpush3.msra.mxu1 %v13336_v13  ;;  %11341 = vmatpush3.msra.mxu0 %v515_v24 }
  0xde   : > { %11331 = vmatprep.subr.mxu1 %v12913_v0  ;;  %11342 = vmatprep.subr.mxu0 %v12913_v0 }
  0xdf   : > { %11332 = vmatpush3.msra.mxu1 %v13348_v32  ;;  %11333 = vmatprep.mubr.msk.f32.mxu1 %vm12914_vm0, %v12913_v0 }
  0xe0   : > { %11343 = vmatpush3.msra.mxu0 %v522_v27  ;;  %11334 = vmatmul.mubr.f32.vlgmr.msra.gmra.mxu1 %v490_v42  ;;  %v1057_v27 = vld [vmem:[#allocation8 + $0x48] sm:$0xff] }
  0xe1   : > { %11344 = vmatprep.subr.mxu0 %v12913_v0  ;;  %11371 = vmatprep.subr.mxu1 %v12913_v0 }
  0xe2   : > { %11345 = vmatpush3.msra.mxu0 %v529_v29  ;;  %11372 = vmatpush3.msra.mxu1 %v13211_v4  ;;  %v1063_v4 = vld [vmem:[#allocation8 + $0x78] sm:$0xff] }
  0xe3   : > { %11346 = vmatprep.subr.mxu0 %v12913_v0  ;;  %11373 = vmatprep.subr.mxu1 %v12913_v0 }
  0xe4   : > { %11347 = vmatpush3.msra.mxu0 %v536_v40  ;;  %11374 = vmatpush3.msra.mxu1 %v13213_v5  ;;  %v1062_v5 = vld [vmem:[#allocation8 + $0x70] sm:$0xff]  ;;  %v13597_v40 = vand.u32 4294901760, %v1057_v27 }
  0xe5   : > { %11348 = vmatprep.subr.mxu0 %v12913_v0  ;;  %11375 = vmatprep.subr.mxu1 %v12913_v0 }
  0xe6   : > { %11349 = vmatpush3.msra.mxu0 %v543_v46  ;;  %11376 = vmatpush3.msra.mxu1 %v13215_v6  ;;  %v13536_v6 = vand.u32 4294901760, %v1063_v4  ;;  %v1055_v46 = vld [vmem:[#allocation8 + $0x38] sm:$0xff]  ;;  %v13619_v61 = vsub.f32 %v1057_v27, %v13597_v40 }
  0xe7   : > { %11350 = vmatprep.subr.mxu0 %v12913_v0  ;;  %11377 = vmatprep.subr.mxu1 %v12913_v0 }
  0xe8   : > { %11351 = vmatpush3.msra.mxu0 %v550_v53  ;;  %11378 = vmatpush3.msra.mxu1 %v13217_v10  ;;  %v1061_v10 = vld [vmem:[#allocation8 + $0x68] sm:$0xff]  ;;  %v13551_v15 = vsub.f32 %v1063_v4, %v13536_v6  ;;  %v13611_v53 = vand.u32 4294901760, %v1056_v34  ;;  %v1200_v49 = vand.u32 4294901760, %v13619_v61 }
  0xe9   : > { %11352 = vmatprep.subr.mxu0 %v12913_v0  ;;  %11379 = vmatprep.subr.mxu1 %v12913_v0  ;;  %v13553_v16 = vand.u32 4294901760, %v1061_v10 }
  0xea   : > { %11353 = vmatpush3.msra.mxu0 %v557_v57  ;;  %11380 = vmatpush3.msra.mxu1 %v13219_v11  ;;  %v13543_v11 = vand.u32 4294901760, %v1062_v5  ;;  %v1158_v24 = vand.u32 4294901760, %v13551_v15  ;;  %v1054_v57 = vld [vmem:[#allocation8 + $0x30] sm:$0xff]  ;;  %v13635_v26 = vsub.f32 %v1056_v34, %v13611_v53  ;;  %v1201_v14 = vsub.f32 %v13619_v61, %v1200_v49  ;;  %v1048_v34 = vld [vmem:[#allocation8] sm:$0xff] }
  0xeb   : > { %11354 = vmatprep.subr.mxu0 %v12913_v0  ;;  %11381 = vmatprep.subr.mxu1 %v12913_v0  ;;  %v13574_v23 = vsub.f32 %v1061_v10, %v13553_v16  ;;  %v13637_v31 = vand.u32 4294901760, %v1054_v57  ;;  %v1049_v10 = vld [vmem:[#allocation8 + $0x8] sm:$0xff] }
  0xec   : > { %11355 = vmatpush3.msra.mxu0 %v564_v3  ;;  %11382 = vmatpush3.msra.mxu1 %v13221_v12  ;;  %v1060_v12 = vld [vmem:[#allocation8 + $0x60] sm:$0xff]  ;;  %v13563_v20 = vsub.f32 %v1062_v5, %v13543_v11  ;;  %v13624_v3 = vand.u32 4294901760, %v1055_v46 }
  0xed   : > { %11356 = vmatprep.subr.mxu0 %v12913_v0  ;;  %11383 = vmatprep.subr.mxu1 %v12913_v0  ;;  %v13557_v18 = vand.u32 4294901760, %v1060_v12  ;;  %v1172_v43 = vand.u32 4294901760, %v13574_v23  ;;  %v13658_v56 = vsub.f32 %v1054_v57, %v13637_v31 }
  0xee   : > { %11357 = vmatpush3.msra.mxu0 %v571_v19  ;;  %11384 = vmatpush3.msra.mxu1 %v13230_v17  ;;  %v1059_v17 = vld [vmem:[#allocation8 + $0x58] sm:$0xff]  ;;  %v1165_v29 = vand.u32 4294901760, %v13563_v20  ;;  %v13647_v42 = vsub.f32 %v1055_v46, %v13624_v3  ;;  %v13705_v46 = vsub.f32 %v1051_v2, %v13680_v41 }
  0xef   : > { %11358 = vmatprep.subr.mxu0 %v12913_v0  ;;  %11385 = vmatprep.subr.mxu1 %v12913_v0  ;;  %v13567_v21 = vand.u32 4294901760, %v1059_v17  ;;  %v1221_v5 = vand.u32 4294901760, %v13658_v56 }
  0xf0   : > { %11359 = vmatpush3.msra.mxu0 %v578_v37  ;;  %11386 = vmatpush3.msra.mxu1 %v13246_v25  ;;  %v13580_v25 = vsub.f32 %v1060_v12, %v13557_v18  ;;  %v1214_v33 = vand.u32 4294901760, %v13647_v42  ;;  %v13692_v12 = vand.u32 4294901760, %v1050_v36 }
  0xf1   : > { %11360 = vmatprep.subr.mxu0 %v12913_v0  ;;  %11387 = vmatprep.subr.mxu1 %v12913_v0  ;;  %v13590_v30 = vsub.f32 %v1059_v17, %v13567_v21  ;;  %v1202_v17 = vand.u32 4294901760, %v1201_v14 }
  0xf2   : > { %11361 = vmatpush3.msra.mxu0 %v585_v44  ;;  %11388 = vmatpush3.msra.mxu1 %v13250_v28  ;;  %v13584_v28 = vand.u32 4294901760, %v1058_v22 }
  0xf3   : > { %11362 = vmatprep.subr.mxu0 %v12913_v0  ;;  %11389 = vmatprep.subr.mxu1 %v12913_v0  ;;  %v1186_v55 = vand.u32 4294901760, %v13590_v30 }
  0xf4   : > { %11363 = vmatpush3.msra.mxu0 %v592_v52  ;;  %11390 = vmatpush3.msra.mxu1 %v13270_v35  ;;  %v1159_v35 = vsub.f32 %v13551_v15, %v1158_v24  ;;  %v13606_v47 = vsub.f32 %v1058_v22, %v13584_v28  ;;  %v1215_v22 = vsub.f32 %v13647_v42, %v1214_v33 }
  0xf5   : > { %11364 = vmatprep.subr.mxu0 %v12913_v0  ;;  %11391 = vmatprep.subr.mxu1 %v12913_v0  ;;  %v1187_v37 = vsub.f32 %v13590_v30, %v1186_v55 }
  0xf6   : > { %11365 = vmatpush3.msra.mxu0 %v599_v1  ;;  %11392 = vmatpush3.msra.mxu1 %v13285_v45  ;;  %v1179_v45 = vand.u32 4294901760, %v13580_v25  ;;  %v1207_v1 = vand.u32 4294901760, %v13635_v26 }
  0xf7   : > { %11366 = vmatprep.subr.mxu0 %v12913_v0  ;;  %11393 = vmatprep.subr.mxu1 %v12913_v0  ;;  %v1188_v7 = vand.u32 4294901760, %v1187_v37 }
  0xf8   : > { %11367 = vmatpush3.msra.mxu0 %v606_v9  ;;  %11368 = vmatprep.mubr.msk.f32.mxu0 %vm12914_vm0, %v12913_v0  ;;  %v1180_v8 = vsub.f32 %v13580_v25, %v1179_v45  ;;  %v1208_v4 = vsub.f32 %v13635_v26, %v1207_v1 }
  0xf9   : > { %11394 = vmatpush3.msra.mxu1 %v13293_v48  ;;  %11369 = vmatmul.mubr.f32.vlgmr.msra.gmra.mxu0 %v13317_v62  ;;  %v1166_v48 = vsub.f32 %v13563_v20, %v1165_v29 }
  0xfa   : > { %11395 = vmatprep.subr.mxu1 %v12913_v0  ;;  %11406 = vmatprep.subr.mxu0 %v12913_v0  ;;  %v1181_v52 = vand.u32 4294901760, %v1180_v8  ;;  %v1209_v57 = vand.u32 4294901760, %v1208_v4  ;;  %v13717_v8 = vsub.f32 %v1050_v36, %v13692_v12 }
  0xfb   : > { %11396 = vmatpush3.msra.mxu1 %v13312_v59  ;;  %11407 = vmatpush3.msra.mxu0 %v13536_v6  ;;  %v1160_v59 = vand.u32 4294901760, %v1159_v35  ;;  %v1167_v19 = vand.u32 4294901760, %v1166_v48  ;;  %v13700_v35 = vsub.f32 %v390_v54, %v13676_v39  ;;  %v13707_v48 = vand.u32 4294901760, %v1049_v10 }
  0xfc   : > { %11397 = vmatprep.subr.mxu1 %v12913_v0  ;;  %11408 = vmatprep.subr.mxu0 %v12913_v0 }
  0xfd   : > { %11398 = vmatpush3.msra.mxu1 %v13321_v63  ;;  %11409 = vmatpush3.msra.mxu0 %v13543_v11  ;;  %v1173_v63 = vsub.f32 %v13574_v23, %v1172_v43  ;;  %v13726_v38 = vand.u32 4294901760, %v13700_v35 }
  0xfe   : > { %11399 = vmatprep.subr.mxu1 %v12913_v0  ;;  %11410 = vmatprep.subr.mxu0 %v12913_v0 }
  0xff   : > { %11400 = vmatpush3.msra.mxu1 %v13336_v13  ;;  %11411 = vmatpush3.msra.mxu0 %v13553_v16  ;;  %v1053_v13 = vld [vmem:[#allocation8 + $0x28] sm:$0xff]  ;;  %v1148_v36 = vsub.f32 %v13700_v35, %v13726_v38 }
 0x100   : > { %11401 = vmatprep.subr.mxu1 %v12913_v0  ;;  %11412 = vmatprep.subr.mxu0 %v12913_v0  ;;  %v13649_v44 = vand.u32 4294901760, %v1053_v13 }
 0x101   : > { %11402 = vmatpush3.msra.mxu1 %v13348_v32  ;;  %11403 = vmatprep.mubr.msk.f32.mxu1 %vm12914_vm0, %v12913_v0  ;;  %v1193_v32 = vand.u32 4294901760, %v13606_v47 }
 0x102   : > { %11413 = vmatpush3.msra.mxu0 %v13557_v18  ;;  %11404 = vmatmul.mubr.f32.vlgmr.msra.gmra.mxu1 %v13317_v62  ;;  %v1174_v62 = vand.u32 4294901760, %v1173_v63  ;;  %v13670_v9 = vsub.f32 %v1053_v13, %v13649_v44  ;;  %v1235_v63 = vand.u32 4294901760, %v13684_v51  ;;  %v13719_v13 = vand.u32 4294901760, %v1048_v34 }
 0x103   : > { %11414 = vmatprep.subr.mxu0 %v12913_v0  ;;  %11441 = vmatprep.subr.mxu1 %v12913_v0  ;;  %v1194_v58 = vsub.f32 %v13606_v47, %v1193_v32 }
 0x104   : > { %11415 = vmatpush3.msra.mxu0 %v13567_v21  ;;  %11442 = vmatpush3.msra.mxu1 %v1160_v59  ;;  %v1228_v27 = vand.u32 4294901760, %v13670_v9  ;;  %v1222_v59 = vsub.f32 %v13658_v56, %v1221_v5  ;;  %v13741_v2 = vsub.f32 %v1048_v34, %v13719_v13  ;;  %v13761_v34 = vand.u32 4294901760, %v1148_v36 }
 0x105   : > { %11416 = vmatprep.subr.mxu0 %v12913_v0  ;;  %11443 = vmatprep.subr.mxu1 %v12913_v0  ;;  %v1195_v50 = vand.u32 4294901760, %v1194_v58  ;;  %v1236_v58 = vsub.f32 %v13684_v51, %v1235_v63 }
 0x106   : > { %11417 = vmatpush3.msra.mxu0 %v13584_v28  ;;  %11444 = vmatpush3.msra.mxu1 %v1167_v19  ;;  %v1216_v19 = vand.u32 4294901760, %v1215_v22  ;;  %v1229_v37 = vsub.f32 %v13670_v9, %v1228_v27  ;;  %v1223_v54 = vand.u32 4294901760, %v1222_v59  ;;  %v1263_v22 = vand.u32 4294901760, %v13741_v2 }
 0x107   : > { %11418 = vmatprep.subr.mxu0 %v12913_v0  ;;  %11445 = vmatprep.subr.mxu1 %v12913_v0 }
 0x108   : > { %11419 = vmatpush3.msra.mxu0 %v13597_v40  ;;  %11446 = vmatpush3.msra.mxu1 %v1174_v62  ;;  %v13731_v62 = vsub.f32 %v1049_v10, %v13707_v48  ;;  %v1230_v14 = vand.u32 4294901760, %v1229_v37  ;;  %v1237_v10 = vand.u32 4294901760, %v1236_v58  ;;  %v1264_v37 = vsub.f32 %v13741_v2, %v1263_v22 }
 0x109   : > { %11420 = vmatprep.subr.mxu0 %v12913_v0  ;;  %11447 = vmatprep.subr.mxu1 %v12913_v0 }
 0x10a   : > { %11421 = vmatpush3.msra.mxu0 %v13611_v53  ;;  %11448 = vmatpush3.msra.mxu1 %v1181_v52  ;;  %v1242_v52 = vand.u32 4294901760, %v13705_v46  ;;  %v1256_v4 = vand.u32 4294901760, %v13731_v62  ;;  %v1265_v58 = vand.u32 4294901760, %v1264_v37 }
 0x10b   : > { %11422 = vmatprep.subr.mxu0 %v12913_v0  ;;  %11449 = vmatprep.subr.mxu1 %v12913_v0 }
 0x10c   : > { %11423 = vmatpush3.msra.mxu0 %v13624_v3  ;;  %11450 = vmatpush3.msra.mxu1 %v1188_v7  ;;  %v1249_v7 = vand.u32 4294901760, %v13717_v8  ;;  %v1257_v59 = vsub.f32 %v13731_v62, %v1256_v4 }
 0x10d   : > { %11424 = vmatprep.subr.mxu0 %v12913_v0  ;;  %11451 = vmatprep.subr.mxu1 %v12913_v0 }
 0x10e   : > { %11425 = vmatpush3.msra.mxu0 %v13637_v31  ;;  %11452 = vmatpush3.msra.mxu1 %v1195_v50  ;;  %v1243_v50 = vsub.f32 %v13705_v46, %v1242_v52 }
 0x10f   : > { %11426 = vmatprep.subr.mxu0 %v12913_v0  ;;  %11453 = vmatprep.subr.mxu1 %v12913_v0 }
 0x110   : > { %11427 = vmatpush3.msra.mxu0 %v13649_v44  ;;  %11454 = vmatpush3.msra.mxu1 %v1202_v17  ;;  %v1250_v17 = vsub.f32 %v13717_v8, %v1249_v7 }
 0x111   : > { %11428 = vmatprep.subr.mxu0 %v12913_v0  ;;  %11455 = vmatprep.subr.mxu1 %v12913_v0 }
 0x112   : > { %11429 = vmatpush3.msra.mxu0 %v13663_v60  ;;  %11456 = vmatpush3.msra.mxu1 %v1209_v57  ;;  %v1244_v57 = vand.u32 4294901760, %v1243_v50  ;;  %v1708_v50 = vld [vmem:[#allocation10 + $0x18] sm:$0xff] }
 0x113   : > { %11430 = vmatprep.subr.mxu0 %v12913_v0  ;;  %11457 = vmatprep.subr.mxu1 %v12913_v0 }
 0x114   : > { %11431 = vmatpush3.msra.mxu0 %v13680_v41  ;;  %11458 = vmatpush3.msra.mxu1 %v1216_v19  ;;  %v1251_v19 = vand.u32 4294901760, %v1250_v17 }
 0x115   : > { %11432 = vmatprep.subr.mxu0 %v12913_v0  ;;  %11459 = vmatprep.subr.mxu1 %v12913_v0 }
 0x116   : > { %11433 = vmatpush3.msra.mxu0 %v13692_v12  ;;  %11460 = vmatpush3.msra.mxu1 %v1223_v54  ;;  %v1258_v54 = vand.u32 4294901760, %v1257_v59  ;;  %v1707_v59 = vld [vmem:[#allocation10 + $0x10] sm:$0xff] }
 0x117   : > { %11434 = vmatprep.subr.mxu0 %v12913_v0  ;;  %11461 = vmatprep.subr.mxu1 %v12913_v0 }
 0x118   : > { %11435 = vmatpush3.msra.mxu0 %v13707_v48  ;;  %11462 = vmatpush3.msra.mxu1 %v1230_v14 }
 0x119   : > { %11436 = vmatprep.subr.mxu0 %v12913_v0  ;;  %11463 = vmatprep.subr.mxu1 %v12913_v0 }
 0x11a   : > { %11437 = vmatpush3.msra.mxu0 %v13719_v13  ;;  %11464 = vmatpush3.msra.mxu1 %v1237_v10 }
 0x11b   : > { %11438 = vmatprep.mubr.msk.f32.mxu0 %vm12914_vm0, %v12913_v0  ;;  %11465 = vmatprep.subr.mxu1 %v12913_v0 }
 0x11c   : > { %11476 = vmatprep.subr.mxu0 %v12913_v0  ;;  %11439 = vmatmul.mubr.f32.vlgmr.msra.gmra.mxu0 %v13761_v34 }
 0x11d   : > { %11466 = vmatpush3.msra.mxu1 %v1244_v57  ;;  %11477 = vmatpush3.msra.mxu0 %v13551_v15 }
 0x11e   : > { %11467 = vmatprep.subr.mxu1 %v12913_v0  ;;  %11478 = vmatprep.subr.mxu0 %v12913_v0 }
 0x11f   : > { %11468 = vmatpush3.msra.mxu1 %v1251_v19  ;;  %11479 = vmatpush3.msra.mxu0 %v13563_v20  ;;  %v1717_v20 = vld [vmem:[#allocation10 + $0x60] sm:$0xff] }
 0x120   : > { %11469 = vmatprep.subr.mxu1 %v12913_v0  ;;  %11480 = vmatprep.subr.mxu0 %v12913_v0 }
 0x121   : > { %11470 = vmatpush3.msra.mxu1 %v1258_v54  ;;  %11481 = vmatpush3.msra.mxu0 %v13574_v23 }
 0x122   : > { %11471 = vmatprep.subr.mxu1 %v12913_v0  ;;  %11482 = vmatprep.subr.mxu0 %v12913_v0 }
 0x123   : > { %11472 = vmatpush3.msra.mxu1 %v1265_v58  ;;  %11473 = vmatprep.mubr.msk.f32.mxu1 %vm12914_vm0, %v12913_v0  ;;  %v14040_v58 = vand.u32 4294901760, %v1708_v50 }
 0x124   : > { %11483 = vmatpush3.msra.mxu0 %v13580_v25  ;;  %11474 = vmatmul.mubr.f32.vlgmr.msra.gmra.mxu1 %v13676_v39 }
 0x125   : > { %11484 = vmatprep.subr.mxu0 %v12913_v0  ;;  %11511 = vmatprep.subr.mxu1 %v12913_v0 }
 0x126   : > { %11485 = vmatpush3.msra.mxu0 %v13590_v30  ;;  %11512 = vmatpush3.msra.mxu1 %v13536_v6 }
 0x127   : > { %11486 = vmatprep.subr.mxu0 %v12913_v0  ;;  %11513 = vmatprep.subr.mxu1 %v12913_v0 }
 0x128   : > { %11487 = vmatpush3.msra.mxu0 %v13606_v47  ;;  %11514 = vmatpush3.msra.mxu1 %v13543_v11 }
 0x129   : > { %11488 = vmatprep.subr.mxu0 %v12913_v0  ;;  %11515 = vmatprep.subr.mxu1 %v12913_v0 }
 0x12a   : > { %11489 = vmatpush3.msra.mxu0 %v13619_v61  ;;  %11516 = vmatpush3.msra.mxu1 %v13553_v16  ;;  %v1713_v61 = vld [vmem:[#allocation10 + $0x40] sm:$0xff] }
 0x12b   : > { %11490 = vmatprep.subr.mxu0 %v12913_v0  ;;  %11517 = vmatprep.subr.mxu1 %v12913_v0 }
 0x12c   : > { %11491 = vmatpush3.msra.mxu0 %v13635_v26  ;;  %11518 = vmatpush3.msra.mxu1 %v13557_v18 }
 0x12d   : > { %11492 = vmatprep.subr.mxu0 %v12913_v0  ;;  %11519 = vmatprep.subr.mxu1 %v12913_v0 }
 0x12e   : > { %11493 = vmatpush3.msra.mxu0 %v13647_v42  ;;  %11520 = vmatpush3.msra.mxu1 %v13567_v21  ;;  %v13969_v42 = vand.u32 4294901760, %v1713_v61 }
 0x12f   : > { %11494 = vmatprep.subr.mxu0 %v12913_v0  ;;  %11521 = vmatprep.subr.mxu1 %v12913_v0 }
 0x130   : > { %11495 = vmatpush3.msra.mxu0 %v13658_v56  ;;  %11522 = vmatpush3.msra.mxu1 %v13584_v28 }
 0x131   : > { %11496 = vmatprep.subr.mxu0 %v12913_v0  ;;  %11523 = vmatprep.subr.mxu1 %v12913_v0 }
 0x132   : > { %11497 = vmatpush3.msra.mxu0 %v13670_v9  ;;  %11524 = vmatpush3.msra.mxu1 %v13597_v40  ;;  %v1711_v9 = vld [vmem:[#allocation10 + $0x30] sm:$0xff] }
 0x133   : > { %11498 = vmatprep.subr.mxu0 %v12913_v0  ;;  %11525 = vmatprep.subr.mxu1 %v12913_v0 }
 0x134   : > { %11499 = vmatpush3.msra.mxu0 %v13684_v51  ;;  %11526 = vmatpush3.msra.mxu1 %v13611_v53 }
 0x135   : > { %11500 = vmatprep.subr.mxu0 %v12913_v0  ;;  %11527 = vmatprep.subr.mxu1 %v12913_v0 }
 0x136   : > { %11501 = vmatpush3.msra.mxu0 %v13705_v46  ;;  %11528 = vmatpush3.msra.mxu1 %v13624_v3 }
 0x137   : > { %11502 = vmatprep.subr.mxu0 %v12913_v0  ;;  %11529 = vmatprep.subr.mxu1 %v12913_v0 }
 0x138   : > { %11503 = vmatpush3.msra.mxu0 %v13717_v8  ;;  %11530 = vmatpush3.msra.mxu1 %v13637_v31  ;;  %v14004_v8 = vand.u32 4294901760, %v1711_v9 }
 0x139   : > { %11504 = vmatprep.subr.mxu0 %v12913_v0  ;;  %11531 = vmatprep.subr.mxu1 %v12913_v0 }
 0x13a   : > { %11505 = vmatpush3.msra.mxu0 %v13731_v62  ;;  %11532 = vmatpush3.msra.mxu1 %v13649_v44  ;;  %v14026_v17 = vsub.f32 %v1711_v9, %v14004_v8 }
 0x13b   : > { %11506 = vmatprep.subr.mxu0 %v12913_v0  ;;  %11533 = vmatprep.subr.mxu1 %v12913_v0 }
 0x13c   : > { %11507 = vmatpush3.msra.mxu0 %v13741_v2  ;;  %11508 = vmatprep.mubr.msk.f32.mxu0 %vm12914_vm0, %v12913_v0 }
 0x13d   : > { %11534 = vmatpush3.msra.mxu1 %v13663_v60  ;;  %11509 = vmatmul.mubr.f32.vlgmr.msra.gmra.mxu0 %v13700_v35 }
 0x13e   : > { %11535 = vmatprep.subr.mxu1 %v12913_v0  ;;  %11546 = vmatprep.subr.mxu0 %v12913_v0 }
 0x13f   : > { %11536 = vmatpush3.msra.mxu1 %v13680_v41  ;;  %11547 = vmatpush3.msra.mxu0 %v1158_v24  ;;  %v1716_v24 = vld [vmem:[#allocation10 + $0x58] sm:$0xff] }
 0x140   : > { %11537 = vmatprep.subr.mxu1 %v12913_v0  ;;  %11548 = vmatprep.subr.mxu0 %v12913_v0 }
 0x141   : > { %11538 = vmatpush3.msra.mxu1 %v13692_v12  ;;  %11549 = vmatpush3.msra.mxu0 %v1165_v29  ;;  %v1715_v29 = vld [vmem:[#allocation10 + $0x50] sm:$0xff] }
 0x142   : > { %11539 = vmatprep.subr.mxu1 %v12913_v0  ;;  %11550 = vmatprep.subr.mxu0 %v12913_v0 }
 0x143   : > { %11540 = vmatpush3.msra.mxu1 %v13707_v48  ;;  %11551 = vmatpush3.msra.mxu0 %v1172_v43  ;;  %v13939_v43 = vand.u32 4294901760, %v1716_v24 }
 0x144   : > { %11541 = vmatprep.subr.mxu1 %v12913_v0  ;;  %11552 = vmatprep.subr.mxu0 %v12913_v0 }
 0x145   : > { %11542 = vmatpush3.msra.mxu1 %v13719_v13  ;;  %11543 = vmatprep.mubr.msk.f32.mxu1 %vm12914_vm0, %v12913_v0 }
 0x146   : > { %11553 = vmatpush3.msra.mxu0 %v1179_v45  ;;  %11544 = vmatmul.mubr.f32.vlgmr.msra.gmra.mxu1 %v13726_v38  ;;  %v1714_v45 = vld [vmem:[#allocation10 + $0x48] sm:$0xff] }
 0x147   : > { %11554 = vmatprep.subr.mxu0 %v12913_v0  ;;  %11581 = vmatprep.subr.mxu1 %v12913_v0 }
 0x148   : > { %11555 = vmatpush3.msra.mxu0 %v1186_v55  ;;  %11582 = vmatpush3.msra.mxu1 %v13536_v6  ;;  %v1720_v6 = vld [vmem:[#allocation10 + $0x78] sm:$0xff]  ;;  %v13951_v55 = vand.u32 4294901760, %v1715_v29 }
 0x149   : > { %11556 = vmatprep.subr.mxu0 %v12913_v0  ;;  %11583 = vmatprep.subr.mxu1 %v12913_v0  ;;  %v13901_v15 = vand.u32 4294901760, %v1720_v6 }
 0x14a   : > { %11557 = vmatpush3.msra.mxu0 %v1193_v32  ;;  %11584 = vmatpush3.msra.mxu1 %v13543_v11  ;;  %v1719_v11 = vld [vmem:[#allocation10 + $0x70] sm:$0xff]  ;;  %v13965_v32 = vsub.f32 %v1716_v24, %v13939_v43 }
 0x14b   : > { %11558 = vmatprep.subr.mxu0 %v12913_v0  ;;  %11585 = vmatprep.subr.mxu1 %v12913_v0 }
 0x14c   : > { %11559 = vmatpush3.msra.mxu0 %v1200_v49  ;;  %11586 = vmatpush3.msra.mxu1 %v13553_v16  ;;  %v1718_v16 = vld [vmem:[#allocation10 + $0x68] sm:$0xff]  ;;  %v1843_v51 = vand.u32 4294901760, %v13965_v32 }
 0x14d   : > { %11560 = vmatprep.subr.mxu0 %v12913_v0  ;;  %11587 = vmatprep.subr.mxu1 %v12913_v0  ;;  %v13918_v23 = vand.u32 4294901760, %v1718_v16 }
 0x14e   : > { %11561 = vmatpush3.msra.mxu0 %v1207_v1  ;;  %11588 = vmatpush3.msra.mxu1 %v13557_v18  ;;  %v13908_v18 = vand.u32 4294901760, %v1719_v11  ;;  %v1844_v2 = vsub.f32 %v13965_v32, %v1843_v51 }
 0x14f   : > { %11562 = vmatprep.subr.mxu0 %v12913_v0  ;;  %11589 = vmatprep.subr.mxu1 %v12913_v0 }
 0x150   : > { %11563 = vmatpush3.msra.mxu0 %v1214_v33  ;;  %11590 = vmatpush3.msra.mxu1 %v13567_v21  ;;  %v13916_v21 = vsub.f32 %v1720_v6, %v13901_v15  ;;  %v13926_v25 = vsub.f32 %v1719_v11, %v13908_v18  ;;  %v1845_v19 = vand.u32 4294901760, %v1844_v2  ;;  %v1706_v11 = vld [vmem:[#allocation10 + $0x8] sm:$0xff] }
 0x151   : > { %11564 = vmatprep.subr.mxu0 %v12913_v0  ;;  %11591 = vmatprep.subr.mxu1 %v12913_v0  ;;  %v14064_v9 = vand.u32 4294901760, %v1706_v11 }
 0x152   : > { %11565 = vmatpush3.msra.mxu0 %v1221_v5  ;;  %11592 = vmatpush3.msra.mxu1 %v13584_v28  ;;  %v13928_v28 = vand.u32 4294901760, %v1717_v20  ;;  %v1815_v30 = vand.u32 4294901760, %v13916_v21  ;;  %v1822_v47 = vand.u32 4294901760, %v13926_v25 }
 0x153   : > { %11566 = vmatprep.subr.mxu0 %v12913_v0  ;;  %11593 = vmatprep.subr.mxu1 %v12913_v0 }
 0x154   : > { %11567 = vmatpush3.msra.mxu0 %v1228_v27  ;;  %11594 = vmatpush3.msra.mxu1 %v13597_v40  ;;  %v13937_v40 = vsub.f32 %v1718_v16, %v13918_v23  ;;  %v1816_v26 = vsub.f32 %v13916_v21, %v1815_v30  ;;  %v1823_v49 = vsub.f32 %v13926_v25, %v1822_v47  ;;  %v1710_v27 = vld [vmem:[#allocation10 + $0x28] sm:$0xff] }
 0x155   : > { %11568 = vmatprep.subr.mxu0 %v12913_v0  ;;  %11595 = vmatprep.subr.mxu1 %v12913_v0  ;;  %v14016_v14 = vand.u32 4294901760, %v1710_v27 }
 0x156   : > { %11569 = vmatpush3.msra.mxu0 %v1235_v63  ;;  %11596 = vmatpush3.msra.mxu1 %v13611_v53  ;;  %v13949_v53 = vsub.f32 %v1717_v20, %v13928_v28  ;;  %v1817_v33 = vand.u32 4294901760, %v1816_v26  ;;  %v1824_v46 = vand.u32 4294901760, %v1823_v49  ;;  %v1878_v20 = vand.u32 4294901760, %v14026_v17 }
 0x157   : > { %11570 = vmatprep.subr.mxu0 %v12913_v0  ;;  %11597 = vmatprep.subr.mxu1 %v12913_v0  ;;  %v14038_v54 = vsub.f32 %v1710_v27, %v14016_v14  ;;  %v14062_v49 = vsub.f32 %v1708_v50, %v14040_v58  ;;  %v14086_v50 = vsub.f32 %v1706_v11, %v14064_v9 }
 0x158   : > { %11571 = vmatpush3.msra.mxu0 %v1242_v52  ;;  %11598 = vmatpush3.msra.mxu1 %v13624_v3  ;;  %v13956_v3 = vand.u32 4294901760, %v1714_v45  ;;  %v1836_v56 = vand.u32 4294901760, %v13949_v53  ;;  %v1709_v52 = vld [vmem:[#allocation10 + $0x20] sm:$0xff] }
 0x159   : > { %11572 = vmatprep.subr.mxu0 %v12913_v0  ;;  %11599 = vmatprep.subr.mxu1 %v12913_v0  ;;  %v1899_v2 = vand.u32 4294901760, %v14062_v49 }
 0x15a   : > { %11573 = vmatpush3.msra.mxu0 %v1249_v7  ;;  %11600 = vmatpush3.msra.mxu1 %v13637_v31  ;;  %v1829_v31 = vand.u32 4294901760, %v13937_v40  ;;  %v13983_v1 = vsub.f32 %v1714_v45, %v13956_v3 }
 0x15b   : > { %11574 = vmatprep.subr.mxu0 %v12913_v0  ;;  %11601 = vmatprep.subr.mxu1 %v12913_v0 }
 0x15c   : > { %11575 = vmatpush3.msra.mxu0 %v1256_v4  ;;  %11602 = vmatpush3.msra.mxu1 %v13649_v44  ;;  %v1712_v44 = vld [vmem:[#allocation10 + $0x38] sm:$0xff]  ;;  %v1857_v62 = vand.u32 4294901760, %v13983_v1 }
 0x15d   : > { %11576 = vmatprep.subr.mxu0 %v12913_v0  ;;  %11603 = vmatprep.subr.mxu1 %v12913_v0  ;;  %v13991_v5 = vand.u32 4294901760, %v1712_v44 }
 0x15e   : > { %11577 = vmatpush3.msra.mxu0 %v1263_v22  ;;  %11578 = vmatprep.mubr.msk.f32.mxu0 %vm12914_vm0, %v12913_v0  ;;  %v14028_v22 = vand.u32 4294901760, %v1709_v52  ;;  %v1858_v57 = vsub.f32 %v13983_v1, %v1857_v62 }
 0x15f   : > { %11604 = vmatpush3.msra.mxu1 %v13663_v60  ;;  %11579 = vmatmul.mubr.f32.vlgmr.msra.gmra.mxu0 %v13676_v39  ;;  %v13978_v60 = vsub.f32 %v1715_v29, %v13951_v55  ;;  %v14014_v7 = vsub.f32 %v1712_v44, %v13991_v5  ;;  %v14052_v29 = vand.u32 4294901760, %v1707_v59  ;;  %v1885_v44 = vand.u32 4294901760, %v14038_v54 }
 0x160   : > { %11605 = vmatprep.subr.mxu1 %v12913_v0  ;;  %11613 = vmatprep.mubr.msk.f32.mxu1 %vm12914_vm0, %v12913_v0  ;;  %v14050_v24 = vsub.f32 %v1709_v52, %v14028_v22  ;;  %v1859_v45 = vand.u32 4294901760, %v1858_v57 }
 0x161   : > { %11606 = vmatpush3.msra.mxu1 %v13680_v41  ;;  %11616 = vmatprep.subr.mxu0 %v12913_v0  ;;  %v1830_v41 = vsub.f32 %v13937_v40, %v1829_v31  ;;  %v1850_v63 = vand.u32 4294901760, %v13978_v60  ;;  %v1871_v37 = vand.u32 4294901760, %v14014_v7 }
 0x162   : > { %11607 = vmatprep.subr.mxu1 %v12913_v0  ;;  %11617 = vmatpush3.msra.mxu0 %v13901_v15  ;;  %v1892_v27 = vand.u32 4294901760, %v14050_v24 }
 0x163   : > { %11608 = vmatpush3.msra.mxu1 %v13692_v12  ;;  %11618 = vmatprep.subr.mxu0 %v12913_v0  ;;  %v13996_v12 = vsub.f32 %v1713_v61, %v13969_v42  ;;  %v1851_v10 = vsub.f32 %v13978_v60, %v1850_v63  ;;  %v1705_v61 = vld [vmem:[#allocation10] sm:$0xff]  ;;  %v1872_v26 = vsub.f32 %v14014_v7, %v1871_v37 }
 0x164   : > { %11609 = vmatprep.subr.mxu1 %v12913_v0  ;;  %11619 = vmatpush3.msra.mxu0 %v13908_v18  ;;  %v1893_v57 = vsub.f32 %v14050_v24, %v1892_v27 }
 0x165   : > { %11610 = vmatpush3.msra.mxu1 %v13707_v48  ;;  %11620 = vmatprep.subr.mxu0 %v12913_v0  ;;  %v1837_v48 = vsub.f32 %v13949_v53, %v1836_v56  ;;  %v1864_v36 = vand.u32 4294901760, %v13996_v12  ;;  %v1852_v16 = vand.u32 4294901760, %v1851_v10  ;;  %v1873_v52 = vand.u32 4294901760, %v1872_v26 }
 0x166   : > { %11611 = vmatprep.subr.mxu1 %v12913_v0  ;;  %11621 = vmatpush3.msra.mxu0 %v13918_v23 }
 0x167   : > { %11612 = vmatpush3.msra.mxu1 %v13719_v13  ;;  %11622 = vmatprep.subr.mxu0 %v12913_v0  ;;  %v1831_v13 = vand.u32 4294901760, %v1830_v41  ;;  %v1838_v4 = vand.u32 4294901760, %v1837_v48  ;;  %v1865_v6 = vsub.f32 %v13996_v12, %v1864_v36  ;;  %v1879_v41 = vsub.f32 %v14026_v17, %v1878_v20 }
 0x168   : > { %11614 = vmatmul.mubr.f32.vlgmr.msra.gmra.mxu1 %v13676_v39  ;;  %11651 = vmatprep.subr.mxu1 %v12913_v0  ;;  %v14076_v48 = vand.u32 4294901760, %v1705_v61 }
 0x169   : > { %11652 = vmatpush3.msra.mxu1 %v1817_v33  ;;  %11623 = vmatpush3.msra.mxu0 %v13928_v28  ;;  %v1866_v33 = vand.u32 4294901760, %v1865_v6  ;;  %v1880_v10 = vand.u32 4294901760, %v1879_v41 }
 0x16a   : > { %11653 = vmatprep.subr.mxu1 %v12913_v0  ;;  %11624 = vmatprep.subr.mxu0 %v12913_v0 }
 0x16b   : > { %11654 = vmatpush3.msra.mxu1 %v1824_v46  ;;  %11625 = vmatpush3.msra.mxu0 %v13939_v43  ;;  %v14074_v46 = vsub.f32 %v1707_v59, %v14052_v29 }
 0x16c   : > { %11655 = vmatprep.subr.mxu1 %v12913_v0  ;;  %11626 = vmatprep.subr.mxu0 %v12913_v0 }
 0x16d   : > { %11656 = vmatpush3.msra.mxu1 %v1831_v13  ;;  %11627 = vmatpush3.msra.mxu0 %v13951_v55  ;;  %v1886_v13 = vsub.f32 %v14038_v54, %v1885_v44  ;;  %v1906_v59 = vand.u32 4294901760, %v14074_v46 }
 0x16e   : > { %11657 = vmatprep.subr.mxu1 %v12913_v0  ;;  %11628 = vmatprep.subr.mxu0 %v12913_v0 }
 0x16f   : > { %11658 = vmatpush3.msra.mxu1 %v1838_v4  ;;  %11629 = vmatpush3.msra.mxu0 %v13956_v3  ;;  %v1887_v11 = vand.u32 4294901760, %v1886_v13  ;;  %v1907_v26 = vsub.f32 %v14074_v46, %v1906_v59 }
 0x170   : > { %11659 = vmatprep.subr.mxu1 %v12913_v0  ;;  %11630 = vmatprep.subr.mxu0 %v12913_v0 }
 0x171   : > { %11660 = vmatpush3.msra.mxu1 %v1845_v19  ;;  %11631 = vmatpush3.msra.mxu0 %v13969_v42  ;;  %v14096_v19 = vsub.f32 %v1705_v61, %v14076_v48  ;;  %v1894_v61 = vand.u32 4294901760, %v1893_v57  ;;  %v1908_v57 = vand.u32 4294901760, %v1907_v26 }
 0x172   : > { %11661 = vmatprep.subr.mxu1 %v12913_v0  ;;  %11632 = vmatprep.subr.mxu0 %v12913_v0 }
 0x173   : > { %11662 = vmatpush3.msra.mxu1 %v1852_v16  ;;  %11633 = vmatpush3.msra.mxu0 %v13991_v5  ;;  %v1900_v16 = vsub.f32 %v14062_v49, %v1899_v2 }
 0x174   : > { %11663 = vmatprep.subr.mxu1 %v12913_v0  ;;  %11634 = vmatprep.subr.mxu0 %v12913_v0 }
 0x175   : > { %11664 = vmatpush3.msra.mxu1 %v1859_v45  ;;  %11635 = vmatpush3.msra.mxu0 %v14004_v8  ;;  %v1913_v45 = vand.u32 4294901760, %v14086_v50  ;;  %v1901_v41 = vand.u32 4294901760, %v1900_v16 }
 0x176   : > { %11665 = vmatprep.subr.mxu1 %v12913_v0  ;;  %11636 = vmatprep.subr.mxu0 %v12913_v0 }
 0x177   : > { %v494_v4 = vpop.f32.mrf.mxu0  ;;  %11666 = vmatpush3.msra.mxu1 %v1866_v33  ;;  %11637 = vmatpush3.msra.mxu0 %v14016_v14  ;;  %v1920_v33 = vand.u32 4294901760, %v14096_v19 }
 0x178   : > { %11667 = vmatprep.subr.mxu1 %v12913_v0  ;;  %11638 = vmatprep.subr.mxu0 %v12913_v0 }
 0x179   : > { %v11230_v6 = vpop.f32.mrf.mxu0  ;;  %11668 = vmatpush3.msra.mxu1 %v1873_v52  ;;  %11639 = vmatpush3.msra.mxu0 %v14028_v22  ;;  %v1914_v52 = vsub.f32 %v14086_v50, %v1913_v45 }
 0x17a   : > { %11669 = vmatprep.subr.mxu1 %v12913_v0  ;;  %11640 = vmatprep.subr.mxu0 %v12913_v0  ;;  %v1921_v6 = vsub.f32 %v14096_v19, %v1920_v33 }
 0x17b   : > { %11670 = vmatpush3.msra.mxu1 %v1880_v10  ;;  %11641 = vmatpush3.msra.mxu0 %v14040_v58  ;;  %v1915_v16 = vand.u32 4294901760, %v1914_v52 }
 0x17c   : > { %11671 = vmatprep.subr.mxu1 %v12913_v0  ;;  %11642 = vmatprep.subr.mxu0 %v12913_v0 }
 0x17d   : > { %11672 = vmatpush3.msra.mxu1 %v1887_v11  ;;  %11643 = vmatpush3.msra.mxu0 %v14052_v29 }
 0x17e   : > { %v645_v13 = vpop.f32.mrf.mxu1  ;;  %11673 = vmatprep.subr.mxu1 %v12913_v0  ;;  %11644 = vmatprep.subr.mxu0 %v12913_v0 }
 0x17f   : > { %v646_v10 = vadd.f32 %v645_v13, %v494_v4  ;;  %11674 = vmatpush3.msra.mxu1 %v1894_v61  ;;  %11645 = vmatpush3.msra.mxu0 %v14064_v9  ;;  %v1922_v4 = vand.u32 4294901760, %v1921_v6 }
 0x180   : > { %v11265_v11 = vpop.f32.mrf.mxu1  ;;  %11675 = vmatprep.subr.mxu1 %v12913_v0  ;;  %11646 = vmatprep.subr.mxu0 %v12913_v0 }
 0x181   : > { %11676 = vmatpush3.msra.mxu1 %v1901_v41  ;;  %11647 = vmatpush3.msra.mxu0 %v14076_v48 }
 0x182   : > { %11677 = vmatprep.subr.mxu1 %v12913_v0  ;;  %11648 = vmatprep.mubr.msk.f32.mxu0 %vm12914_vm0, %v12913_v0 }
 0x183   : > { %11678 = vmatpush3.msra.mxu1 %v1908_v57  ;;  %11686 = vmatprep.subr.mxu0 %v12913_v0 }
 0x184   : > { %11679 = vmatprep.subr.mxu1 %v12913_v0  ;;  %11649 = vmatmul.mubr.f32.vlgmr.msra.gmra.mxu0 %v13761_v34 }
 0x185   : > { %11680 = vmatpush3.msra.mxu1 %v1915_v16  ;;  %11687 = vmatpush3.msra.mxu0 %v13916_v21 }
 0x186   : > { %11681 = vmatprep.subr.mxu1 %v12913_v0  ;;  %11683 = vmatprep.mubr.msk.f32.mxu1 %vm12914_vm0, %v12913_v0 }
 0x187   : > { %11682 = vmatpush3.msra.mxu1 %v1922_v4  ;;  %11688 = vmatprep.subr.mxu0 %v12913_v0 }
 0x188   : > { %11721 = vmatprep.subr.mxu1 %v12913_v0  ;;  %11684 = vmatmul.mubr.f32.vlgmr.msra.gmra.mxu1 %v13676_v39 }
 0x189   : > { %11689 = vmatpush3.msra.mxu0 %v13926_v25  ;;  %11722 = vmatpush3.msra.mxu1 %v13901_v15 }
 0x18a   : > { %11690 = vmatprep.subr.mxu0 %v12913_v0  ;;  %11723 = vmatprep.subr.mxu1 %v12913_v0 }
 0x18b   : > { %11691 = vmatpush3.msra.mxu0 %v13937_v40  ;;  %11724 = vmatpush3.msra.mxu1 %v13908_v18 }
 0x18c   : > { %11692 = vmatprep.subr.mxu0 %v12913_v0  ;;  %11725 = vmatprep.subr.mxu1 %v12913_v0 }
 0x18d   : > { %11693 = vmatpush3.msra.mxu0 %v13949_v53  ;;  %11726 = vmatpush3.msra.mxu1 %v13918_v23 }
 0x18e   : > { %11694 = vmatprep.subr.mxu0 %v12913_v0  ;;  %11727 = vmatprep.subr.mxu1 %v12913_v0 }
 0x18f   : > { %11695 = vmatpush3.msra.mxu0 %v13965_v32  ;;  %11728 = vmatpush3.msra.mxu1 %v13928_v28 }
 0x190   : > { %11696 = vmatprep.subr.mxu0 %v12913_v0  ;;  %11729 = vmatprep.subr.mxu1 %v12913_v0 }
 0x191   : > { %11697 = vmatpush3.msra.mxu0 %v13978_v60  ;;  %11730 = vmatpush3.msra.mxu1 %v13939_v43 }
 0x192   : > { %11698 = vmatprep.subr.mxu0 %v12913_v0  ;;  %11731 = vmatprep.subr.mxu1 %v12913_v0 }
 0x193   : > { %11699 = vmatpush3.msra.mxu0 %v13983_v1  ;;  %11732 = vmatpush3.msra.mxu1 %v13951_v55 }
 0x194   : > { %11700 = vmatprep.subr.mxu0 %v12913_v0  ;;  %11733 = vmatprep.subr.mxu1 %v12913_v0 }
 0x195   : > { %11701 = vmatpush3.msra.mxu0 %v13996_v12  ;;  %11734 = vmatpush3.msra.mxu1 %v13956_v3 }
 0x196   : > { %11702 = vmatprep.subr.mxu0 %v12913_v0  ;;  %11735 = vmatprep.subr.mxu1 %v12913_v0 }
 0x197   : > { %v749_v34 = vpop.f32.mrf.mxu0  ;;  %11703 = vmatpush3.msra.mxu0 %v14014_v7  ;;  %11736 = vmatpush3.msra.mxu1 %v13969_v42 }
 0x198   : > { %v750_v61 = vadd.f32 %v749_v34, %v646_v10  ;;  %11704 = vmatprep.subr.mxu0 %v12913_v0  ;;  %11737 = vmatprep.subr.mxu1 %v12913_v0 }
 0x199   : > { %v11300_v26 = vpop.f32.mrf.mxu0  ;;  %11705 = vmatpush3.msra.mxu0 %v14026_v17  ;;  %11738 = vmatpush3.msra.mxu1 %v13991_v5 }
 0x19a   : > { %11706 = vmatprep.subr.mxu0 %v12913_v0  ;;  %11739 = vmatprep.subr.mxu1 %v12913_v0 }
 0x19b   : > { %11707 = vmatpush3.msra.mxu0 %v14038_v54  ;;  %11740 = vmatpush3.msra.mxu1 %v14004_v8 }
 0x19c   : > { %11708 = vmatprep.subr.mxu0 %v12913_v0  ;;  %11741 = vmatprep.subr.mxu1 %v12913_v0 }
 0x19d   : > { %11709 = vmatpush3.msra.mxu0 %v14050_v24  ;;  %11742 = vmatpush3.msra.mxu1 %v14016_v14 }
 0x19e   : > { %11710 = vmatprep.subr.mxu0 %v12913_v0  ;;  %11743 = vmatprep.subr.mxu1 %v12913_v0 }
 0x19f   : > { %11711 = vmatpush3.msra.mxu0 %v14062_v49  ;;  %11744 = vmatpush3.msra.mxu1 %v14028_v22 }
 0x1a0   : > { %v838_v41 = vpop.f32.mrf.mxu1  ;;  %11712 = vmatprep.subr.mxu0 %v12913_v0  ;;  %11745 = vmatprep.subr.mxu1 %v12913_v0 }
 0x1a1   : > { %v839_v52 = vadd.f32 %v838_v41, %v750_v61  ;;  %11713 = vmatpush3.msra.mxu0 %v14074_v46  ;;  %11746 = vmatpush3.msra.mxu1 %v14040_v58 }
 0x1a2   : > { %v11335_v13 = vpop.f32.mrf.mxu1  ;;  %11714 = vmatprep.subr.mxu0 %v12913_v0  ;;  %11747 = vmatprep.subr.mxu1 %v12913_v0 }
 0x1a3   : > { %11715 = vmatpush3.msra.mxu0 %v14086_v50  ;;  %11748 = vmatpush3.msra.mxu1 %v14052_v29 }
 0x1a4   : > { %11716 = vmatprep.subr.mxu0 %v12913_v0  ;;  %11749 = vmatprep.subr.mxu1 %v12913_v0 }
 0x1a5   : > { %11717 = vmatpush3.msra.mxu0 %v14096_v19  ;;  %11750 = vmatpush3.msra.mxu1 %v14064_v9 }
 0x1a6   : > { %11718 = vmatprep.mubr.msk.f32.mxu0 %vm12914_vm0, %v12913_v0  ;;  %11751 = vmatprep.subr.mxu1 %v12913_v0 }
 0x1a7   : > { %11756 = vmatprep.subr.mxu0 %v12913_v0  ;;  %11719 = vmatmul.mubr.f32.vlgmr.msra.gmra.mxu0 %v13700_v35 }
 0x1a8   : > { %11752 = vmatpush3.msra.mxu1 %v14076_v48  ;;  %11757 = vmatpush3.msra.mxu0 %v1815_v30 }
 0x1a9   : > { %11753 = vmatprep.mubr.msk.f32.mxu1 %vm12914_vm0, %v12913_v0  ;;  %11758 = vmatprep.subr.mxu0 %v12913_v0 }
 0x1aa   : > { %11791 = vmatprep.subr.mxu1 %v12913_v0  ;;  %11754 = vmatmul.mubr.f32.vlgmr.msra.gmra.mxu1 %v13726_v38 }
 0x1ab   : > { %11759 = vmatpush3.msra.mxu0 %v1822_v47  ;;  %11792 = vmatpush3.msra.mxu1 %v13901_v15 }
 0x1ac   : > { %11760 = vmatprep.subr.mxu0 %v12913_v0  ;;  %11793 = vmatprep.subr.mxu1 %v12913_v0 }
 0x1ad   : > { %11761 = vmatpush3.msra.mxu0 %v1829_v31  ;;  %11794 = vmatpush3.msra.mxu1 %v13908_v18 }
 0x1ae   : > { %11762 = vmatprep.subr.mxu0 %v12913_v0  ;;  %11795 = vmatprep.subr.mxu1 %v12913_v0 }
 0x1af   : > { %11763 = vmatpush3.msra.mxu0 %v1836_v56  ;;  %11796 = vmatpush3.msra.mxu1 %v13918_v23 }
 0x1b0   : > { %11764 = vmatprep.subr.mxu0 %v12913_v0  ;;  %11797 = vmatprep.subr.mxu1 %v12913_v0 }
 0x1b1   : > { %11765 = vmatpush3.msra.mxu0 %v1843_v51  ;;  %11798 = vmatpush3.msra.mxu1 %v13928_v28 }
 0x1b2   : > { %11766 = vmatprep.subr.mxu0 %v12913_v0  ;;  %11799 = vmatprep.subr.mxu1 %v12913_v0 }
 0x1b3   : > { %11767 = vmatpush3.msra.mxu0 %v1850_v63  ;;  %11800 = vmatpush3.msra.mxu1 %v13939_v43 }
 0x1b4   : > { %11768 = vmatprep.subr.mxu0 %v12913_v0  ;;  %11801 = vmatprep.subr.mxu1 %v12913_v0 }
 0x1b5   : > { %11769 = vmatpush3.msra.mxu0 %v1857_v62  ;;  %11802 = vmatpush3.msra.mxu1 %v13951_v55 }
 0x1b6   : > { %11770 = vmatprep.subr.mxu0 %v12913_v0  ;;  %11803 = vmatprep.subr.mxu1 %v12913_v0 }
 0x1b7   : > { %11771 = vmatpush3.msra.mxu0 %v1864_v36  ;;  %11804 = vmatpush3.msra.mxu1 %v13956_v3 }
 0x1b8   : > { %11772 = vmatprep.subr.mxu0 %v12913_v0  ;;  %11805 = vmatprep.subr.mxu1 %v12913_v0 }
 0x1b9   : > { %v957_v35 = vpop.f32.mrf.mxu0  ;;  %11773 = vmatpush3.msra.mxu0 %v1871_v37  ;;  %11806 = vmatpush3.msra.mxu1 %v13969_v42 }
 0x1ba   : > { %v958_v38 = vadd.f32 %v957_v35, %v839_v52  ;;  %11774 = vmatprep.subr.mxu0 %v12913_v0  ;;  %11807 = vmatprep.subr.mxu1 %v12913_v0 }
 0x1bb   : > { %v11370_v15 = vpop.f32.mrf.mxu0  ;;  %11775 = vmatpush3.msra.mxu0 %v1878_v20  ;;  %11808 = vmatpush3.msra.mxu1 %v13991_v5 }
 0x1bc   : > { %11776 = vmatprep.subr.mxu0 %v12913_v0  ;;  %11809 = vmatprep.subr.mxu1 %v12913_v0 }
 0x1bd   : > { %11777 = vmatpush3.msra.mxu0 %v1885_v44  ;;  %11810 = vmatpush3.msra.mxu1 %v14004_v8 }
 0x1be   : > { %11778 = vmatprep.subr.mxu0 %v12913_v0  ;;  %11811 = vmatprep.subr.mxu1 %v12913_v0 }
 0x1bf   : > { %11779 = vmatpush3.msra.mxu0 %v1892_v27  ;;  %11812 = vmatpush3.msra.mxu1 %v14016_v14 }
 0x1c0   : > { %11780 = vmatprep.subr.mxu0 %v12913_v0  ;;  %11813 = vmatprep.subr.mxu1 %v12913_v0 }
 0x1c1   : > { %11781 = vmatpush3.msra.mxu0 %v1899_v2  ;;  %11814 = vmatpush3.msra.mxu1 %v14028_v22 }
 0x1c2   : > { %v1044_v18 = vpop.f32.mrf.mxu1  ;;  %11782 = vmatprep.subr.mxu0 %v12913_v0  ;;  %11815 = vmatprep.subr.mxu1 %v12913_v0 }
 0x1c3   : > { %v14271_v21 = vadd.f32 %v1044_v18, %v958_v38  ;;  %11783 = vmatpush3.msra.mxu0 %v1906_v59  ;;  %11816 = vmatpush3.msra.mxu1 %v14040_v58 }
 0x1c4   : > { %v11405_v23 = vpop.f32.mrf.mxu1  ;;  %11784 = vmatprep.subr.mxu0 %v12913_v0  ;;  %11817 = vmatprep.subr.mxu1 %v12913_v0 }
 0x1c5   : > { %11785 = vmatpush3.msra.mxu0 %v1913_v45  ;;  %11818 = vmatpush3.msra.mxu1 %v14052_v29 }
 0x1c6   : > { %11786 = vmatprep.subr.mxu0 %v12913_v0  ;;  %11819 = vmatprep.subr.mxu1 %v12913_v0 }
 0x1c7   : > { %11787 = vmatpush3.msra.mxu0 %v1920_v33  ;;  %11788 = vmatprep.mubr.msk.f32.mxu0 %vm12914_vm0, %v12913_v0 }
 0x1c8   : > { %11820 = vmatpush3.msra.mxu1 %v14064_v9  ;;  %11789 = vmatmul.mubr.f32.vlgmr.msra.gmra.mxu0 %v13676_v39 }
 0x1c9   : > { %11821 = vmatprep.subr.mxu1 %v12913_v0  ;;  %11823 = vmatprep.mubr.msk.f32.mxu1 %vm12914_vm0, %v12913_v0 }
 0x1ca   : > { %11822 = vmatpush3.msra.mxu1 %v14076_v48  ;;  %11826 = vmatprep.subr.mxu0 %v12913_v0 }
 0x1cb   : > { %11824 = vmatmul.mubr.f32.vlgmr.msra.gmra.mxu1 %v13676_v39  ;;  %11828 = vmatprep.mubr.msk.f32.mxu0 %vm12914_vm0, %v12913_v0  ;;  %v2364_v39 = vsel %vm2362_vm1, %v14271_v21, 0 }
 0x1cc   : > { %11831 = vmatprep.subr.mxu1 %v12913_v0  ;;  %11833 = vmatprep.mubr.msk.f32.mxu1 %vm12914_vm0, %v12913_v0  ;;  %v2435_v31 = vand.u32 4294901760, %v2364_v39 }
 0x1ce   : > { %v2436_v60 = vsub.f32 %v2364_v39, %v2435_v31 }
 0x1d0   : > { %v2437_v5 = vand.u32 4294901760, %v2436_v60 }
 0x1d2   : > { %v2438_v7 = vsub.f32 %v2436_v60, %v2437_v5 }
 0x1d4   : > { %v2439_v17 = vand.u32 4294901760, %v2438_v7 }
 0x1dc   : > { %v1151_v25 = vpop.f32.mrf.mxu0 }
 0x1de   : > { %v11440_v28 = vpop.f32.mrf.mxu0 }
 0x1e4   : > { %v1302_v30 = vpop.f32.mrf.mxu1 }
 0x1e5   : > { %v1303_v32 = vadd.f32 %v1302_v30, %v1151_v25 }
 0x1e6   : > { %v11475_v40 = vpop.f32.mrf.mxu1 }
 0x1fd   : > { %v1406_v43 = vpop.f32.mrf.mxu0 }
 0x1fe   : > { %v1407_v56 = vadd.f32 %v1406_v43, %v1303_v32 }
 0x1ff   : > { %v11510_v47 = vpop.f32.mrf.mxu0 }
 0x206   : > { %v1495_v53 = vpop.f32.mrf.mxu1 }
 0x207   : > { %v1496_v1 = vadd.f32 %v1495_v53, %v1407_v56 }
 0x208   : > { %v11545_v55 = vpop.f32.mrf.mxu1 }
 0x21f   : > { %v1614_v3 = vpop.f32.mrf.mxu0 }
 0x220   : > { %v1615_v51 = vadd.f32 %v1614_v3, %v1496_v1 }
 0x221   : > { %v11580_v42 = vpop.f32.mrf.mxu0 }
 0x228   : > { %v1701_v12 = vpop.f32.mrf.mxu1 }
 0x229   : > { %v14302_v63 = vadd.f32 %v1701_v12, %v1615_v51 }
 0x22a   : > { %v11615_v8 = vpop.f32.mrf.mxu1 }
 0x22b   : > { %3279 = vrot.lane.b32.xlu1 %v14302_v63, %s12915_s15  ;;  %v2367_v62 = vsel %vm2362_vm1, %v14302_v63, 0 }
 0x22c   : > { %v2400_v14 = vand.u32 4294901760, %v2367_v62 }
 0x22e   : > { %11827 = vmatpush3.xpose.msra.mxu0 %v2400_v14  ;;  %v2477_v36 = vsub.f32 %v2367_v62, %v2400_v14 }
 0x22f   : > { %3277 = vrot.lane.b32.xlu1 %v14271_v21, %s12915_s15  ;;  %11836 = vmatprep.subr.mxu0 %v12913_v0 }
 0x230   : > { %v2478_v22 = vand.u32 4294901760, %v2477_v36 }
 0x231   : > { %11829 = vmatmul.mubr.f32.vlgmr.msra.gmra.mxu0 %v2439_v17 }
 0x232   : > { %11837 = vmatpush3.xpose.msra.mxu0 %v2477_v36  ;;  %11838 = vmatprep.mubr.msk.f32.mxu0 %vm12914_vm0, %v12913_v0  ;;  %v2479_v37 = vsub.f32 %v2477_v36, %v2478_v22 }
 0x233   : > { %11846 = vmatprep.subr.mxu0 %v12913_v0 }
 0x234   : > { %v2480_v54 = vand.u32 4294901760, %v2479_v37 }
 0x235   : > { %11839 = vmatmul.mubr.f32.vlgmr.msra.gmra.mxu0 %v2436_v60 }
 0x236   : > { %11832 = vmatpush3.xpose.msra.mxu1 %v2480_v54  ;;  %11847 = vmatpush3.xpose.msra.mxu0 %v2478_v22 }
 0x237   : > { %11848 = vmatprep.mubr.msk.f32.mxu0 %vm12914_vm0, %v12913_v0  ;;  %11841 = vmatprep.subr.mxu1 %v12913_v0 }
 0x238   : > { %11856 = vmatprep.subr.mxu0 %v12913_v0 }
 0x239   : > { %11834 = vmatmul.mubr.f32.vlgmr.msra.gmra.mxu1 %v2435_v31  ;;  %11849 = vmatmul.mubr.f32.vlgmr.msra.gmra.mxu0 %v2435_v31 }
 0x23a   : > { %11842 = vmatpush3.xpose.msra.mxu1 %v2400_v14  ;;  %11843 = vmatprep.mubr.msk.f32.mxu1 %vm12914_vm0, %v12913_v0 }
 0x23b   : > { %11851 = vmatprep.subr.mxu1 %v12913_v0  ;;  %11858 = vmatprep.mubr.msk.f32.mxu0 %vm12914_vm0, %v12913_v0 }
 0x23d   : > { %11844 = vmatmul.mubr.f32.vlgmr.msra.gmra.mxu1 %v2437_v5 }
 0x23e   : > { %11852 = vmatpush3.xpose.msra.mxu1 %v2400_v14  ;;  %11853 = vmatprep.mubr.msk.f32.mxu1 %vm12914_vm0, %v12913_v0 }
 0x23f   : > { %11861 = vmatprep.subr.mxu1 %v12913_v0 }
 0x241   : > { %11854 = vmatmul.mubr.f32.vlgmr.msra.gmra.mxu1 %v2435_v31 }
 0x242   : > { %11863 = vmatprep.mubr.msk.f32.mxu1 %vm12914_vm0, %v12913_v0 }
 0x244   : > { %v1808_v58 = vpop.f32.mrf.mxu0 }
 0x246   : > { %v11650_v20 = vpop.f32.mrf.mxu0 }
 0x248   : > { %v1959_v24 = vpop.f32.mrf.mxu1 }
 0x249   : > { %v1960_v46 = vadd.f32 %v1959_v24, %v1808_v58 }
 0x24a   : > { %v11685_v29 = vpop.f32.mrf.mxu1 }
 0x267   : > { %v2063_v44 = vpop.f32.mrf.mxu0 }
 0x268   : > { %v2064_v48 = vadd.f32 %v2063_v44, %v1960_v46 }
 0x269   : > { %v11720_v49 = vpop.f32.mrf.mxu0 }
 0x26a   : > { %v2152_v9 = vpop.f32.mrf.mxu1 }
 0x26b   : > { %v2153_v2 = vadd.f32 %v2152_v9, %v2064_v48 }
 0x26c   : > { %v11755_v27 = vpop.f32.mrf.mxu1 }
 0x288   : > { %v2271_v50 = vpop.f32.mrf.mxu0 }
 0x289   : > { %v2272_v59 = vadd.f32 %v2271_v50, %v2153_v2 }
 0x28a   : > { %v11790_v19 = vpop.f32.mrf.mxu0 }
 0x28b   : > { %v2358_v45 = vpop.f32.mrf.mxu1 }
 0x28c   : > { %v14328_v33 = vadd.f32 %v2358_v45, %v2272_v59 }
 0x28d   : > { %v11825_v10 = vpop.f32.mrf.mxu1 }
 0x28e   : > { %v2862_v57 = vand.u32 4294901760, %v14328_v33 }
 0x290   : > { %11857 = vmatpush3.msra.mxu0 %v2862_v57  ;;  %v14332_v6 = vsub.f32 %v14328_v33, %v2862_v57 }
 0x291   : > { %11866 = vmatprep.subr.mxu0 %v12913_v0 }
 0x292   : > { %v2940_v11 = vand.u32 4294901760, %v14332_v6 }
 0x294   : > { %v2941_v16 = vsub.f32 %v14332_v6, %v2940_v11 }
 0x296   : > { %v2942_v4 = vand.u32 4294901760, %v2941_v16 }
 0x298   : > { %11862 = vmatpush3.msra.mxu1 %v2942_v4 }
 0x299   : > { %11871 = vmatprep.subr.mxu1 %v12913_v0 }
 0x29d   : > { %v3280_v60 = vpop.permute.xlu1 %3279 }
 0x29e   : > { %v3283_v1 = vsel %vm2362_vm1, %v3280_v60, 0 }
 0x29f   : > { %v3316_v51 = vand.u32 4294901760, %v3283_v1 }
 0x2a1   : > { %v3393_v12 = vsub.f32 %v3283_v1, %v3316_v51  ;;  %v3278_v62 = vpop.permute.xlu1 %3277 }
 0x2a2   : > { %v3281_v17 = vsel %vm2362_vm1, %v3278_v62, 0 }
 0x2a3   : > { %v3394_v36 = vand.u32 4294901760, %v3393_v12  ;;  %v3351_v37 = vand.u32 4294901760, %v3281_v17 }
 0x2a5   : > { %v3395_v58 = vsub.f32 %v3393_v12, %v3394_v36  ;;  %v3352_v24 = vsub.f32 %v3281_v17, %v3351_v37 }
 0x2a7   : > { %v3396_v44 = vand.u32 4294901760, %v3395_v58  ;;  %v3353_v49 = vand.u32 4294901760, %v3352_v24 }
 0x2a9   : > { %v3354_v9 = vsub.f32 %v3352_v24, %v3353_v49 }
 0x2ab   : > { %v3355_v27 = vand.u32 4294901760, %v3354_v9 }
 0x2f1   : > { %v2441_v34 = vpop.f32.mrf.mxu0 }
 0x2f3   : > { %v11830_v61 = vpop.f32.mrf.mxu0 }
 0x2f5   : > { %v2591_v26 = vpop.f32.mrf.mxu0 }
 0x2f7   : > { %v11840_v41 = vpop.f32.mrf.mxu0 }
 0x2f9   : > { %v2517_v52 = vpop.f32.mrf.mxu1  ;;  %v2739_v13 = vpop.f32.mrf.mxu0 }
 0x2fa   : > { %v2518_v35 = vadd.f32 %v2517_v52, %v2441_v34 }
 0x2fb   : > { %v11835_v38 = vpop.f32.mrf.mxu1  ;;  %v11850_v15 = vpop.f32.mrf.mxu0 }
 0x2fc   : > { %v2592_v18 = vadd.f32 %v2591_v26, %v2518_v35 }
 0x2fd   : > { %v2665_v23 = vpop.f32.mrf.mxu1 }
 0x2fe   : > { %v2666_v25 = vadd.f32 %v2665_v23, %v2592_v18 }
 0x2ff   : > { %v11845_v28 = vpop.f32.mrf.mxu1 }
 0x300   : > { %v2740_v30 = vadd.f32 %v2739_v13, %v2666_v25 }
 0x301   : > { %v2811_v40 = vpop.f32.mrf.mxu1 }
 0x302   : > { %v2812_v43 = vadd.f32 %v2811_v40, %v2740_v30 }
 0x303   : > { %v11855_v47 = vpop.f32.mrf.mxu1 }
 0x304   : > { %v2815_v53 = vmul.f32 0.5, %v2812_v43 }
 0x306   : > { %v2817_v55 = vsel %vm2816_vm2, %v2815_v53, -inf }
 0x307   : > { %2818 = vmax.xlane.f32.xlu0 %v2817_v55 }
 0x390   : > { %v2819_v39 = vpop.xlane.xlu0 %2818 }
 0x391   : > { %v2820_v3 = vsub.f32 %v2815_v53, %v2819_v39 }
 0x393   : > { %v2821_v31 = vmul.f32 1.442695, %v2820_v3 }
 0x395   : > { %12626 = vpow2.f32 %v2821_v31 }
 0x3a2   : > { %v12627_v32 = vpop.eup %12626 }
 0x3a3   : > { %v2823_v42 = vsel %vm2816_vm2, %v12627_v32, 0.0 }
 0x3a4   : > { %2824 = vadd.xlane.f32.xlu0 %v2823_v42 }
 0x42d   : > { %v2825_v56 = vpop.xlane.xlu0 %2824 }
 0x42e   : > { %12628 = vrcp.f32 %v2825_v56 }
 0x43b   : > { %v12629_v5 = vpop.eup %12628 }
 0x43c   : > { %v2827_v8 = vmul.f32 %v12629_v5, %v12627_v32 }
 0x43e   : > { %v2829_v7 = vsel %vm2816_vm2, %v2827_v8, 0 }
 0x43f   : > { %v2897_v14 = vand.u32 4294901760, %v2829_v7 }
 0x441   : > { %v2898_v22 = vsub.f32 %v2829_v7, %v2897_v14  ;;  %11864 = vmatmul.mubr.f32.vlgmr.msra.gmra.mxu1 %v2897_v14 }
 0x442   : > { %11872 = vmatpush3.msra.mxu1 %v2862_v57  ;;  %11873 = vmatprep.mubr.msk.f32.mxu1 %vm12914_vm0, %v12913_v0 }
 0x443   : > { %11881 = vmatprep.subr.mxu1 %v12913_v0  ;;  %v2899_v54 = vand.u32 4294901760, %v2898_v22 }
 0x445   : > { %11874 = vmatmul.mubr.f32.vlgmr.msra.gmra.mxu1 %v2899_v54  ;;  %v2900_v20 = vsub.f32 %v2898_v22, %v2899_v54 }
 0x446   : > { %11882 = vmatpush3.msra.mxu1 %v2862_v57  ;;  %11883 = vmatprep.mubr.msk.f32.mxu1 %vm12914_vm0, %v12913_v0 }
 0x447   : > { %11891 = vmatprep.subr.mxu1 %v12913_v0  ;;  %v2901_v29 = vand.u32 4294901760, %v2900_v20 }
 0x449   : > { %11859 = vmatmul.mubr.f32.vlgmr.msra.gmra.mxu0 %v2901_v29  ;;  %11884 = vmatmul.mubr.f32.vlgmr.msra.gmra.mxu1 %v2897_v14 }
 0x44a   : > { %11867 = vmatpush3.msra.mxu0 %v14332_v6  ;;  %11892 = vmatpush3.xpose.msra.mxu1 %v3396_v44 }
 0x44b   : > { %11868 = vmatprep.mubr.msk.f32.mxu0 %vm12914_vm0, %v12913_v0  ;;  %11876 = vmatprep.subr.mxu0 %v12913_v0 }
 0x44c   : > { %11893 = vmatprep.mubr.msk.f32.mxu1 %vm12914_vm0, %v12913_v0  ;;  %11901 = vmatprep.subr.mxu1 %v12913_v0 }
 0x44d   : > { %11869 = vmatmul.mubr.f32.vlgmr.msra.gmra.mxu0 %v2898_v22  ;;  %11894 = vmatmul.mubr.f32.vlgmr.msra.gmra.mxu1 %v3351_v37 }
 0x44e   : > { %11877 = vmatpush3.msra.mxu0 %v2940_v11  ;;  %11902 = vmatpush3.xpose.msra.mxu1 %v3316_v51 }
 0x44f   : > { %11878 = vmatprep.mubr.msk.f32.mxu0 %vm12914_vm0, %v12913_v0  ;;  %11886 = vmatprep.subr.mxu0 %v12913_v0 }
 0x450   : > { %11903 = vmatprep.mubr.msk.f32.mxu1 %vm12914_vm0, %v12913_v0  ;;  %11911 = vmatprep.subr.mxu1 %v12913_v0 }
 0x451   : > { %11879 = vmatmul.mubr.f32.vlgmr.msra.gmra.mxu0 %v2897_v14  ;;  %11904 = vmatmul.mubr.f32.vlgmr.msra.gmra.mxu1 %v3353_v49 }
 0x452   : > { %11887 = vmatpush3.xpose.msra.mxu0 %v3316_v51  ;;  %11912 = vmatpush3.xpose.msra.mxu1 %v3316_v51 }
 0x453   : > { %11888 = vmatprep.mubr.msk.f32.mxu0 %vm12914_vm0, %v12913_v0  ;;  %11896 = vmatprep.subr.mxu0 %v12913_v0 }
 0x454   : > { %11913 = vmatprep.mubr.msk.f32.mxu1 %vm12914_vm0, %v12913_v0  ;;  %11921 = vmatprep.subr.mxu1 %v12913_v0 }
 0x455   : > { %11889 = vmatmul.mubr.f32.vlgmr.msra.gmra.mxu0 %v3355_v27  ;;  %11914 = vmatmul.mubr.f32.vlgmr.msra.gmra.mxu1 %v3351_v37 }
 0x456   : > { %11897 = vmatpush3.xpose.msra.mxu0 %v3393_v12  ;;  %11898 = vmatprep.mubr.msk.f32.mxu0 %vm12914_vm0, %v12913_v0 }
 0x457   : > { %11906 = vmatprep.subr.mxu0 %v12913_v0  ;;  %11923 = vmatprep.mubr.msk.f32.mxu1 %vm12914_vm0, %v12913_v0 }
 0x459   : > { %11899 = vmatmul.mubr.f32.vlgmr.msra.gmra.mxu0 %v3352_v24 }
 0x45a   : > { %11907 = vmatpush3.xpose.msra.mxu0 %v3394_v36  ;;  %11908 = vmatprep.mubr.msk.f32.mxu0 %vm12914_vm0, %v12913_v0 }
 0x45b   : > { %11916 = vmatprep.subr.mxu0 %v12913_v0 }
 0x45d   : > { %11909 = vmatmul.mubr.f32.vlgmr.msra.gmra.mxu0 %v3351_v37 }
 0x45e   : > { %11918 = vmatprep.mubr.msk.f32.mxu0 %vm12914_vm0, %v12913_v0 }
 0x501   : > { %v2979_v46 = vpop.f32.mrf.mxu1 }
 0x503   : > { %v11865_v48 = vpop.f32.mrf.mxu1 }
 0x505   : > { %v3127_v2 = vpop.f32.mrf.mxu1 }
 0x507   : > { %v11875_v50 = vpop.f32.mrf.mxu1 }
 0x509   : > { %v2903_v59 = vpop.f32.mrf.mxu0  ;;  %v3273_v19 = vpop.f32.mrf.mxu1 }
 0x50a   : > { %v2980_v45 = vadd.f32 %v2979_v46, %v2903_v59 }
 0x50b   : > { %v11860_v10 = vpop.f32.mrf.mxu0  ;;  %v11885_v57 = vpop.f32.mrf.mxu1 }
 0x50d   : > { %v3053_v6 = vpop.f32.mrf.mxu0  ;;  %v3433_v11 = vpop.f32.mrf.mxu1 }
 0x50e   : > { %v3054_v16 = vadd.f32 %v3053_v6, %v2980_v45 }
 0x50f   : > { %v11870_v4 = vpop.f32.mrf.mxu0  ;;  %v11895_v34 = vpop.f32.mrf.mxu1 }
 0x510   : > { %v3128_v61 = vadd.f32 %v3127_v2, %v3054_v16 }
 0x511   : > { %v3201_v26 = vpop.f32.mrf.mxu0  ;;  %v3581_v41 = vpop.f32.mrf.mxu1 }
 0x512   : > { %v3202_v52 = vadd.f32 %v3201_v26, %v3128_v61 }
 0x513   : > { %v11880_v13 = vpop.f32.mrf.mxu0  ;;  %v11905_v35 = vpop.f32.mrf.mxu1 }
 0x514   : > { %v14382_v38 = vadd.f32 %v3273_v19, %v3202_v52 }
 0x515   : > { %v3357_v15 = vpop.f32.mrf.mxu0  ;;  %v3727_v18 = vpop.f32.mrf.mxu1 }
 0x516   : > { %v3434_v28 = vadd.f32 %v3433_v11, %v3357_v15 }
 0x517   : > { %v11890_v23 = vpop.f32.mrf.mxu0  ;;  %v11915_v25 = vpop.f32.mrf.mxu1 }
 0x519   : > { %v3507_v30 = vpop.f32.mrf.mxu0 }
 0x51a   : > { %v3508_v40 = vadd.f32 %v3507_v30, %v3434_v28 }
 0x51b   : > { %v11900_v43 = vpop.f32.mrf.mxu0 }
 0x51c   : > { %v3582_v47 = vadd.f32 %v3581_v41, %v3508_v40 }
 0x51d   : > { %v3655_v53 = vpop.f32.mrf.mxu0 }
 0x51e   : > { %v3656_v55 = vadd.f32 %v3655_v53, %v3582_v47 }
 0x51f   : > { %v11910_v39 = vpop.f32.mrf.mxu0 }
 0x520   : > { %v3728_v3 = vadd.f32 %v3727_v18, %v3656_v55 }
 0x522   : > { %v3731_v31 = vmul.f32 0.5, %v3728_v3 }
 0x524   : > { %v3732_v32 = vsel %vm2816_vm2, %v3731_v31, -inf }
 0x525   : > { %3733 = vmax.xlane.f32.xlu0 %v3732_v32 }
 0x53b   : > { %3744 = vrot.lane.b32.xlu0 %v14328_v33, %s12915_s15  ;;  %s10593_s15 = sshll.u32 %s12991_s30, 7 }
 0x53f   : > { %4198 = vrot.lane.b32.xlu0 %v14302_v63, %s12916_s4 }
 0x543   : > { %4196 = vrot.lane.b32.xlu0 %v14271_v21, %s12916_s4 }
 0x5ae   : > { %v3734_v42 = vpop.xlane.xlu0 %3733 }
 0x5af   : > { %v3735_v56 = vsub.f32 %v3731_v31, %v3734_v42 }
 0x5b1   : > { %v3736_v60 = vmul.f32 1.442695, %v3735_v56 }
 0x5b2   : > { %v3745_v1 = vpop.permute.xlu0 %3744 }
 0x5b3   : > { %12630 = vpow2.f32 %v3736_v60  ;;  %v3781_v51 = vand.u32 4294901760, %v3745_v1 }
 0x5b5   : > { %v3858_v5 = vsub.f32 %v3745_v1, %v3781_v51  ;;  %11917 = vmatpush3.msra.mxu0 %v3781_v51 }
 0x5b6   : > { %11926 = vmatprep.subr.mxu0 %v12913_v0  ;;  %v4199_v17 = vpop.permute.xlu0 %4198 }
 0x5b7   : > { %v3859_v12 = vand.u32 4294901760, %v3858_v5  ;;  %v4202_v22 = vsel %vm2362_vm1, %v4199_v17, 0 }
 0x5b8   : > { %v4235_v37 = vand.u32 4294901760, %v4202_v22 }
 0x5b9   : > { %v3860_v8 = vsub.f32 %v3858_v5, %v3859_v12 }
 0x5ba   : > { %v14394_v58 = vsub.f32 %v4202_v22, %v4235_v37  ;;  %v4197_v24 = vpop.permute.xlu0 %4196 }
 0x5bb   : > { %v3861_v62 = vand.u32 4294901760, %v3860_v8  ;;  %v4200_v9 = vsel %vm2362_vm1, %v4197_v24, 0 }
 0x5bc   : > { %v4313_v49 = vand.u32 4294901760, %v14394_v58  ;;  %v4270_v48 = vand.u32 4294901760, %v4200_v9 }
 0x5bd   : > { %11922 = vmatpush3.msra.mxu1 %v3861_v62 }
 0x5be   : > { %11931 = vmatprep.subr.mxu1 %v12913_v0  ;;  %v4314_v50 = vsub.f32 %v14394_v58, %v4313_v49  ;;  %v4271_v45 = vsub.f32 %v4200_v9, %v4270_v48 }
 0x5c0   : > { %v12631_v7 = vpop.eup %12630  ;;  %v4315_v57 = vand.u32 4294901760, %v4314_v50  ;;  %v4272_v11 = vand.u32 4294901760, %v4271_v45 }
 0x5c1   : > { %v3738_v14 = vsel %vm2816_vm2, %v12631_v7, 0.0 }
 0x5c2   : > { %3739 = vadd.xlane.f32.xlu1 %v3738_v14  ;;  %v4273_v4 = vsub.f32 %v4271_v45, %v4272_v11 }
 0x5c4   : > { %v4274_v61 = vand.u32 4294901760, %v4273_v4 }
 0x5d3   : > { %4662 = vrot.lane.b32.xlu1 %v14328_v33, %s12916_s4  ;;  %s388_s4 = scalar_lea.vmem [#allocation13], %s13179_s3 }
 0x64b   : > { %v3740_v36 = vpop.xlane.xlu1 %3739 }
 0x64c   : > { %12632 = vrcp.f32 %v3740_v36 }
 0x64f   : > { %v4663_v27 = vpop.permute.xlu1 %4662 }
 0x650   : > { %v14403_v59 = vand.u32 4294901760, %v4663_v27 }
 0x652   : > { %v14409_v6 = vsub.f32 %v4663_v27, %v14403_v59 }
 0x654   : > { %v4777_v16 = vand.u32 4294901760, %v14409_v6 }
 0x656   : > { %v4778_v34 = vsub.f32 %v14409_v6, %v4777_v16 }
 0x658   : > { %v4779_v26 = vand.u32 4294901760, %v4778_v34 }
 0x659   : > { %v12633_v54 = vpop.eup %12632 }
 0x65a   : > { %v3742_v20 = vmul.f32 %v12633_v54, %v12631_v7 }
 0x65c   : > { %v3748_v29 = vsel %vm2816_vm2, %v3742_v20, 0 }
 0x65d   : > { %v3816_v44 = vand.u32 4294901760, %v3748_v29 }
 0x65f   : > { %v3817_v46 = vsub.f32 %v3748_v29, %v3816_v44  ;;  %11924 = vmatmul.mubr.f32.vlgmr.msra.gmra.mxu1 %v3816_v44 }
 0x660   : > { %11932 = vmatpush3.msra.mxu1 %v3781_v51  ;;  %11933 = vmatprep.mubr.msk.f32.mxu1 %vm12914_vm0, %v12913_v0 }
 0x661   : > { %11941 = vmatprep.subr.mxu1 %v12913_v0  ;;  %v3818_v2 = vand.u32 4294901760, %v3817_v46 }
 0x663   : > { %11934 = vmatmul.mubr.f32.vlgmr.msra.gmra.mxu1 %v3818_v2  ;;  %v3819_v19 = vsub.f32 %v3817_v46, %v3818_v2 }
 0x664   : > { %11942 = vmatpush3.msra.mxu1 %v3781_v51  ;;  %11943 = vmatprep.mubr.msk.f32.mxu1 %vm12914_vm0, %v12913_v0 }
 0x665   : > { %11951 = vmatprep.subr.mxu1 %v12913_v0  ;;  %v3820_v10 = vand.u32 4294901760, %v3819_v19 }
 0x667   : > { %11919 = vmatmul.mubr.f32.vlgmr.msra.gmra.mxu0 %v3820_v10  ;;  %11944 = vmatmul.mubr.f32.vlgmr.msra.gmra.mxu1 %v3816_v44 }
 0x668   : > { %11927 = vmatpush3.msra.mxu0 %v3858_v5  ;;  %11952 = vmatpush3.xpose.msra.mxu1 %v4315_v57 }
 0x669   : > { %11928 = vmatprep.mubr.msk.f32.mxu0 %vm12914_vm0, %v12913_v0  ;;  %11936 = vmatprep.subr.mxu0 %v12913_v0 }
 0x66a   : > { %11953 = vmatprep.mubr.msk.f32.mxu1 %vm12914_vm0, %v12913_v0  ;;  %11961 = vmatprep.subr.mxu1 %v12913_v0 }
 0x66b   : > { %11929 = vmatmul.mubr.f32.vlgmr.msra.gmra.mxu0 %v3817_v46  ;;  %11954 = vmatmul.mubr.f32.vlgmr.msra.gmra.mxu1 %v4270_v48 }
 0x66c   : > { %11937 = vmatpush3.msra.mxu0 %v3859_v12  ;;  %11962 = vmatpush3.xpose.msra.mxu1 %v4235_v37 }
 0x66d   : > { %11938 = vmatprep.mubr.msk.f32.mxu0 %vm12914_vm0, %v12913_v0  ;;  %11946 = vmatprep.subr.mxu0 %v12913_v0 }
 0x66e   : > { %11963 = vmatprep.mubr.msk.f32.mxu1 %vm12914_vm0, %v12913_v0  ;;  %11971 = vmatprep.subr.mxu1 %v12913_v0 }
 0x66f   : > { %11939 = vmatmul.mubr.f32.vlgmr.msra.gmra.mxu0 %v3816_v44  ;;  %11964 = vmatmul.mubr.f32.vlgmr.msra.gmra.mxu1 %v4272_v11 }
 0x670   : > { %11947 = vmatpush3.xpose.msra.mxu0 %v4235_v37  ;;  %11972 = vmatpush3.xpose.msra.mxu1 %v4235_v37 }
 0x671   : > { %11948 = vmatprep.mubr.msk.f32.mxu0 %vm12914_vm0, %v12913_v0  ;;  %11956 = vmatprep.subr.mxu0 %v12913_v0 }
 0x672   : > { %11973 = vmatprep.mubr.msk.f32.mxu1 %vm12914_vm0, %v12913_v0  ;;  %11981 = vmatprep.subr.mxu1 %v12913_v0 }
 0x673   : > { %11949 = vmatmul.mubr.f32.vlgmr.msra.gmra.mxu0 %v4274_v61  ;;  %11974 = vmatmul.mubr.f32.vlgmr.msra.gmra.mxu1 %v4270_v48 }
 0x674   : > { %11957 = vmatpush3.xpose.msra.mxu0 %v14394_v58  ;;  %11982 = vmatpush3.msra.mxu1 %v4779_v26 }
 0x675   : > { %11958 = vmatprep.mubr.msk.f32.mxu0 %vm12914_vm0, %v12913_v0  ;;  %11966 = vmatprep.subr.mxu0 %v12913_v0 }
 0x676   : > { %11983 = vmatprep.mubr.msk.f32.mxu1 %vm12914_vm0, %v12913_v0  ;;  %11991 = vmatprep.subr.mxu1 %v12913_v0 }
 0x677   : > { %11959 = vmatmul.mubr.f32.vlgmr.msra.gmra.mxu0 %v4271_v45 }
 0x678   : > { %11967 = vmatpush3.xpose.msra.mxu0 %v4313_v49  ;;  %11968 = vmatprep.mubr.msk.f32.mxu0 %vm12914_vm0, %v12913_v0 }
 0x679   : > { %11976 = vmatprep.subr.mxu0 %v12913_v0 }
 0x67b   : > { %11969 = vmatmul.mubr.f32.vlgmr.msra.gmra.mxu0 %v4270_v48 }
 0x67c   : > { %11977 = vmatpush3.msra.mxu0 %v14403_v59  ;;  %11978 = vmatprep.mubr.msk.f32.mxu0 %vm12914_vm0, %v12913_v0 }
 0x67d   : > { %11986 = vmatprep.subr.mxu0 %v12913_v0 }
 0x71f   : > { %v3898_v41 = vpop.f32.mrf.mxu1 }
 0x721   : > { %v11925_v52 = vpop.f32.mrf.mxu1 }
 0x723   : > { %v4046_v13 = vpop.f32.mrf.mxu1 }
 0x725   : > { %v11935_v35 = vpop.f32.mrf.mxu1 }
 0x727   : > { %v3822_v15 = vpop.f32.mrf.mxu0  ;;  %v4192_v18 = vpop.f32.mrf.mxu1 }
 0x728   : > { %v3899_v23 = vadd.f32 %v3898_v41, %v3822_v15 }
 0x729   : > { %v11920_v25 = vpop.f32.mrf.mxu0  ;;  %v11945_v28 = vpop.f32.mrf.mxu1 }
 0x72b   : > { %v3972_v30 = vpop.f32.mrf.mxu0  ;;  %v4352_v40 = vpop.f32.mrf.mxu1 }
 0x72c   : > { %v3973_v43 = vadd.f32 %v3972_v30, %v3899_v23 }
 0x72d   : > { %v11930_v47 = vpop.f32.mrf.mxu0  ;;  %v11955_v53 = vpop.f32.mrf.mxu1 }
 0x72e   : > { %v4047_v55 = vadd.f32 %v4046_v13, %v3973_v43 }
 0x72f   : > { %v4120_v39 = vpop.f32.mrf.mxu0  ;;  %v4500_v3 = vpop.f32.mrf.mxu1 }
 0x730   : > { %v4121_v31 = vadd.f32 %v4120_v39, %v4047_v55 }
 0x731   : > { %v11940_v32 = vpop.f32.mrf.mxu0  ;;  %v11965_v42 = vpop.f32.mrf.mxu1 }
 0x732   : > { %v14447_v56 = vadd.f32 %v4192_v18, %v4121_v31 }
 0x733   : > { %v4276_v60 = vpop.f32.mrf.mxu0  ;;  %v4646_v1 = vpop.f32.mrf.mxu1 }
 0x734   : > { %v4353_v12 = vadd.f32 %v4352_v40, %v4276_v60 }
 0x735   : > { %v11950_v51 = vpop.f32.mrf.mxu0  ;;  %v11975_v5 = vpop.f32.mrf.mxu1 }
 0x737   : > { %v4426_v8 = vpop.f32.mrf.mxu0 }
 0x738   : > { %v4427_v62 = vadd.f32 %v4426_v8, %v4353_v12 }
 0x739   : > { %v11960_v7 = vpop.f32.mrf.mxu0 }
 0x73a   : > { %v4501_v14 = vadd.f32 %v4500_v3, %v4427_v62 }
 0x73b   : > { %v4574_v36 = vpop.f32.mrf.mxu0 }
 0x73c   : > { %v4575_v17 = vadd.f32 %v4574_v36, %v4501_v14 }
 0x73d   : > { %v11970_v22 = vpop.f32.mrf.mxu0 }
 0x73e   : > { %v4647_v37 = vadd.f32 %v4646_v1, %v4575_v17 }
 0x740   : > { %v4650_v54 = vmul.f32 0.5, %v4647_v37 }
 0x742   : > { %v4651_v58 = vsel %vm2816_vm2, %v4650_v54, -inf }
 0x743   : > { %4652 = vmax.xlane.f32.xlu0 %v4651_v58 }
 0x7cc   : > { %v4653_v20 = vpop.xlane.xlu0 %4652 }
 0x7cd   : > { %v4654_v24 = vsub.f32 %v4650_v54, %v4653_v20 }
 0x7cf   : > { %v4655_v29 = vmul.f32 1.442695, %v4654_v24 }
 0x7d1   : > { %12634 = vpow2.f32 %v4655_v29 }
 0x7de   : > { %v12635_v44 = vpop.eup %12634 }
 0x7df   : > { %v4657_v49 = vsel %vm2816_vm2, %v12635_v44, 0.0 }
 0x7e0   : > { %4658 = vadd.xlane.f32.xlu1 %v4657_v49 }
 0x7f1   : > { %5116 = vrot.lane.b32.xlu1 %v14302_v63, %s12917_s5 }
 0x7f5   : > { %5114 = vrot.lane.b32.xlu1 %v14271_v21, %s12917_s5 }
 0x869   : > { %v4659_v9 = vpop.xlane.xlu1 %4658 }
 0x86a   : > { %12636 = vrcp.f32 %v4659_v9 }
 0x86d   : > { %v5117_v27 = vpop.permute.xlu1 %5116 }
 0x86e   : > { %v5120_v46 = vsel %vm2362_vm1, %v5117_v27, 0 }
 0x86f   : > { %v5153_v48 = vand.u32 4294901760, %v5120_v46 }
 0x871   : > { %v5230_v50 = vsub.f32 %v5120_v46, %v5153_v48  ;;  %v5115_v45 = vpop.permute.xlu1 %5114 }
 0x872   : > { %v5118_v4 = vsel %vm2362_vm1, %v5115_v45, 0 }
 0x873   : > { %v5231_v11 = vand.u32 4294901760, %v5230_v50  ;;  %v5188_v61 = vand.u32 4294901760, %v5118_v4 }
 0x875   : > { %v5232_v41 = vsub.f32 %v5230_v50, %v5231_v11  ;;  %v5189_v13 = vsub.f32 %v5118_v4, %v5188_v61 }
 0x877   : > { %v12637_v2 = vpop.eup %12636  ;;  %v5233_v15 = vand.u32 4294901760, %v5232_v41  ;;  %v5190_v18 = vand.u32 4294901760, %v5189_v13 }
 0x878   : > { %v4661_v19 = vmul.f32 %v12637_v2, %v12635_v44 }
 0x87a   : > { %v4666_v10 = vsel %vm2816_vm2, %v4661_v19, 0 }
 0x87b   : > { %v4734_v57 = vand.u32 4294901760, %v4666_v10 }
 0x87d   : > { %v4735_v34 = vsub.f32 %v4666_v10, %v4734_v57  ;;  %11984 = vmatmul.mubr.f32.vlgmr.msra.gmra.mxu1 %v4734_v57 }
 0x87e   : > { %11992 = vmatpush3.msra.mxu1 %v14403_v59  ;;  %11993 = vmatprep.mubr.msk.f32.mxu1 %vm12914_vm0, %v12913_v0 }
 0x87f   : > { %12001 = vmatprep.subr.mxu1 %v12913_v0  ;;  %v4736_v26 = vand.u32 4294901760, %v4735_v34 }
 0x881   : > { %11994 = vmatmul.mubr.f32.vlgmr.msra.gmra.mxu1 %v4736_v26  ;;  %v4737_v52 = vsub.f32 %v4735_v34, %v4736_v26 }
 0x882   : > { %12002 = vmatpush3.msra.mxu1 %v14403_v59  ;;  %12003 = vmatprep.mubr.msk.f32.mxu1 %vm12914_vm0, %v12913_v0  ;;  %v5191_v59 = vsub.f32 %v5189_v13, %v5190_v18 }
 0x883   : > { %12011 = vmatprep.subr.mxu1 %v12913_v0  ;;  %v4738_v35 = vand.u32 4294901760, %v4737_v52 }
 0x884   : > { %v5192_v23 = vand.u32 4294901760, %v5191_v59 }
 0x885   : > { %11979 = vmatmul.mubr.f32.vlgmr.msra.gmra.mxu0 %v4738_v35  ;;  %12004 = vmatmul.mubr.f32.vlgmr.msra.gmra.mxu1 %v4734_v57 }
 0x886   : > { %11987 = vmatpush3.msra.mxu0 %v14409_v6  ;;  %12012 = vmatpush3.xpose.msra.mxu1 %v5233_v15 }
 0x887   : > { %11988 = vmatprep.mubr.msk.f32.mxu0 %vm12914_vm0, %v12913_v0  ;;  %11996 = vmatprep.subr.mxu0 %v12913_v0 }
 0x888   : > { %12013 = vmatprep.mubr.msk.f32.mxu1 %vm12914_vm0, %v12913_v0  ;;  %12021 = vmatprep.subr.mxu1 %v12913_v0 }
 0x889   : > { %11989 = vmatmul.mubr.f32.vlgmr.msra.gmra.mxu0 %v4735_v34  ;;  %12014 = vmatmul.mubr.f32.vlgmr.msra.gmra.mxu1 %v5188_v61 }
 0x88a   : > { %11997 = vmatpush3.msra.mxu0 %v4777_v16  ;;  %12022 = vmatpush3.xpose.msra.mxu1 %v5153_v48 }
 0x88b   : > { %11998 = vmatprep.mubr.msk.f32.mxu0 %vm12914_vm0, %v12913_v0  ;;  %12006 = vmatprep.subr.mxu0 %v12913_v0 }
 0x88c   : > { %12023 = vmatprep.mubr.msk.f32.mxu1 %vm12914_vm0, %v12913_v0  ;;  %12031 = vmatprep.subr.mxu1 %v12913_v0 }
 0x88d   : > { %11999 = vmatmul.mubr.f32.vlgmr.msra.gmra.mxu0 %v4734_v57  ;;  %12024 = vmatmul.mubr.f32.vlgmr.msra.gmra.mxu1 %v5190_v18 }
 0x88e   : > { %12007 = vmatpush3.xpose.msra.mxu0 %v5153_v48  ;;  %12032 = vmatpush3.xpose.msra.mxu1 %v5153_v48 }
 0x88f   : > { %12008 = vmatprep.mubr.msk.f32.mxu0 %vm12914_vm0, %v12913_v0  ;;  %12016 = vmatprep.subr.mxu0 %v12913_v0 }
 0x890   : > { %12033 = vmatprep.mubr.msk.f32.mxu1 %vm12914_vm0, %v12913_v0  ;;  %12041 = vmatprep.subr.mxu1 %v12913_v0 }
 0x891   : > { %12009 = vmatmul.mubr.f32.vlgmr.msra.gmra.mxu0 %v5192_v23  ;;  %12034 = vmatmul.mubr.f32.vlgmr.msra.gmra.mxu1 %v5188_v61 }
 0x892   : > { %12017 = vmatpush3.xpose.msra.mxu0 %v5230_v50  ;;  %12018 = vmatprep.mubr.msk.f32.mxu0 %vm12914_vm0, %v12913_v0 }
 0x893   : > { %12026 = vmatprep.subr.mxu0 %v12913_v0  ;;  %12043 = vmatprep.mubr.msk.f32.mxu1 %vm12914_vm0, %v12913_v0 }
 0x895   : > { %12019 = vmatmul.mubr.f32.vlgmr.msra.gmra.mxu0 %v5189_v13 }
 0x896   : > { %12027 = vmatpush3.xpose.msra.mxu0 %v5231_v11  ;;  %12028 = vmatprep.mubr.msk.f32.mxu0 %vm12914_vm0, %v12913_v0 }
 0x897   : > { %12036 = vmatprep.subr.mxu0 %v12913_v0 }
 0x899   : > { %12029 = vmatmul.mubr.f32.vlgmr.msra.gmra.mxu0 %v5188_v61 }
 0x89a   : > { %12038 = vmatprep.mubr.msk.f32.mxu0 %vm12914_vm0, %v12913_v0 }
 0x93d   : > { %v4816_v6 = vpop.f32.mrf.mxu1 }
 0x93f   : > { %v11985_v16 = vpop.f32.mrf.mxu1 }
 0x941   : > { %v4964_v25 = vpop.f32.mrf.mxu1 }
 0x943   : > { %v11995_v28 = vpop.f32.mrf.mxu1 }
 0x945   : > { %v4740_v30 = vpop.f32.mrf.mxu0  ;;  %v5110_v40 = vpop.f32.mrf.mxu1 }
 0x946   : > { %v4817_v43 = vadd.f32 %v4816_v6, %v4740_v30 }
 0x947   : > { %v11980_v47 = vpop.f32.mrf.mxu0  ;;  %v12005_v53 = vpop.f32.mrf.mxu1 }
 0x949   : > { %v4890_v55 = vpop.f32.mrf.mxu0  ;;  %v5270_v39 = vpop.f32.mrf.mxu1 }
 0x94a   : > { %v4891_v3 = vadd.f32 %v4890_v55, %v4817_v43 }
 0x94b   : > { %v11990_v31 = vpop.f32.mrf.mxu0  ;;  %v12015_v32 = vpop.f32.mrf.mxu1 }
 0x94c   : > { %v4965_v42 = vadd.f32 %v4964_v25, %v4891_v3 }
 0x94d   : > { %v5038_v60 = vpop.f32.mrf.mxu0  ;;  %v5418_v1 = vpop.f32.mrf.mxu1 }
 0x94e   : > { %v5039_v51 = vadd.f32 %v5038_v60, %v4965_v42 }
 0x94f   : > { %v12000_v5 = vpop.f32.mrf.mxu0  ;;  %v12025_v12 = vpop.f32.mrf.mxu1 }
 0x950   : > { %v14497_v8 = vadd.f32 %v5110_v40, %v5039_v51 }
 0x951   : > { %v5194_v62 = vpop.f32.mrf.mxu0  ;;  %v5564_v7 = vpop.f32.mrf.mxu1 }
 0x952   : > { %v5271_v17 = vadd.f32 %v5270_v39, %v5194_v62 }
 0x953   : > { %v12010_v14 = vpop.f32.mrf.mxu0  ;;  %v12035_v36 = vpop.f32.mrf.mxu1 }
 0x955   : > { %v5344_v22 = vpop.f32.mrf.mxu0 }
 0x956   : > { %v5345_v37 = vadd.f32 %v5344_v22, %v5271_v17 }
 0x957   : > { %v12020_v54 = vpop.f32.mrf.mxu0 }
 0x958   : > { %v5419_v58 = vadd.f32 %v5418_v1, %v5345_v37 }
 0x959   : > { %v5492_v20 = vpop.f32.mrf.mxu0 }
 0x95a   : > { %v5493_v24 = vadd.f32 %v5492_v20, %v5419_v58 }
 0x95b   : > { %v12030_v29 = vpop.f32.mrf.mxu0 }
 0x95c   : > { %v5565_v44 = vadd.f32 %v5564_v7, %v5493_v24 }
 0x95e   : > { %v5568_v49 = vmul.f32 0.5, %v5565_v44 }
 0x960   : > { %v5569_v9 = vsel %vm2816_vm2, %v5568_v49, -inf }
 0x961   : > { %5570 = vmax.xlane.f32.xlu0 %v5569_v9 }
 0x977   : > { %5580 = vrot.lane.b32.xlu0 %v14328_v33, %s12917_s5  ;;  %s10441_s5 = sshll.u32 %s388_s4, 4  ;;  %s10442_s5 = int_to_ptr.vmem [resolvable:$true] %s10441_s5 }
 0x97b   : > { %6034 = vrot.lane.b32.xlu0 %v14302_v63, %s12918_s16 }
 0x97f   : > { %6032 = vrot.lane.b32.xlu0 %v14271_v21, %s12918_s16 }
 0x9ea   : > { %v5571_v27 = vpop.xlane.xlu0 %5570 }
 0x9eb   : > { %v5572_v46 = vsub.f32 %v5568_v49, %v5571_v27 }
 0x9ed   : > { %v5573_v48 = vmul.f32 1.442695, %v5572_v46 }
 0x9ee   : > { %v5581_v2 = vpop.permute.xlu0 %5580 }
 0x9ef   : > { %12638 = vpow2.f32 %v5573_v48  ;;  %v5617_v50 = vand.u32 4294901760, %v5581_v2 }
 0x9f1   : > { %v5694_v19 = vsub.f32 %v5581_v2, %v5617_v50  ;;  %12037 = vmatpush3.msra.mxu0 %v5617_v50 }
 0x9f2   : > { %12046 = vmatprep.subr.mxu0 %v12913_v0  ;;  %v6035_v61 = vpop.permute.xlu0 %6034 }
 0x9f3   : > { %v5695_v45 = vand.u32 4294901760, %v5694_v19  ;;  %v6038_v26 = vsel %vm2362_vm1, %v6035_v61, 0 }
 0x9f4   : > { %v6071_v41 = vand.u32 4294901760, %v6038_v26 }
 0x9f5   : > { %v5696_v10 = vsub.f32 %v5694_v19, %v5695_v45 }
 0x9f6   : > { %v14509_v13 = vsub.f32 %v6038_v26, %v6071_v41  ;;  %v6033_v15 = vpop.permute.xlu0 %6032 }
 0x9f7   : > { %v5697_v57 = vand.u32 4294901760, %v5696_v10  ;;  %v6036_v6 = vsel %vm2362_vm1, %v6033_v15, 0 }
 0x9f8   : > { %v6149_v23 = vand.u32 4294901760, %v14509_v13  ;;  %v6106_v28 = vand.u32 4294901760, %v6036_v6 }
 0x9f9   : > { %12042 = vmatpush3.msra.mxu1 %v5697_v57 }
 0x9fa   : > { %12051 = vmatprep.subr.mxu1 %v12913_v0  ;;  %v6150_v40 = vsub.f32 %v14509_v13, %v6149_v23  ;;  %v6107_v53 = vsub.f32 %v6036_v6, %v6106_v28 }
 0x9fc   : > { %v12639_v11 = vpop.eup %12638  ;;  %v6151_v39 = vand.u32 4294901760, %v6150_v40  ;;  %v6108_v31 = vand.u32 4294901760, %v6107_v53 }
 0x9fd   : > { %v5575_v4 = vsel %vm2816_vm2, %v12639_v11, 0.0 }
 0x9fe   : > { %5576 = vadd.xlane.f32.xlu1 %v5575_v4  ;;  %v6109_v42 = vsub.f32 %v6107_v53, %v6108_v31 }
 0xa00   : > { %v6110_v1 = vand.u32 4294901760, %v6109_v42 }
 0xa0f   : > { %6498 = vrot.lane.b32.xlu1 %v14328_v33, %s12918_s16 }
 0xa87   : > { %v5577_v34 = vpop.xlane.xlu1 %5576 }
 0xa88   : > { %12640 = vrcp.f32 %v5577_v34 }
 0xa8b   : > { %v6499_v16 = vpop.permute.xlu1 %6498 }
 0xa8c   : > { %v14518_v43 = vand.u32 4294901760, %v6499_v16 }
 0xa8e   : > { %v14524_v3 = vsub.f32 %v6499_v16, %v14518_v43 }
 0xa90   : > { %v6613_v32 = vand.u32 4294901760, %v14524_v3 }
 0xa92   : > { %v6614_v60 = vsub.f32 %v14524_v3, %v6613_v32 }
 0xa94   : > { %v6615_v51 = vand.u32 4294901760, %v6614_v60 }
 0xa95   : > { %v12641_v52 = vpop.eup %12640 }
 0xa96   : > { %v5579_v35 = vmul.f32 %v12641_v52, %v12639_v11 }
 0xa98   : > { %v5584_v18 = vsel %vm2816_vm2, %v5579_v35, 0 }
 0xa99   : > { %v5652_v59 = vand.u32 4294901760, %v5584_v18 }
 0xa9b   : > { %v5653_v25 = vsub.f32 %v5584_v18, %v5652_v59  ;;  %12044 = vmatmul.mubr.f32.vlgmr.msra.gmra.mxu1 %v5652_v59 }
 0xa9c   : > { %12052 = vmatpush3.msra.mxu1 %v5617_v50  ;;  %12053 = vmatprep.mubr.msk.f32.mxu1 %vm12914_vm0, %v12913_v0 }
 0xa9d   : > { %12061 = vmatprep.subr.mxu1 %v12913_v0  ;;  %v5654_v30 = vand.u32 4294901760, %v5653_v25 }
 0xa9f   : > { %12054 = vmatmul.mubr.f32.vlgmr.msra.gmra.mxu1 %v5654_v30  ;;  %v5655_v47 = vsub.f32 %v5653_v25, %v5654_v30 }
 0xaa0   : > { %12062 = vmatpush3.msra.mxu1 %v5617_v50  ;;  %12063 = vmatprep.mubr.msk.f32.mxu1 %vm12914_vm0, %v12913_v0 }
 0xaa1   : > { %12071 = vmatprep.subr.mxu1 %v12913_v0  ;;  %v5656_v55 = vand.u32 4294901760, %v5655_v47 }
 0xaa3   : > { %12039 = vmatmul.mubr.f32.vlgmr.msra.gmra.mxu0 %v5656_v55  ;;  %12064 = vmatmul.mubr.f32.vlgmr.msra.gmra.mxu1 %v5652_v59 }
 0xaa4   : > { %12047 = vmatpush3.msra.mxu0 %v5694_v19  ;;  %12072 = vmatpush3.xpose.msra.mxu1 %v6151_v39 }
 0xaa5   : > { %12048 = vmatprep.mubr.msk.f32.mxu0 %vm12914_vm0, %v12913_v0  ;;  %12056 = vmatprep.subr.mxu0 %v12913_v0 }
 0xaa6   : > { %12073 = vmatprep.mubr.msk.f32.mxu1 %vm12914_vm0, %v12913_v0  ;;  %12081 = vmatprep.subr.mxu1 %v12913_v0 }
 0xaa7   : > { %12049 = vmatmul.mubr.f32.vlgmr.msra.gmra.mxu0 %v5653_v25  ;;  %12074 = vmatmul.mubr.f32.vlgmr.msra.gmra.mxu1 %v6106_v28 }
 0xaa8   : > { %12057 = vmatpush3.msra.mxu0 %v5695_v45  ;;  %12082 = vmatpush3.xpose.msra.mxu1 %v6071_v41 }
 0xaa9   : > { %12058 = vmatprep.mubr.msk.f32.mxu0 %vm12914_vm0, %v12913_v0  ;;  %12066 = vmatprep.subr.mxu0 %v12913_v0 }
 0xaaa   : > { %12083 = vmatprep.mubr.msk.f32.mxu1 %vm12914_vm0, %v12913_v0  ;;  %12091 = vmatprep.subr.mxu1 %v12913_v0 }
 0xaab   : > { %12059 = vmatmul.mubr.f32.vlgmr.msra.gmra.mxu0 %v5652_v59  ;;  %12084 = vmatmul.mubr.f32.vlgmr.msra.gmra.mxu1 %v6108_v31 }
 0xaac   : > { %12067 = vmatpush3.xpose.msra.mxu0 %v6071_v41  ;;  %12092 = vmatpush3.xpose.msra.mxu1 %v6071_v41 }
 0xaad   : > { %12068 = vmatprep.mubr.msk.f32.mxu0 %vm12914_vm0, %v12913_v0  ;;  %12076 = vmatprep.subr.mxu0 %v12913_v0 }
 0xaae   : > { %12093 = vmatprep.mubr.msk.f32.mxu1 %vm12914_vm0, %v12913_v0  ;;  %12101 = vmatprep.subr.mxu1 %v12913_v0 }
 0xaaf   : > { %12069 = vmatmul.mubr.f32.vlgmr.msra.gmra.mxu0 %v6110_v1  ;;  %12094 = vmatmul.mubr.f32.vlgmr.msra.gmra.mxu1 %v6106_v28 }
 0xab0   : > { %12077 = vmatpush3.xpose.msra.mxu0 %v14509_v13  ;;  %12102 = vmatpush3.msra.mxu1 %v6615_v51 }
 0xab1   : > { %12078 = vmatprep.mubr.msk.f32.mxu0 %vm12914_vm0, %v12913_v0  ;;  %12086 = vmatprep.subr.mxu0 %v12913_v0 }
 0xab2   : > { %12103 = vmatprep.mubr.msk.f32.mxu1 %vm12914_vm0, %v12913_v0  ;;  %12111 = vmatprep.subr.mxu1 %v12913_v0 }
 0xab3   : > { %12079 = vmatmul.mubr.f32.vlgmr.msra.gmra.mxu0 %v6107_v53 }
 0xab4   : > { %12087 = vmatpush3.xpose.msra.mxu0 %v6149_v23  ;;  %12088 = vmatprep.mubr.msk.f32.mxu0 %vm12914_vm0, %v12913_v0 }
 0xab5   : > { %12096 = vmatprep.subr.mxu0 %v12913_v0 }
 0xab7   : > { %12089 = vmatmul.mubr.f32.vlgmr.msra.gmra.mxu0 %v6106_v28 }
 0xab8   : > { %12097 = vmatpush3.msra.mxu0 %v14518_v43  ;;  %12098 = vmatprep.mubr.msk.f32.mxu0 %vm12914_vm0, %v12913_v0 }
 0xab9   : > { %12106 = vmatprep.subr.mxu0 %v12913_v0 }
 0xb5b   : > { %v5734_v5 = vpop.f32.mrf.mxu1 }
 0xb5d   : > { %v12045_v12 = vpop.f32.mrf.mxu1 }
 0xb5f   : > { %v5882_v62 = vpop.f32.mrf.mxu1 }
 0xb61   : > { %v12055_v7 = vpop.f32.mrf.mxu1 }
 0xb63   : > { %v5658_v14 = vpop.f32.mrf.mxu0  ;;  %v6028_v36 = vpop.f32.mrf.mxu1 }
 0xb64   : > { %v5735_v17 = vadd.f32 %v5734_v5, %v5658_v14 }
 0xb65   : > { %v12040_v22 = vpop.f32.mrf.mxu0  ;;  %v12065_v37 = vpop.f32.mrf.mxu1 }
 0xb67   : > { %v5808_v54 = vpop.f32.mrf.mxu0  ;;  %v6188_v58 = vpop.f32.mrf.mxu1 }
 0xb68   : > { %v5809_v20 = vadd.f32 %v5808_v54, %v5735_v17 }
 0xb69   : > { %v12050_v24 = vpop.f32.mrf.mxu0  ;;  %v12075_v29 = vpop.f32.mrf.mxu1 }
 0xb6a   : > { %v5883_v44 = vadd.f32 %v5882_v62, %v5809_v20 }
 0xb6b   : > { %v5956_v49 = vpop.f32.mrf.mxu0  ;;  %v6336_v9 = vpop.f32.mrf.mxu1 }
 0xb6c   : > { %v5957_v27 = vadd.f32 %v5956_v49, %v5883_v44 }
 0xb6d   : > { %v12060_v46 = vpop.f32.mrf.mxu0  ;;  %v12085_v48 = vpop.f32.mrf.mxu1 }
 0xb6e   : > { %v14562_v2 = vadd.f32 %v6028_v36, %v5957_v27 }
 0xb6f   : > { %v6112_v50 = vpop.f32.mrf.mxu0  ;;  %v6482_v19 = vpop.f32.mrf.mxu1 }
 0xb70   : > { %v6189_v57 = vadd.f32 %v6188_v58, %v6112_v50 }
 0xb71   : > { %v12070_v45 = vpop.f32.mrf.mxu0  ;;  %v12095_v10 = vpop.f32.mrf.mxu1 }
 0xb73   : > { %v6262_v11 = vpop.f32.mrf.mxu0 }
 0xb74   : > { %v6263_v4 = vadd.f32 %v6262_v11, %v6189_v57 }
 0xb75   : > { %v12080_v34 = vpop.f32.mrf.mxu0 }
 0xb76   : > { %v6337_v61 = vadd.f32 %v6336_v9, %v6263_v4 }
 0xb77   : > { %v6410_v26 = vpop.f32.mrf.mxu0 }
 0xb78   : > { %v6411_v41 = vadd.f32 %v6410_v26, %v6337_v61 }
 0xb79   : > { %v12090_v52 = vpop.f32.mrf.mxu0 }
 0xb7a   : > { %v6483_v13 = vadd.f32 %v6482_v19, %v6411_v41 }
 0xb7c   : > { %v6486_v35 = vmul.f32 0.5, %v6483_v13 }
 0xb7e   : > { %v6487_v15 = vsel %vm2816_vm2, %v6486_v35, -inf }
 0xb7f   : > { %6488 = vmax.xlane.f32.xlu0 %v6487_v15 }
 0xc08   : > { %v6489_v18 = vpop.xlane.xlu0 %6488 }
 0xc09   : > { %v6490_v59 = vsub.f32 %v6486_v35, %v6489_v18 }
 0xc0b   : > { %v6491_v23 = vmul.f32 1.442695, %v6490_v59 }
 0xc0d   : > { %12642 = vpow2.f32 %v6491_v23 }
 0xc1a   : > { %v12643_v6 = vpop.eup %12642 }
 0xc1b   : > { %v6493_v16 = vsel %vm2816_vm2, %v12643_v6, 0.0 }
 0xc1c   : > { %6494 = vadd.xlane.f32.xlu1 %v6493_v16 }
 0xc2d   : > { %6952 = vrot.lane.b32.xlu1 %v14302_v63, %s12919_s28 }
 0xc31   : > { %6950 = vrot.lane.b32.xlu1 %v14271_v21, %s12919_s28 }
 0xca5   : > { %v6495_v25 = vpop.xlane.xlu1 %6494 }
 0xca6   : > { %12644 = vrcp.f32 %v6495_v25 }
 0xca9   : > { %v6953_v28 = vpop.permute.xlu1 %6952 }
 0xcaa   : > { %v6956_v30 = vsel %vm2362_vm1, %v6953_v28, 0 }
 0xcab   : > { %v6989_v40 = vand.u32 4294901760, %v6956_v30 }
 0xcad   : > { %v7066_v53 = vsub.f32 %v6956_v30, %v6989_v40  ;;  %v6951_v39 = vpop.permute.xlu1 %6950 }
 0xcae   : > { %v6954_v1 = vsel %vm2362_vm1, %v6951_v39, 0 }
 0xcaf   : > { %v7067_v60 = vand.u32 4294901760, %v7066_v53  ;;  %v7024_v5 = vand.u32 4294901760, %v6954_v1 }
 0xcb1   : > { %v7068_v62 = vsub.f32 %v7066_v53, %v7067_v60  ;;  %v7025_v14 = vsub.f32 %v6954_v1, %v7024_v5 }
 0xcb3   : > { %v12645_v47 = vpop.eup %12644  ;;  %v7069_v17 = vand.u32 4294901760, %v7068_v62  ;;  %v7026_v22 = vand.u32 4294901760, %v7025_v14 }
 0xcb4   : > { %v6497_v55 = vmul.f32 %v12645_v47, %v12643_v6 }
 0xcb6   : > { %v6502_v31 = vsel %vm2816_vm2, %v6497_v55, 0 }
 0xcb7   : > { %v6570_v42 = vand.u32 4294901760, %v6502_v31 }
 0xcb9   : > { %v6571_v51 = vsub.f32 %v6502_v31, %v6570_v42  ;;  %12104 = vmatmul.mubr.f32.vlgmr.msra.gmra.mxu1 %v6570_v42 }
 0xcba   : > { %12112 = vmatpush3.msra.mxu1 %v14518_v43  ;;  %12113 = vmatprep.mubr.msk.f32.mxu1 %vm12914_vm0, %v12913_v0 }
 0xcbb   : > { %12121 = vmatprep.subr.mxu1 %v12913_v0  ;;  %v6572_v12 = vand.u32 4294901760, %v6571_v51 }
 0xcbd   : > { %12114 = vmatmul.mubr.f32.vlgmr.msra.gmra.mxu1 %v6572_v12  ;;  %v6573_v7 = vsub.f32 %v6571_v51, %v6572_v12 }
 0xcbe   : > { %12122 = vmatpush3.msra.mxu1 %v14518_v43  ;;  %12123 = vmatprep.mubr.msk.f32.mxu1 %vm12914_vm0, %v12913_v0  ;;  %v7027_v43 = vsub.f32 %v7025_v14, %v7026_v22 }
 0xcbf   : > { %12131 = vmatprep.subr.mxu1 %v12913_v0  ;;  %v6574_v36 = vand.u32 4294901760, %v6573_v7 }
 0xcc0   : > { %v7028_v37 = vand.u32 4294901760, %v7027_v43 }
 0xcc1   : > { %12099 = vmatmul.mubr.f32.vlgmr.msra.gmra.mxu0 %v6574_v36  ;;  %12124 = vmatmul.mubr.f32.vlgmr.msra.gmra.mxu1 %v6570_v42 }
 0xcc2   : > { %12107 = vmatpush3.msra.mxu0 %v14524_v3  ;;  %12132 = vmatpush3.xpose.msra.mxu1 %v7069_v17 }
 0xcc3   : > { %12108 = vmatprep.mubr.msk.f32.mxu0 %vm12914_vm0, %v12913_v0  ;;  %12116 = vmatprep.subr.mxu0 %v12913_v0 }
 0xcc4   : > { %12133 = vmatprep.mubr.msk.f32.mxu1 %vm12914_vm0, %v12913_v0  ;;  %12141 = vmatprep.subr.mxu1 %v12913_v0 }
 0xcc5   : > { %12109 = vmatmul.mubr.f32.vlgmr.msra.gmra.mxu0 %v6571_v51  ;;  %12134 = vmatmul.mubr.f32.vlgmr.msra.gmra.mxu1 %v7024_v5 }
 0xcc6   : > { %12117 = vmatpush3.msra.mxu0 %v6613_v32  ;;  %12142 = vmatpush3.xpose.msra.mxu1 %v6989_v40 }
 0xcc7   : > { %12118 = vmatprep.mubr.msk.f32.mxu0 %vm12914_vm0, %v12913_v0  ;;  %12126 = vmatprep.subr.mxu0 %v12913_v0 }
 0xcc8   : > { %12143 = vmatprep.mubr.msk.f32.mxu1 %vm12914_vm0, %v12913_v0  ;;  %12151 = vmatprep.subr.mxu1 %v12913_v0 }
 0xcc9   : > { %12119 = vmatmul.mubr.f32.vlgmr.msra.gmra.mxu0 %v6570_v42  ;;  %12144 = vmatmul.mubr.f32.vlgmr.msra.gmra.mxu1 %v7026_v22 }
 0xcca   : > { %12127 = vmatpush3.xpose.msra.mxu0 %v6989_v40  ;;  %12152 = vmatpush3.xpose.msra.mxu1 %v6989_v40 }
 0xccb   : > { %12128 = vmatprep.mubr.msk.f32.mxu0 %vm12914_vm0, %v12913_v0  ;;  %12136 = vmatprep.subr.mxu0 %v12913_v0 }
 0xccc   : > { %12153 = vmatprep.mubr.msk.f32.mxu1 %vm12914_vm0, %v12913_v0  ;;  %12161 = vmatprep.subr.mxu1 %v12913_v0 }
 0xccd   : > { %12129 = vmatmul.mubr.f32.vlgmr.msra.gmra.mxu0 %v7028_v37  ;;  %12154 = vmatmul.mubr.f32.vlgmr.msra.gmra.mxu1 %v7024_v5 }
 0xcce   : > { %12137 = vmatpush3.xpose.msra.mxu0 %v7066_v53  ;;  %12138 = vmatprep.mubr.msk.f32.mxu0 %vm12914_vm0, %v12913_v0 }
 0xccf   : > { %12146 = vmatprep.subr.mxu0 %v12913_v0  ;;  %12163 = vmatprep.mubr.msk.f32.mxu1 %vm12914_vm0, %v12913_v0 }
 0xcd1   : > { %12139 = vmatmul.mubr.f32.vlgmr.msra.gmra.mxu0 %v7025_v14 }
 0xcd2   : > { %12147 = vmatpush3.xpose.msra.mxu0 %v7067_v60  ;;  %12148 = vmatprep.mubr.msk.f32.mxu0 %vm12914_vm0, %v12913_v0 }
 0xcd3   : > { %12156 = vmatprep.subr.mxu0 %v12913_v0 }
 0xcd5   : > { %12149 = vmatmul.mubr.f32.vlgmr.msra.gmra.mxu0 %v7024_v5 }
 0xcd6   : > { %12158 = vmatprep.mubr.msk.f32.mxu0 %vm12914_vm0, %v12913_v0 }
 0xd79   : > { %v6652_v3 = vpop.f32.mrf.mxu1 }
 0xd7b   : > { %v12105_v32 = vpop.f32.mrf.mxu1 }
 0xd7d   : > { %v6800_v54 = vpop.f32.mrf.mxu1 }
 0xd7f   : > { %v12115_v58 = vpop.f32.mrf.mxu1 }
 0xd81   : > { %v6576_v20 = vpop.f32.mrf.mxu0  ;;  %v6946_v24 = vpop.f32.mrf.mxu1 }
 0xd82   : > { %v6653_v29 = vadd.f32 %v6652_v3, %v6576_v20 }
 0xd83   : > { %v12100_v44 = vpop.f32.mrf.mxu0  ;;  %v12125_v49 = vpop.f32.mrf.mxu1 }
 0xd85   : > { %v6726_v9 = vpop.f32.mrf.mxu0  ;;  %v7106_v27 = vpop.f32.mrf.mxu1 }
 0xd86   : > { %v6727_v46 = vadd.f32 %v6726_v9, %v6653_v29 }
 0xd87   : > { %v12110_v48 = vpop.f32.mrf.mxu0  ;;  %v12135_v50 = vpop.f32.mrf.mxu1 }
 0xd88   : > { %v6801_v19 = vadd.f32 %v6800_v54, %v6727_v46 }
 0xd89   : > { %v6874_v45 = vpop.f32.mrf.mxu0  ;;  %v7254_v10 = vpop.f32.mrf.mxu1 }
 0xd8a   : > { %v6875_v57 = vadd.f32 %v6874_v45, %v6801_v19 }
 0xd8b   : > { %v12120_v11 = vpop.f32.mrf.mxu0  ;;  %v12145_v4 = vpop.f32.mrf.mxu1 }
 0xd8c   : > { %v14612_v34 = vadd.f32 %v6946_v24, %v6875_v57 }
 0xd8d   : > { %v7030_v61 = vpop.f32.mrf.mxu0  ;;  %v7400_v26 = vpop.f32.mrf.mxu1 }
 0xd8e   : > { %v7107_v13 = vadd.f32 %v7106_v27, %v7030_v61 }
 0xd8f   : > { %v12130_v41 = vpop.f32.mrf.mxu0  ;;  %v12155_v52 = vpop.f32.mrf.mxu1 }
 0xd91   : > { %v7180_v35 = vpop.f32.mrf.mxu0 }
 0xd92   : > { %v7181_v15 = vadd.f32 %v7180_v35, %v7107_v13 }
 0xd93   : > { %v12140_v18 = vpop.f32.mrf.mxu0 }
 0xd94   : > { %v7255_v59 = vadd.f32 %v7254_v10, %v7181_v15 }
 0xd95   : > { %v7328_v23 = vpop.f32.mrf.mxu0 }
 0xd96   : > { %v7329_v6 = vadd.f32 %v7328_v23, %v7255_v59 }
 0xd97   : > { %v12150_v16 = vpop.f32.mrf.mxu0 }
 0xd98   : > { %v7401_v25 = vadd.f32 %v7400_v26, %v7329_v6 }
 0xd9a   : > { %v7404_v28 = vmul.f32 0.5, %v7401_v25 }
 0xd9c   : > { %v7405_v30 = vsel %vm2816_vm2, %v7404_v28, -inf }
 0xd9d   : > { %7406 = vmax.xlane.f32.xlu0 %v7405_v30 }
 0xdb3   : > { %7416 = vrot.lane.b32.xlu0 %v14328_v33, %s12919_s28 }
 0xdb7   : > { %7870 = vrot.lane.b32.xlu0 %v14302_v63, %s12920_s18 }
 0xdbb   : > { %7868 = vrot.lane.b32.xlu0 %v14271_v21, %s12920_s18 }
 0xe26   : > { %v7407_v40 = vpop.xlane.xlu0 %7406 }
 0xe27   : > { %v7408_v47 = vsub.f32 %v7404_v28, %v7407_v40 }
 0xe29   : > { %v7409_v53 = vmul.f32 1.442695, %v7408_v47 }
 0xe2a   : > { %v7417_v55 = vpop.permute.xlu0 %7416 }
 0xe2b   : > { %12646 = vpow2.f32 %v7409_v53  ;;  %v7453_v39 = vand.u32 4294901760, %v7417_v55 }
 0xe2d   : > { %v7530_v31 = vsub.f32 %v7417_v55, %v7453_v39  ;;  %12157 = vmatpush3.msra.mxu0 %v7453_v39 }
 0xe2e   : > { %12166 = vmatprep.subr.mxu0 %v12913_v0  ;;  %v7871_v62 = vpop.permute.xlu0 %7870 }
 0xe2f   : > { %v7531_v42 = vand.u32 4294901760, %v7530_v31  ;;  %v7874_v7 = vsel %vm2362_vm1, %v7871_v62, 0 }
 0xe30   : > { %v7907_v14 = vand.u32 4294901760, %v7874_v7 }
 0xe31   : > { %v7532_v60 = vsub.f32 %v7530_v31, %v7531_v42 }
 0xe32   : > { %v14624_v17 = vsub.f32 %v7874_v7, %v7907_v14  ;;  %v7869_v43 = vpop.permute.xlu0 %7868 }
 0xe33   : > { %v7533_v1 = vand.u32 4294901760, %v7532_v60  ;;  %v7872_v54 = vsel %vm2362_vm1, %v7869_v43, 0 }
 0xe34   : > { %v7985_v32 = vand.u32 4294901760, %v14624_v17  ;;  %v7942_v24 = vand.u32 4294901760, %v7872_v54 }
 0xe35   : > { %12162 = vmatpush3.msra.mxu1 %v7533_v1 }
 0xe36   : > { %12171 = vmatprep.subr.mxu1 %v12913_v0  ;;  %v7986_v44 = vsub.f32 %v14624_v17, %v7985_v32  ;;  %v7943_v27 = vsub.f32 %v7872_v54, %v7942_v24 }
 0xe38   : > { %v12647_v51 = vpop.eup %12646  ;;  %v7987_v48 = vand.u32 4294901760, %v7986_v44  ;;  %v7944_v19 = vand.u32 4294901760, %v7943_v27 }
 0xe39   : > { %v7411_v5 = vsel %vm2816_vm2, %v12647_v51, 0.0 }
 0xe3a   : > { %7412 = vadd.xlane.f32.xlu1 %v7411_v5  ;;  %v7945_v10 = vsub.f32 %v7943_v27, %v7944_v19 }
 0xe3c   : > { %v7946_v11 = vand.u32 4294901760, %v7945_v10 }
 0xe4b   : > { %8334 = vrot.lane.b32.xlu1 %v14328_v33, %s12920_s18  ;;  %s10439_s18 = scalar_lea.hbm %s15159_s7, %s10593_s15 }
 0xec3   : > { %v7413_v12 = vpop.xlane.xlu1 %7412 }
 0xec4   : > { %12648 = vrcp.f32 %v7413_v12 }
 0xec7   : > { %v8335_v58 = vpop.permute.xlu1 %8334 }
 0xec8   : > { %v14633_v49 = vand.u32 4294901760, %v8335_v58 }
 0xeca   : > { %v14639_v50 = vsub.f32 %v8335_v58, %v14633_v49 }
 0xecc   : > { %v8449_v45 = vand.u32 4294901760, %v14639_v50 }
 0xece   : > { %v8450_v57 = vsub.f32 %v14639_v50, %v8449_v45 }
 0xed0   : > { %v8451_v4 = vand.u32 4294901760, %v8450_v57 }
 0xed1   : > { %v12649_v36 = vpop.eup %12648 }
 0xed2   : > { %v7415_v22 = vmul.f32 %v12649_v36, %v12647_v51 }
 0xed4   : > { %v7420_v37 = vsel %vm2816_vm2, %v7415_v22, 0 }
 0xed5   : > { %v7488_v3 = vand.u32 4294901760, %v7420_v37 }
 0xed7   : > { %v7489_v20 = vsub.f32 %v7420_v37, %v7488_v3  ;;  %12164 = vmatmul.mubr.f32.vlgmr.msra.gmra.mxu1 %v7488_v3 }
 0xed8   : > { %12172 = vmatpush3.msra.mxu1 %v7453_v39  ;;  %12173 = vmatprep.mubr.msk.f32.mxu1 %vm12914_vm0, %v12913_v0 }
 0xed9   : > { %12181 = vmatprep.subr.mxu1 %v12913_v0  ;;  %v7490_v29 = vand.u32 4294901760, %v7489_v20 }
 0xedb   : > { %12174 = vmatmul.mubr.f32.vlgmr.msra.gmra.mxu1 %v7490_v29  ;;  %v7491_v9 = vsub.f32 %v7489_v20, %v7490_v29 }
 0xedc   : > { %12182 = vmatpush3.msra.mxu1 %v7453_v39  ;;  %12183 = vmatprep.mubr.msk.f32.mxu1 %vm12914_vm0, %v12913_v0 }
 0xedd   : > { %12191 = vmatprep.subr.mxu1 %v12913_v0  ;;  %v7492_v46 = vand.u32 4294901760, %v7491_v9 }
 0xedf   : > { %12159 = vmatmul.mubr.f32.vlgmr.msra.gmra.mxu0 %v7492_v46  ;;  %12184 = vmatmul.mubr.f32.vlgmr.msra.gmra.mxu1 %v7488_v3 }
 0xee0   : > { %12167 = vmatpush3.msra.mxu0 %v7530_v31  ;;  %12192 = vmatpush3.xpose.msra.mxu1 %v7987_v48 }
 0xee1   : > { %12168 = vmatprep.mubr.msk.f32.mxu0 %vm12914_vm0, %v12913_v0  ;;  %12176 = vmatprep.subr.mxu0 %v12913_v0 }
 0xee2   : > { %12193 = vmatprep.mubr.msk.f32.mxu1 %vm12914_vm0, %v12913_v0  ;;  %12201 = vmatprep.subr.mxu1 %v12913_v0 }
 0xee3   : > { %12169 = vmatmul.mubr.f32.vlgmr.msra.gmra.mxu0 %v7489_v20  ;;  %12194 = vmatmul.mubr.f32.vlgmr.msra.gmra.mxu1 %v7942_v24 }
 0xee4   : > { %12177 = vmatpush3.msra.mxu0 %v7531_v42  ;;  %12202 = vmatpush3.xpose.msra.mxu1 %v7907_v14 }
 0xee5   : > { %12178 = vmatprep.mubr.msk.f32.mxu0 %vm12914_vm0, %v12913_v0  ;;  %12186 = vmatprep.subr.mxu0 %v12913_v0 }
 0xee6   : > { %12203 = vmatprep.mubr.msk.f32.mxu1 %vm12914_vm0, %v12913_v0  ;;  %12211 = vmatprep.subr.mxu1 %v12913_v0 }
 0xee7   : > { %12179 = vmatmul.mubr.f32.vlgmr.msra.gmra.mxu0 %v7488_v3  ;;  %12204 = vmatmul.mubr.f32.vlgmr.msra.gmra.mxu1 %v7944_v19 }
 0xee8   : > { %12187 = vmatpush3.xpose.msra.mxu0 %v7907_v14  ;;  %12212 = vmatpush3.xpose.msra.mxu1 %v7907_v14 }
 0xee9   : > { %12188 = vmatprep.mubr.msk.f32.mxu0 %vm12914_vm0, %v12913_v0  ;;  %12196 = vmatprep.subr.mxu0 %v12913_v0 }
 0xeea   : > { %12213 = vmatprep.mubr.msk.f32.mxu1 %vm12914_vm0, %v12913_v0  ;;  %12221 = vmatprep.subr.mxu1 %v12913_v0 }
 0xeeb   : > { %12189 = vmatmul.mubr.f32.vlgmr.msra.gmra.mxu0 %v7946_v11  ;;  %12214 = vmatmul.mubr.f32.vlgmr.msra.gmra.mxu1 %v7942_v24 }
 0xeec   : > { %12197 = vmatpush3.xpose.msra.mxu0 %v14624_v17  ;;  %12222 = vmatpush3.msra.mxu1 %v8451_v4 }
 0xeed   : > { %12198 = vmatprep.mubr.msk.f32.mxu0 %vm12914_vm0, %v12913_v0  ;;  %12206 = vmatprep.subr.mxu0 %v12913_v0 }
 0xeee   : > { %12223 = vmatprep.mubr.msk.f32.mxu1 %vm12914_vm0, %v12913_v0  ;;  %12231 = vmatprep.subr.mxu1 %v12913_v0 }
 0xeef   : > { %12199 = vmatmul.mubr.f32.vlgmr.msra.gmra.mxu0 %v7943_v27 }
 0xef0   : > { %12207 = vmatpush3.xpose.msra.mxu0 %v7985_v32  ;;  %12208 = vmatprep.mubr.msk.f32.mxu0 %vm12914_vm0, %v12913_v0 }
 0xef1   : > { %12216 = vmatprep.subr.mxu0 %v12913_v0 }
 0xef3   : > { %12209 = vmatmul.mubr.f32.vlgmr.msra.gmra.mxu0 %v7942_v24 }
 0xef4   : > { %12217 = vmatpush3.msra.mxu0 %v14633_v49  ;;  %12218 = vmatprep.mubr.msk.f32.mxu0 %vm12914_vm0, %v12913_v0 }
 0xef5   : > { %12226 = vmatprep.subr.mxu0 %v12913_v0 }
 0xf97   : > { %v7570_v61 = vpop.f32.mrf.mxu1 }
 0xf99   : > { %v12165_v26 = vpop.f32.mrf.mxu1 }
 0xf9b   : > { %v7718_v41 = vpop.f32.mrf.mxu1 }
 0xf9d   : > { %v12175_v52 = vpop.f32.mrf.mxu1 }
 0xf9f   : > { %v7494_v13 = vpop.f32.mrf.mxu0  ;;  %v7864_v35 = vpop.f32.mrf.mxu1 }
 0xfa0   : > { %v7571_v15 = vadd.f32 %v7570_v61, %v7494_v13 }
 0xfa1   : > { %v12160_v18 = vpop.f32.mrf.mxu0  ;;  %v12185_v59 = vpop.f32.mrf.mxu1 }
 0xfa3   : > { %v7644_v23 = vpop.f32.mrf.mxu0  ;;  %v8024_v6 = vpop.f32.mrf.mxu1 }
 0xfa4   : > { %v7645_v16 = vadd.f32 %v7644_v23, %v7571_v15 }
 0xfa5   : > { %v12170_v25 = vpop.f32.mrf.mxu0  ;;  %v12195_v28 = vpop.f32.mrf.mxu1 }
 0xfa6   : > { %v7719_v30 = vadd.f32 %v7718_v41, %v7645_v16 }
 0xfa7   : > { %v7792_v40 = vpop.f32.mrf.mxu0  ;;  %v8172_v47 = vpop.f32.mrf.mxu1 }
 0xfa8   : > { %v7793_v53 = vadd.f32 %v7792_v40, %v7719_v30 }
 0xfa9   : > { %v12180_v55 = vpop.f32.mrf.mxu0  ;;  %v12205_v39 = vpop.f32.mrf.mxu1 }
 0xfaa   : > { %v14677_v31 = vadd.f32 %v7864_v35, %v7793_v53 }
 0xfab   : > { %v7948_v42 = vpop.f32.mrf.mxu0  ;;  %v8318_v60 = vpop.f32.mrf.mxu1 }
 0xfac   : > { %v8025_v5 = vadd.f32 %v8024_v6, %v7948_v42 }
 0xfad   : > { %v12190_v1 = vpop.f32.mrf.mxu0  ;;  %v12215_v51 = vpop.f32.mrf.mxu1 }
 0xfaf   : > { %v8098_v12 = vpop.f32.mrf.mxu0 }
 0xfb0   : > { %v8099_v62 = vadd.f32 %v8098_v12, %v8025_v5 }
 0xfb1   : > { %v12200_v7 = vpop.f32.mrf.mxu0 }
 0xfb2   : > { %v8173_v14 = vadd.f32 %v8172_v47, %v8099_v62 }
 0xfb3   : > { %v8246_v36 = vpop.f32.mrf.mxu0 }
 0xfb4   : > { %v8247_v17 = vadd.f32 %v8246_v36, %v8173_v14 }
 0xfb5   : > { %v12210_v22 = vpop.f32.mrf.mxu0 }
 0xfb6   : > { %v8319_v43 = vadd.f32 %v8318_v60, %v8247_v17 }
 0xfb8   : > { %v8322_v37 = vmul.f32 0.5, %v8319_v43 }
 0xfba   : > { %v8323_v3 = vsel %vm2816_vm2, %v8322_v37, -inf }
 0xfbb   : > { %8324 = vmax.xlane.f32.xlu0 %v8323_v3 }
0x1044   : > { %v8325_v32 = vpop.xlane.xlu0 %8324 }
0x1045   : > { %v8326_v54 = vsub.f32 %v8322_v37, %v8325_v32 }
0x1047   : > { %v8327_v58 = vmul.f32 1.442695, %v8326_v54 }
0x1049   : > { %12650 = vpow2.f32 %v8327_v58 }
0x1056   : > { %v12651_v20 = vpop.eup %12650 }
0x1057   : > { %v8329_v24 = vsel %vm2816_vm2, %v12651_v20, 0.0 }
0x1058   : > { %8330 = vadd.xlane.f32.xlu1 %v8329_v24 }
0x1069   : > { %8788 = vrot.lane.b32.xlu1 %v14302_v63, %s12921_s20 }
0x106d   : > { %8786 = vrot.lane.b32.xlu1 %v14271_v21, %s12921_s20 }
0x10e1   : > { %v8331_v29 = vpop.xlane.xlu1 %8330 }
0x10e2   : > { %12652 = vrcp.f32 %v8331_v29 }
0x10e5   : > { %v8789_v44 = vpop.permute.xlu1 %8788 }
0x10e6   : > { %v8792_v9 = vsel %vm2362_vm1, %v8789_v44, 0 }
0x10e7   : > { %v8825_v27 = vand.u32 4294901760, %v8792_v9 }
0x10e9   : > { %v8902_v48 = vsub.f32 %v8792_v9, %v8825_v27  ;;  %v8787_v10 = vpop.permute.xlu1 %8786 }
0x10ea   : > { %v8790_v61 = vsel %vm2362_vm1, %v8787_v10, 0 }
0x10eb   : > { %v8903_v4 = vand.u32 4294901760, %v8902_v48  ;;  %v8860_v21 = vand.u32 4294901760, %v8790_v61 }
0x10ed   : > { %v8904_v41 = vsub.f32 %v8902_v48, %v8903_v4  ;;  %v8861_v13 = vsub.f32 %v8790_v61, %v8860_v21 }
0x10ef   : > { %v12653_v46 = vpop.eup %12652  ;;  %v8905_v15 = vand.u32 4294901760, %v8904_v41  ;;  %v8862_v18 = vand.u32 4294901760, %v8861_v13 }
0x10f0   : > { %v8333_v19 = vmul.f32 %v12653_v46, %v12651_v20 }
0x10f2   : > { %v8338_v57 = vsel %vm2816_vm2, %v8333_v19, 0 }
0x10f3   : > { %v8406_v11 = vand.u32 4294901760, %v8338_v57 }
0x10f5   : > { %v8407_v63 = vsub.f32 %v8338_v57, %v8406_v11  ;;  %12224 = vmatmul.mubr.f32.vlgmr.msra.gmra.mxu1 %v8406_v11 }
0x10f6   : > { %12232 = vmatpush3.msra.mxu1 %v14633_v49  ;;  %12233 = vmatprep.mubr.msk.f32.mxu1 %vm12914_vm0, %v12913_v0 }
0x10f7   : > { %12241 = vmatprep.subr.mxu1 %v12913_v0  ;;  %v8408_v26 = vand.u32 4294901760, %v8407_v63 }
0x10f9   : > { %12234 = vmatmul.mubr.f32.vlgmr.msra.gmra.mxu1 %v8408_v26  ;;  %v8409_v52 = vsub.f32 %v8407_v63, %v8408_v26 }
0x10fa   : > { %12242 = vmatpush3.msra.mxu1 %v14633_v49  ;;  %12243 = vmatprep.mubr.msk.f32.mxu1 %vm12914_vm0, %v12913_v0  ;;  %v8863_v49 = vsub.f32 %v8861_v13, %v8862_v18 }
0x10fb   : > { %12251 = vmatprep.subr.mxu1 %v12913_v0  ;;  %v8410_v35 = vand.u32 4294901760, %v8409_v52 }
0x10fc   : > { %v8864_v59 = vand.u32 4294901760, %v8863_v49 }
0x10fd   : > { %12219 = vmatmul.mubr.f32.vlgmr.msra.gmra.mxu0 %v8410_v35  ;;  %12244 = vmatmul.mubr.f32.vlgmr.msra.gmra.mxu1 %v8406_v11  ;;  %v9760_v35 = vld [vmem:[#allocation11 + $0x70] sm:$0xff] }
0x10fe   : > { %12227 = vmatpush3.msra.mxu0 %v14639_v50  ;;  %12252 = vmatpush3.xpose.msra.mxu1 %v8905_v15  ;;  %v9759_v15 = vld [vmem:[#allocation11 + $0x68] sm:$0xff]  ;;  %v14757_v49 = vand.u32 4294901760, %v9760_v35 }
0x10ff   : > { %12228 = vmatprep.mubr.msk.f32.mxu0 %vm12914_vm0, %v12913_v0  ;;  %12236 = vmatprep.subr.mxu0 %v12913_v0 }
0x1100   : > { %12253 = vmatprep.mubr.msk.f32.mxu1 %vm12914_vm0, %v12913_v0  ;;  %12261 = vmatprep.subr.mxu1 %v12913_v0 }
0x1101   : > { %12229 = vmatmul.mubr.f32.vlgmr.msra.gmra.mxu0 %v8407_v63  ;;  %12254 = vmatmul.mubr.f32.vlgmr.msra.gmra.mxu1 %v8860_v21 }
0x1102   : > { %12237 = vmatpush3.msra.mxu0 %v8449_v45  ;;  %12262 = vmatpush3.xpose.msra.mxu1 %v8825_v27 }
0x1103   : > { %12238 = vmatprep.mubr.msk.f32.mxu0 %vm12914_vm0, %v12913_v0  ;;  %12246 = vmatprep.subr.mxu0 %v12913_v0 }
0x1104   : > { %12263 = vmatprep.mubr.msk.f32.mxu1 %vm12914_vm0, %v12913_v0  ;;  %12271 = vmatprep.subr.mxu1 %v12913_v0 }
0x1105   : > { %12239 = vmatmul.mubr.f32.vlgmr.msra.gmra.mxu0 %v8406_v11  ;;  %12264 = vmatmul.mubr.f32.vlgmr.msra.gmra.mxu1 %v8862_v18 }
0x1106   : > { %12247 = vmatpush3.xpose.msra.mxu0 %v8825_v27  ;;  %12272 = vmatpush3.xpose.msra.mxu1 %v8825_v27 }
0x1107   : > { %12248 = vmatprep.mubr.msk.f32.mxu0 %vm12914_vm0, %v12913_v0  ;;  %12256 = vmatprep.subr.mxu0 %v12913_v0 }
0x1108   : > { %12273 = vmatprep.mubr.msk.f32.mxu1 %vm12914_vm0, %v12913_v0  ;;  %12281 = vmatprep.subr.mxu1 %v12913_v0 }
0x1109   : > { %12249 = vmatmul.mubr.f32.vlgmr.msra.gmra.mxu0 %v8864_v59  ;;  %12274 = vmatmul.mubr.f32.vlgmr.msra.gmra.mxu1 %v8860_v21  ;;  %v14759_v59 = vand.u32 4294901760, %v9759_v15 }
0x110a   : > { %12257 = vmatpush3.xpose.msra.mxu0 %v8902_v48  ;;  %12258 = vmatprep.mubr.msk.f32.mxu0 %vm12914_vm0, %v12913_v0 }
0x110b   : > { %12266 = vmatprep.subr.mxu0 %v12913_v0  ;;  %12283 = vmatprep.mubr.msk.f32.mxu1 %vm12914_vm0, %v12913_v0 }
0x110d   : > { %12259 = vmatmul.mubr.f32.vlgmr.msra.gmra.mxu0 %v8861_v13  ;;  %v9761_v13 = vld [vmem:[#allocation11 + $0x78] sm:$0xff] }
0x110e   : > { %12267 = vmatpush3.xpose.msra.mxu0 %v8903_v4  ;;  %12268 = vmatprep.mubr.msk.f32.mxu0 %vm12914_vm0, %v12913_v0  ;;  %v14755_v18 = vand.u32 4294901760, %v9761_v13 }
0x110f   : > { %12276 = vmatprep.subr.mxu0 %v12913_v0 }
0x1111   : > { %12269 = vmatmul.mubr.f32.vlgmr.msra.gmra.mxu0 %v8860_v21 }
0x1112   : > { %12278 = vmatprep.mubr.msk.f32.mxu0 %vm12914_vm0, %v12913_v0 }
0x11b5   : > { %v8488_v50 = vpop.f32.mrf.mxu1 }
0x11b7   : > { %v12225_v45 = vpop.f32.mrf.mxu1 }
0x11b8   : > { %v9757_v45 = vld [vmem:[#allocation11 + $0x58] sm:$0xff] }
0x11b9   : > { %v8636_v23 = vpop.f32.mrf.mxu1 }
0x11bb   : > { %v12235_v6 = vpop.f32.mrf.mxu1 }
0x11bd   : > { %v8412_v16 = vpop.f32.mrf.mxu0  ;;  %v8782_v25 = vpop.f32.mrf.mxu1 }
0x11be   : > { %v8489_v40 = vadd.f32 %v8488_v50, %v8412_v16  ;;  %v9758_v50 = vld [vmem:[#allocation11 + $0x60] sm:$0xff]  ;;  %v14763_v16 = vand.u32 4294901760, %v9757_v45 }
0x11bf   : > { %v12220_v28 = vpop.f32.mrf.mxu0  ;;  %v12245_v30 = vpop.f32.mrf.mxu1  ;;  %v14761_v6 = vand.u32 4294901760, %v9758_v50 }
0x11c0   : > { %v9755_v28 = vld [vmem:[#allocation11 + $0x48] sm:$0xff]  ;;  %v9754_v30 = vld [vmem:[#allocation11 + $0x40] sm:$0xff] }
0x11c1   : > { %v8562_v47 = vpop.f32.mrf.mxu0  ;;  %v8942_v53 = vpop.f32.mrf.mxu1 }
0x11c2   : > { %v8563_v55 = vadd.f32 %v8562_v47, %v8489_v40  ;;  %v14768_v40 = vsub.f32 %v9761_v13, %v14755_v18  ;;  %v14771_v47 = vsub.f32 %v9760_v35, %v14757_v49 }
0x11c3   : > { %v12230_v39 = vpop.f32.mrf.mxu0  ;;  %v12255_v42 = vpop.f32.mrf.mxu1 }
0x11c4   : > { %v8637_v60 = vadd.f32 %v8636_v23, %v8563_v55  ;;  %v9756_v23 = vld [vmem:[#allocation11 + $0x50] sm:$0xff]  ;;  %v14777_v55 = vand.u32 4294901760, %v9755_v28  ;;  %v14780_v39 = vsub.f32 %v9758_v50, %v14761_v6  ;;  %v14783_v42 = vsub.f32 %v9757_v45, %v14763_v16 }
0x11c5   : > { %v8710_v1 = vpop.f32.mrf.mxu0  ;;  %v9090_v51 = vpop.f32.mrf.mxu1 }
0x11c6   : > { %v8711_v5 = vadd.f32 %v8710_v1, %v8637_v60  ;;  %v14789_v1 = vand.u32 4294901760, %v9754_v30 }
0x11c7   : > { %v12240_v12 = vpop.f32.mrf.mxu0  ;;  %v12265_v62 = vpop.f32.mrf.mxu1 }
0x11c8   : > { %v8783_v7 = vadd.f32 %v8782_v25, %v8711_v5  ;;  %v14765_v25 = vand.u32 4294901760, %v9756_v23  ;;  %v9863_v5 = vand.u32 4294901760, %v14771_v47  ;;  %v9877_v62 = vand.u32 4294901760, %v14780_v39 }
0x11c9   : > { %v8866_v14 = vpop.f32.mrf.mxu0  ;;  %v9236_v36 = vpop.f32.mrf.mxu1 }
0x11ca   : > { %v8943_v43 = vadd.f32 %v8942_v53, %v8866_v14  ;;  %v14774_v53 = vsub.f32 %v9759_v15, %v14759_v59  ;;  %v14787_v60 = vsub.f32 %v9756_v23, %v14765_v25  ;;  %v14799_v14 = vsub.f32 %v9755_v28, %v14777_v55 }
0x11cb   : > { %v12250_v17 = vpop.f32.mrf.mxu0  ;;  %v12275_v22 = vpop.f32.mrf.mxu1 }
0x11cc   : > { %v9870_v12 = vand.u32 4294901760, %v14774_v53  ;;  %v9864_v17 = vsub.f32 %v14771_v47, %v9863_v5 }
0x11cd   : > { %v9016_v37 = vpop.f32.mrf.mxu0 }
0x11ce   : > { %v9017_v3 = vadd.f32 %v9016_v37, %v8943_v43  ;;  %v9871_v22 = vsub.f32 %v14774_v53, %v9870_v12  ;;  %v9891_v43 = vand.u32 4294901760, %v14787_v60  ;;  %v14814_v37 = vsub.f32 %v9754_v30, %v14789_v1 }
0x11cf   : > { %v12260_v32 = vpop.f32.mrf.mxu0 }
0x11d0   : > { %v9091_v54 = vadd.f32 %v9090_v51, %v9017_v3  ;;  %v9856_v51 = vand.u32 4294901760, %v14768_v40  ;;  %v9753_v3 = vld [vmem:[#allocation11 + $0x38] sm:$0xff]  ;;  %v9752_v32 = vld [vmem:[#allocation11 + $0x30] sm:$0xff] }
0x11d1   : > { %v9164_v58 = vpop.f32.mrf.mxu0 }
0x11d2   : > { %v9165_v20 = vadd.f32 %v9164_v58, %v9091_v54  ;;  %v9751_v54 = vld [vmem:[#allocation11 + $0x28] sm:$0xff] }
0x11d3   : > { %v12270_v24 = vpop.f32.mrf.mxu0 }
0x11d4   : > { %v9237_v29 = vadd.f32 %v9236_v36, %v9165_v20  ;;  %v9857_v36 = vsub.f32 %v14768_v40, %v9856_v51  ;;  %v9865_v20 = vand.u32 4294901760, %v9864_v17  ;;  %v9878_v24 = vsub.f32 %v14780_v39, %v9877_v62 }
0x11d6   : > { %v9240_v44 = vmul.f32 0.5, %v9237_v29  ;;  %v9858_v58 = vand.u32 4294901760, %v9857_v36 }
0x11d8   : > { %v9241_v9 = vsel %vm2816_vm2, %v9240_v44, -inf }
0x11d9   : > { %9242 = vmax.xlane.f32.xlu0 %v9241_v9  ;;  %v9750_v9 = vld [vmem:[#allocation11 + $0x20] sm:$0xff] }
0x11ef   : > { %9252 = vrot.lane.b32.xlu0 %v14328_v33, %s12921_s20  ;;  %s10428_s20 = scalar_lea.sflag [#allocation4], %s13176_s9 }
0x11f3   : > { %9705 = vrot.lane.b32.xlu0 %v14447_v56, %s12922_s2  ;;  %s12823_s2 = scalar_lea.vmem %s10442_s5, 128 }
0x11f4   : > { %p12824_p2 = scmp.ne.s32.totalorder %s10442_s5, %s12823_s2 }
0x11f6   : > { %p12825_p11 = pnand %p12824_p2, %p15195_p9 }
0x11f7   : > { %9709 = vrot.lane.b32.xlu0 %v14497_v8, %s12923_s23  ;;  %s12929_s23 = smov [#allocation13]  }
0x11f8   : > { %p12826_p13 = pneg %p12825_p11 }
0x11fb   : > { %9713 = vrot.lane.b32.xlu0 %v14562_v2, %s12924_s10  ;;  %s12827_s10 = sshll.u32 %s12929_s23, 4  ;;  %s12828_s10 = int_to_ptr.vmem [resolvable:$false] %s12827_s10 }
0x11fc   : > { %s12829_s30 = scalar_lea.vmem %s12828_s10, 256  ;;  %p12830_p1 = scmp.lt.s32.totalorder %s10442_s5, %s12828_s10 }
0x11fd   : > { %p12831_p4 = scmp.lt.s32.totalorder %s12829_s30, %s12823_s2 }
0x11ff   : > { %9721 = vrot.lane.b32.xlu0 %v14677_v31, %s12925_s13  ;;  %p12832_p6 = por %p12831_p4, %p12830_p1 }
0x1201   : > { %p12833_p10 = pnand %p12832_p6, %p12826_p13 }
0x1203   : > { %9725 = vrot.lane.b32.xlu0 %v8783_v7, %s12926_s12  ;;  %v9884_v7 = vand.u32 4294901760, %v14783_v42 }
0x1205   : > { %v9885_v29 = vsub.f32 %v14783_v42, %v9884_v7 }
0x1262   : > { %v9243_v27 = vpop.xlane.xlu0 %9242 }
0x1263   : > { %v9244_v46 = vsub.f32 %v9240_v44, %v9243_v27  ;;  %v9898_v44 = vand.u32 4294901760, %v14799_v14  ;;  %v9872_v27 = vand.u32 4294901760, %v9871_v22 }
0x1265   : > { %v9245_v48 = vmul.f32 1.442695, %v9244_v46  ;;  %v14826_v46 = vand.u32 4294901760, %v9753_v3 }
0x1266   : > { %v9253_v19 = vpop.permute.xlu0 %9252 }
0x1267   : > { %12654 = vpow2.f32 %v9245_v48  ;;  %v9289_v33 = vand.u32 4294901760, %v9253_v19  ;;  %v14828_v48 = vand.u32 4294901760, %v9752_v32 }
0x1269   : > { %v9366_v10 = vsub.f32 %v9253_v19, %v9289_v33  ;;  %12277 = vmatpush3.msra.mxu0 %v9289_v33  ;;  %v14830_v19 = vand.u32 4294901760, %v9751_v54 }
0x126a   : > { %12286 = vmatprep.subr.mxu0 %v12913_v0 }
0x126b   : > { %v9367_v56 = vand.u32 4294901760, %v9366_v10 }
0x126d   : > { %v9368_v8 = vsub.f32 %v9366_v10, %v9367_v56 }
0x126f   : > { %v9369_v57 = vand.u32 4294901760, %v9368_v8  ;;  %v9879_v8 = vand.u32 4294901760, %v9878_v24 }
0x1271   : > { %12282 = vmatpush3.msra.mxu1 %v9369_v57  ;;  %v14839_v57 = vsub.f32 %v9753_v3, %v14826_v46 }
0x1272   : > { %12291 = vmatprep.subr.mxu1 %v12913_v0 }
0x1274   : > { %v12655_v2 = vpop.eup %12654 }
0x1275   : > { %v9247_v31 = vsel %vm2816_vm2, %v12655_v2, 0.0 }
0x1276   : > { %9248 = vadd.xlane.f32.xlu1 %v9247_v31  ;;  %v14845_v31 = vand.u32 4294901760, %v9750_v9 }
0x1278   : > { %v14867_v13 = vsub.f32 %v9750_v9, %v14845_v31 }
0x127a   : > { %v9933_v36 = vand.u32 4294901760, %v14867_v13 }
0x1287   : > { %9717 = vrot.lane.b32.xlu1 %v14612_v34, %s12927_s8 }
0x12ff   : > { %v9249_v11 = vpop.xlane.xlu1 %9248 }
0x1300   : > { %12656 = vrcp.f32 %v9249_v11  ;;  %v9899_v11 = vsub.f32 %v14799_v14, %v9898_v44 }
0x1302   : > { %v9900_v15 = vand.u32 4294901760, %v9899_v11 }
0x130d   : > { %v12657_v4 = vpop.eup %12656 }
0x130e   : > { %v9251_v61 = vmul.f32 %v12657_v4, %v12655_v2  ;;  %v14843_v2 = vsub.f32 %v9752_v32, %v14828_v48  ;;  %v9748_v4 = vld [vmem:[#allocation11 + $0x10] sm:$0xff] }
0x130f   : > { %v14869_v35 = vand.u32 4294901760, %v9748_v4 }
0x1310   : > { %v9256_v63 = vsel %vm2816_vm2, %v9251_v61, 0  ;;  %v9886_v61 = vand.u32 4294901760, %v9885_v29 }
0x1311   : > { %v9324_v21 = vand.u32 4294901760, %v9256_v63  ;;  %v14889_v17 = vsub.f32 %v9748_v4, %v14869_v35 }
0x1313   : > { %v9325_v26 = vsub.f32 %v9256_v63, %v9324_v21  ;;  %12284 = vmatmul.mubr.f32.vlgmr.msra.gmra.mxu1 %v9324_v21  ;;  %v9912_v63 = vand.u32 4294901760, %v14839_v57 }
0x1314   : > { %12292 = vmatpush3.msra.mxu1 %v9289_v33  ;;  %12293 = vmatprep.mubr.msk.f32.mxu1 %vm12914_vm0, %v12913_v0 }
0x1315   : > { %12301 = vmatprep.subr.mxu1 %v12913_v0  ;;  %v9326_v41 = vand.u32 4294901760, %v9325_v26  ;;  %v9913_v50 = vsub.f32 %v14839_v57, %v9912_v63 }
0x1317   : > { %12294 = vmatmul.mubr.f32.vlgmr.msra.gmra.mxu1 %v9326_v41  ;;  %v9327_v52 = vsub.f32 %v9325_v26, %v9326_v41  ;;  %v9914_v22 = vand.u32 4294901760, %v9913_v50 }
0x1318   : > { %12302 = vmatpush3.msra.mxu1 %v9289_v33  ;;  %12303 = vmatprep.mubr.msk.f32.mxu1 %vm12914_vm0, %v12913_v0  ;;  %v9892_v33 = vsub.f32 %v14787_v60, %v9891_v43 }
0x1319   : > { %v9328_v34 = vand.u32 4294901760, %v9327_v52  ;;  %12341 = vmatprep.subr.mxu1 %v12913_v0 }
0x131a   : > { %v9893_v41 = vand.u32 4294901760, %v9892_v33 }
0x131b   : > { %12279 = vmatmul.mubr.f32.vlgmr.msra.gmra.mxu0 %v9328_v34  ;;  %12304 = vmatmul.mubr.f32.vlgmr.msra.gmra.mxu1 %v9324_v21  ;;  %v9919_v34 = vand.u32 4294901760, %v14843_v2 }
0x131c   : > { %12287 = vmatpush3.msra.mxu0 %v9366_v10  ;;  %12288 = vmatprep.mubr.msk.f32.mxu0 %vm12914_vm0, %v12913_v0  ;;  %v9905_v10 = vand.u32 4294901760, %v14814_v37 }
0x131d   : > { %12296 = vmatprep.subr.mxu0 %v12913_v0  ;;  %12373 = vmatprep.mubr.msk.f32.mxu1 %vm12914_vm0, %v12913_v0  ;;  %v9920_v30 = vsub.f32 %v14843_v2, %v9919_v34 }
0x131e   : > { %12342 = vmatpush3.msra.mxu1 %v9858_v58  ;;  %v9906_v52 = vsub.f32 %v14814_v37, %v9905_v10  ;;  %v9934_v58 = vsub.f32 %v14867_v13, %v9933_v36 }
0x131f   : > { %12289 = vmatmul.mubr.f32.vlgmr.msra.gmra.mxu0 %v9325_v26  ;;  %12343 = vmatprep.subr.mxu1 %v12913_v0 }
0x1320   : > { %12297 = vmatpush3.msra.mxu0 %v9367_v56  ;;  %12298 = vmatprep.mubr.msk.f32.mxu0 %vm12914_vm0, %v12913_v0  ;;  %v9749_v56 = vld [vmem:[#allocation11 + $0x18] sm:$0xff]  ;;  %v9907_v28 = vand.u32 4294901760, %v9906_v52  ;;  %v9935_v9 = vand.u32 4294901760, %v9934_v58 }
0x1321   : > { %12306 = vmatprep.subr.mxu0 %v12913_v0  ;;  %12344 = vmatpush3.msra.mxu1 %v9865_v20  ;;  %v14857_v26 = vand.u32 4294901760, %v9749_v56  ;;  %v15165_v20 = vand.u32 4294901760, %v14889_v17 }
0x1322   : > { %12345 = vmatprep.subr.mxu1 %v12913_v0 }
0x1323   : > { %12299 = vmatmul.mubr.f32.vlgmr.msra.gmra.mxu0 %v9324_v21  ;;  %12346 = vmatpush3.msra.mxu1 %v9872_v27  ;;  %v14855_v21 = vsub.f32 %v9751_v54, %v14830_v19  ;;  %v14879_v23 = vsub.f32 %v9749_v56, %v14857_v26  ;;  %v9921_v54 = vand.u32 4294901760, %v9920_v30  ;;  %v9948_v27 = vsub.f32 %v14889_v17, %v15165_v20 }
0x1324   : > { %12338 = vmatprep.mubr.msk.f32.mxu0 %vm12914_vm0, %v12913_v0  ;;  %12307 = vmatpush3.msra.mxu0 %v14755_v18 }
0x1325   : > { %12308 = vmatprep.subr.mxu0 %v12913_v0  ;;  %12347 = vmatprep.subr.mxu1 %v12913_v0  ;;  %v9926_v45 = vand.u32 4294901760, %v14855_v21  ;;  %v15166_v32 = vand.u32 4294901760, %v14879_v23  ;;  %v9949_v56 = vand.u32 4294901760, %v9948_v27 }
0x1326   : > { %12309 = vmatpush3.msra.mxu0 %v14757_v49  ;;  %12348 = vmatpush3.msra.mxu1 %v9879_v8  ;;  %v9747_v8 = vld [vmem:[#allocation11 + $0x8] sm:$0xff] }
0x1327   : > { %12310 = vmatprep.subr.mxu0 %v12913_v0  ;;  %12349 = vmatprep.subr.mxu1 %v12913_v0  ;;  %v9927_v3 = vsub.f32 %v14855_v21, %v9926_v45  ;;  %v9941_v29 = vsub.f32 %v14879_v23, %v15166_v32  ;;  %v14923_v11 = vand.u32 4294901760, %v9747_v8 }
0x1328   : > { %12311 = vmatpush3.msra.mxu0 %v14759_v59  ;;  %12350 = vmatpush3.msra.mxu1 %v9886_v61  ;;  %v9746_v61 = vld [vmem:[#allocation11] sm:$0xff] }
0x1329   : > { %12312 = vmatprep.subr.mxu0 %v12913_v0  ;;  %12351 = vmatprep.subr.mxu1 %v12913_v0  ;;  %v9928_v24 = vand.u32 4294901760, %v9927_v3  ;;  %v9942_v33 = vand.u32 4294901760, %v9941_v29  ;;  %v14928_v52 = vand.u32 4294901760, %v9746_v61 }
0x132a   : > { %12313 = vmatpush3.msra.mxu0 %v14761_v6  ;;  %12352 = vmatpush3.msra.mxu1 %v9893_v41  ;;  %v14926_v41 = vsub.f32 %v9747_v8, %v14923_v11 }
0x132b   : > { %12314 = vmatprep.subr.mxu0 %v12913_v0  ;;  %12353 = vmatprep.subr.mxu1 %v12913_v0 }
0x132c   : > { %12315 = vmatpush3.msra.mxu0 %v14763_v16  ;;  %12354 = vmatpush3.msra.mxu1 %v9900_v15  ;;  %v15164_v50 = vand.u32 4294901760, %v14926_v41 }
0x132d   : > { %12316 = vmatprep.subr.mxu0 %v12913_v0  ;;  %12355 = vmatprep.subr.mxu1 %v12913_v0 }
0x132e   : > { %12317 = vmatpush3.msra.mxu0 %v14765_v25  ;;  %12356 = vmatpush3.msra.mxu1 %v9907_v28  ;;  %v14934_v28 = vsub.f32 %v9746_v61, %v14928_v52 }
0x132f   : > { %12318 = vmatprep.subr.mxu0 %v12913_v0  ;;  %12357 = vmatprep.subr.mxu1 %v12913_v0 }
0x1330   : > { %12319 = vmatpush3.msra.mxu0 %v14777_v55  ;;  %12358 = vmatpush3.msra.mxu1 %v9914_v22  ;;  %v9955_v22 = vsub.f32 %v14926_v41, %v15164_v50  ;;  %v15167_v3 = vand.u32 4294901760, %v14934_v28 }
0x1331   : > { %12320 = vmatprep.subr.mxu0 %v12913_v0  ;;  %12359 = vmatprep.subr.mxu1 %v12913_v0 }
0x1332   : > { %12321 = vmatpush3.msra.mxu0 %v14789_v1  ;;  %12360 = vmatpush3.msra.mxu1 %v9921_v54  ;;  %v9956_v58 = vand.u32 4294901760, %v9955_v22 }
0x1333   : > { %12322 = vmatprep.subr.mxu0 %v12913_v0  ;;  %12361 = vmatprep.subr.mxu1 %v12913_v0 }
0x1334   : > { %12323 = vmatpush3.msra.mxu0 %v14826_v46  ;;  %12362 = vmatpush3.msra.mxu1 %v9928_v24  ;;  %v9962_v24 = vsub.f32 %v14934_v28, %v15167_v3 }
0x1335   : > { %12324 = vmatprep.subr.mxu0 %v12913_v0  ;;  %12363 = vmatprep.subr.mxu1 %v12913_v0 }
0x1336   : > { %12325 = vmatpush3.msra.mxu0 %v14828_v48  ;;  %12364 = vmatpush3.msra.mxu1 %v9935_v9  ;;  %v9963_v27 = vand.u32 4294901760, %v9962_v24 }
0x1337   : > { %12326 = vmatprep.subr.mxu0 %v12913_v0  ;;  %12365 = vmatprep.subr.mxu1 %v12913_v0 }
0x1338   : > { %12327 = vmatpush3.msra.mxu0 %v14830_v19  ;;  %12366 = vmatpush3.msra.mxu1 %v9942_v33 }
0x1339   : > { %12328 = vmatprep.subr.mxu0 %v12913_v0  ;;  %12367 = vmatprep.subr.mxu1 %v12913_v0 }
0x133a   : > { %12329 = vmatpush3.msra.mxu0 %v14845_v31  ;;  %12368 = vmatpush3.msra.mxu1 %v9949_v56 }
0x133b   : > { %12330 = vmatprep.subr.mxu0 %v12913_v0  ;;  %12369 = vmatprep.subr.mxu1 %v12913_v0 }
0x133c   : > { %12331 = vmatpush3.msra.mxu0 %v14857_v26  ;;  %12370 = vmatpush3.msra.mxu1 %v9956_v58  ;;  %v9706_v58 = vpop.permute.xlu0 %9705 }
0x133d   : > { %12332 = vmatprep.subr.mxu0 %v12913_v0  ;;  %12371 = vmatprep.subr.mxu1 %v12913_v0 }
0x133e   : > { %12333 = vmatpush3.msra.mxu0 %v14869_v35  ;;  %12372 = vmatpush3.msra.mxu1 %v9963_v27 }
0x133f   : > { %12334 = vmatprep.subr.mxu0 %v12913_v0  ;;  %12411 = vmatprep.subr.mxu1 %v12913_v0 }
0x1340   : > { %12335 = vmatpush3.msra.mxu0 %v14923_v11  ;;  %v9710_v24 = vpop.permute.xlu0 %9709 }
0x1341   : > { %12336 = vmatprep.subr.mxu0 %v12913_v0 }
0x1342   : > { %12337 = vmatpush3.msra.mxu0 %v14928_v52 }
0x1343   : > { %12376 = vmatprep.subr.mxu0 %v12913_v0 }
0x13d3   : > { %v9406_v4 = vpop.f32.mrf.mxu1 }
0x13d5   : > { %v12285_v15 = vpop.f32.mrf.mxu1 }
0x13d7   : > { %v9554_v30 = vpop.f32.mrf.mxu1 }
0x13d9   : > { %v12295_v54 = vpop.f32.mrf.mxu1 }
0x13db   : > { %v9330_v29 = vpop.f32.mrf.mxu0  ;;  %v9700_v9 = vpop.f32.mrf.mxu1 }
0x13dc   : > { %v9407_v8 = vadd.f32 %v9406_v4, %v9330_v29  ;;  %v9732_v4 = vsel %vm2362_vm1, %v14382_v38, %v9706_v58  ;;  %v9718_v29 = vpop.permute.xlu1 %9717 }
0x13dd   : > { %v12280_v33 = vpop.f32.mrf.mxu0  ;;  %v12305_v56 = vpop.f32.mrf.mxu1  ;;  %v9733_v27 = vsel %vm2816_vm2, %v9732_v4, %v9710_v24 }
0x13de   : > { %v9714_v33 = vpop.permute.xlu0 %9713 }
0x13df   : > { %v9480_v61 = vpop.f32.mrf.mxu0 }
0x13e0   : > { %v9481_v15 = vadd.f32 %v9480_v61, %v9407_v8  ;;  %v9735_v8 = vsel %vm9734_vm3, %v9733_v27, %v9714_v33 }
0x13e1   : > { %v12290_v54 = vpop.f32.mrf.mxu0 }
0x13e2   : > { %v9555_v22 = vadd.f32 %v9554_v30, %v9481_v15  ;;  %v9722_v56 = vpop.permute.xlu0 %9721  ;;  %v9737_v30 = vsel %vm9736_vm4, %v9735_v8, %v9718_v29 }
0x13e3   : > { %v9628_v50 = vpop.f32.mrf.mxu0 }
0x13e4   : > { %v9629_v20 = vadd.f32 %v9628_v50, %v9555_v22 }
0x13e5   : > { %v12300_v32 = vpop.f32.mrf.mxu0 }
0x13e6   : > { %v9701_v3 = vadd.f32 %v9700_v9, %v9629_v20  ;;  %v9726_v50 = vpop.permute.xlu0 %9725  ;;  %v9739_v32 = vsel %vm9738_vm5, %v9737_v30, %v9722_v56 }
0x13e7   : > { %v9741_v20 = vsel %vm9740_vm6, %v9739_v32, %v9726_v50 }
0x13e8   : > { %9729 = vrot.lane.b32.xlu0 %v9701_v3, %s12928_s11 }
0x145a   : > { %v9730_v3 = vpop.permute.xlu0 %9729 }
0x145b   : > { %v9743_v9 = vsel %vm9742_vm7, %v9741_v20, %v9730_v3 }
0x145c   : > { %v9745_v61 = vsel %vm9744_vm8, %v9743_v9, 0.0 }
0x145d   : > { %v14950_v15 = vand.u32 4294901760, %v9745_v61 }
0x145f   : > { %v14953_v38 = vsub.f32 %v9745_v61, %v14950_v15  ;;  %12374 = vmatmul.mubr.f32.vlgmr.msra.gmra.mxu1 %v14950_v15 }
0x1460   : > { %12412 = vmatpush3.msra.mxu1 %v14755_v18  ;;  %12443 = vmatprep.mubr.msk.f32.mxu1 %vm12914_vm0, %v12913_v0 }
0x1461   : > { %v9845_v54 = vand.u32 4294901760, %v14953_v38  ;;  %12413 = vmatprep.subr.mxu1 %v12913_v0 }
0x1462   : > { %12414 = vmatpush3.msra.mxu1 %v14757_v49 }
0x1463   : > { %v9846_v22 = vsub.f32 %v14953_v38, %v9845_v54  ;;  %12415 = vmatprep.subr.mxu1 %v12913_v0 }
0x1464   : > { %12416 = vmatpush3.msra.mxu1 %v14759_v59 }
0x1465   : > { %v9847_v58 = vand.u32 4294901760, %v9846_v22  ;;  %12417 = vmatprep.subr.mxu1 %v12913_v0 }
0x1466   : > { %12418 = vmatpush3.msra.mxu1 %v14761_v6 }
0x1467   : > { %12419 = vmatprep.subr.mxu1 %v12913_v0  ;;  %12339 = vmatmul.mubr.f32.vlgmr.msra.gmra.mxu0 %v9847_v58 }
0x1468   : > { %12377 = vmatpush3.msra.mxu0 %v14768_v40  ;;  %12420 = vmatpush3.msra.mxu1 %v14763_v16 }
0x1469   : > { %12378 = vmatprep.subr.mxu0 %v12913_v0  ;;  %12421 = vmatprep.subr.mxu1 %v12913_v0 }
0x146a   : > { %12379 = vmatpush3.msra.mxu0 %v14771_v47  ;;  %12422 = vmatpush3.msra.mxu1 %v14765_v25 }
0x146b   : > { %12380 = vmatprep.subr.mxu0 %v12913_v0  ;;  %12423 = vmatprep.subr.mxu1 %v12913_v0 }
0x146c   : > { %12381 = vmatpush3.msra.mxu0 %v14774_v53  ;;  %12424 = vmatpush3.msra.mxu1 %v14777_v55 }
0x146d   : > { %12382 = vmatprep.subr.mxu0 %v12913_v0  ;;  %12425 = vmatprep.subr.mxu1 %v12913_v0 }
0x146e   : > { %12383 = vmatpush3.msra.mxu0 %v14780_v39  ;;  %12426 = vmatpush3.msra.mxu1 %v14789_v1 }
0x146f   : > { %12384 = vmatprep.subr.mxu0 %v12913_v0  ;;  %12427 = vmatprep.subr.mxu1 %v12913_v0 }
0x1470   : > { %12385 = vmatpush3.msra.mxu0 %v14783_v42  ;;  %12428 = vmatpush3.msra.mxu1 %v14826_v46 }
0x1471   : > { %12386 = vmatprep.subr.mxu0 %v12913_v0  ;;  %12429 = vmatprep.subr.mxu1 %v12913_v0 }
0x1472   : > { %12387 = vmatpush3.msra.mxu0 %v14787_v60  ;;  %12430 = vmatpush3.msra.mxu1 %v14828_v48 }
0x1473   : > { %12388 = vmatprep.subr.mxu0 %v12913_v0  ;;  %12431 = vmatprep.subr.mxu1 %v12913_v0 }
0x1474   : > { %12389 = vmatpush3.msra.mxu0 %v14799_v14  ;;  %12432 = vmatpush3.msra.mxu1 %v14830_v19 }
0x1475   : > { %12390 = vmatprep.subr.mxu0 %v12913_v0  ;;  %12433 = vmatprep.subr.mxu1 %v12913_v0 }
0x1476   : > { %12391 = vmatpush3.msra.mxu0 %v14814_v37  ;;  %12434 = vmatpush3.msra.mxu1 %v14845_v31 }
0x1477   : > { %12392 = vmatprep.subr.mxu0 %v12913_v0  ;;  %12435 = vmatprep.subr.mxu1 %v12913_v0 }
0x1478   : > { %12393 = vmatpush3.msra.mxu0 %v14839_v57  ;;  %12436 = vmatpush3.msra.mxu1 %v14857_v26 }
0x1479   : > { %12394 = vmatprep.subr.mxu0 %v12913_v0  ;;  %12437 = vmatprep.subr.mxu1 %v12913_v0 }
0x147a   : > { %12395 = vmatpush3.msra.mxu0 %v14843_v2  ;;  %12438 = vmatpush3.msra.mxu1 %v14869_v35 }
0x147b   : > { %12396 = vmatprep.subr.mxu0 %v12913_v0  ;;  %12439 = vmatprep.subr.mxu1 %v12913_v0 }
0x147c   : > { %12397 = vmatpush3.msra.mxu0 %v14855_v21  ;;  %12440 = vmatpush3.msra.mxu1 %v14923_v11 }
0x147d   : > { %12398 = vmatprep.subr.mxu0 %v12913_v0  ;;  %12441 = vmatprep.subr.mxu1 %v12913_v0 }
0x147e   : > { %12399 = vmatpush3.msra.mxu0 %v14867_v13  ;;  %12442 = vmatpush3.msra.mxu1 %v14928_v52 }
0x147f   : > { %12400 = vmatprep.subr.mxu0 %v12913_v0  ;;  %12444 = vmatmul.mubr.f32.vlgmr.msra.gmra.mxu1 %v9845_v54 }
0x1480   : > { %12481 = vmatprep.subr.mxu1 %v12913_v0  ;;  %12401 = vmatpush3.msra.mxu0 %v14879_v23 }
0x1481   : > { %12482 = vmatpush3.msra.mxu1 %v14755_v18  ;;  %12402 = vmatprep.subr.mxu0 %v12913_v0  ;;  %v15191_v18 = vand.u32 4294901760, %v14879_v23 }
0x1482   : > { %12483 = vmatprep.subr.mxu1 %v12913_v0  ;;  %12403 = vmatpush3.msra.mxu0 %v14889_v17 }
0x1483   : > { %12484 = vmatpush3.msra.mxu1 %v14757_v49  ;;  %12404 = vmatprep.subr.mxu0 %v12913_v0  ;;  %v15192_v49 = vand.u32 4294901760, %v14889_v17 }
0x1484   : > { %12485 = vmatprep.subr.mxu1 %v12913_v0  ;;  %12405 = vmatpush3.msra.mxu0 %v14926_v41 }
0x1485   : > { %12486 = vmatpush3.msra.mxu1 %v14759_v59  ;;  %12406 = vmatprep.subr.mxu0 %v12913_v0  ;;  %v15193_v59 = vand.u32 4294901760, %v14926_v41 }
0x1486   : > { %12487 = vmatprep.subr.mxu1 %v12913_v0  ;;  %12407 = vmatpush3.msra.mxu0 %v14934_v28 }
0x1487   : > { %12408 = vmatprep.mubr.msk.f32.mxu0 %vm12914_vm0, %v12913_v0  ;;  %12488 = vmatpush3.msra.mxu1 %v14761_v6  ;;  %v15194_v6 = vand.u32 4294901760, %v14934_v28 }
0x1488   : > { %12409 = vmatmul.mubr.f32.vlgmr.msra.gmra.mxu0 %v14953_v38  ;;  %12446 = vmatprep.subr.mxu0 %v12913_v0 }
0x1489   : > { %12489 = vmatprep.subr.mxu1 %v12913_v0  ;;  %12447 = vmatpush3.msra.mxu0 %v9856_v51 }
0x148a   : > { %12490 = vmatpush3.msra.mxu1 %v14763_v16  ;;  %12448 = vmatprep.subr.mxu0 %v12913_v0 }
0x148b   : > { %12491 = vmatprep.subr.mxu1 %v12913_v0  ;;  %12449 = vmatpush3.msra.mxu0 %v9863_v5 }
0x148c   : > { %12492 = vmatpush3.msra.mxu1 %v14765_v25  ;;  %12450 = vmatprep.subr.mxu0 %v12913_v0 }
0x148d   : > { %12493 = vmatprep.subr.mxu1 %v12913_v0  ;;  %12451 = vmatpush3.msra.mxu0 %v9870_v12 }
0x148e   : > { %12494 = vmatpush3.msra.mxu1 %v14777_v55  ;;  %12452 = vmatprep.subr.mxu0 %v12913_v0 }
0x148f   : > { %12495 = vmatprep.subr.mxu1 %v12913_v0  ;;  %12453 = vmatpush3.msra.mxu0 %v9877_v62 }
0x1490   : > { %12496 = vmatpush3.msra.mxu1 %v14789_v1  ;;  %12454 = vmatprep.subr.mxu0 %v12913_v0 }
0x1491   : > { %12497 = vmatprep.subr.mxu1 %v12913_v0  ;;  %12455 = vmatpush3.msra.mxu0 %v9884_v7 }
0x1492   : > { %12498 = vmatpush3.msra.mxu1 %v14826_v46  ;;  %12456 = vmatprep.subr.mxu0 %v12913_v0 }
0x1493   : > { %12499 = vmatprep.subr.mxu1 %v12913_v0  ;;  %12457 = vmatpush3.msra.mxu0 %v9891_v43  ;;  %v12662_v43 = vld [vmem:[%s328_s17] sm:$0xff] }
0x1494   : > { %12500 = vmatpush3.msra.mxu1 %v14828_v48  ;;  %12458 = vmatprep.subr.mxu0 %v12913_v0 }
0x1495   : > { %12501 = vmatprep.subr.mxu1 %v12913_v0  ;;  %12459 = vmatpush3.msra.mxu0 %v9898_v44 }
0x1496   : > { %12502 = vmatpush3.msra.mxu1 %v14830_v19  ;;  %12460 = vmatprep.subr.mxu0 %v12913_v0 }
0x1497   : > { %12503 = vmatprep.subr.mxu1 %v12913_v0  ;;  %12461 = vmatpush3.msra.mxu0 %v9905_v10 }
0x1498   : > { %12504 = vmatpush3.msra.mxu1 %v14845_v31  ;;  %12462 = vmatprep.subr.mxu0 %v12913_v0 }
0x1499   : > { %12505 = vmatprep.subr.mxu1 %v12913_v0  ;;  %12463 = vmatpush3.msra.mxu0 %v9912_v63 }
0x149a   : > { %12506 = vmatpush3.msra.mxu1 %v14857_v26  ;;  %12464 = vmatprep.subr.mxu0 %v12913_v0  ;;  %v10591_v26 = vld [vmem:[%s15158_s6] ss:$0 sm:$0xff] }
0x149b   : > { %12507 = vmatprep.subr.mxu1 %v12913_v0  ;;  %12465 = vmatpush3.msra.mxu0 %v9919_v34 }
0x149c   : > { %12508 = vmatpush3.msra.mxu1 %v14869_v35  ;;  %12466 = vmatprep.subr.mxu0 %v12913_v0 }
0x149d   : > { %12509 = vmatprep.subr.mxu1 %v12913_v0  ;;  %12467 = vmatpush3.msra.mxu0 %v9926_v45 }
0x149e   : > { %12510 = vmatpush3.msra.mxu1 %v14923_v11  ;;  %12468 = vmatprep.subr.mxu0 %v12913_v0 }
0x149f   : > { %12511 = vmatprep.subr.mxu1 %v12913_v0  ;;  %12469 = vmatpush3.msra.mxu0 %v9933_v36 }
0x14a0   : > { %12512 = vmatpush3.msra.mxu1 %v14928_v52  ;;  %12513 = vmatprep.mubr.msk.f32.mxu1 %vm12914_vm0, %v12913_v0 }
0x14a1   : > { %12470 = vmatprep.subr.mxu0 %v12913_v0  ;;  %12514 = vmatmul.mubr.f32.vlgmr.msra.gmra.mxu1 %v14950_v15 }
0x14a2   : > { %12471 = vmatpush3.msra.mxu0 %v15191_v18  ;;  %12478 = vmatprep.mubr.msk.f32.mxu0 %vm12914_vm0, %v12913_v0 }
0x14a3   : > { %12472 = vmatprep.subr.mxu0 %v12913_v0 }
0x14a4   : > { %12473 = vmatpush3.msra.mxu0 %v15192_v49 }
0x14a5   : > { %12474 = vmatprep.subr.mxu0 %v12913_v0 }
0x14a6   : > { %12475 = vmatpush3.msra.mxu0 %v15193_v59 }
0x14a7   : > { %12476 = vmatprep.subr.mxu0 %v12913_v0 }
0x14a8   : > { %12477 = vmatpush3.msra.mxu0 %v15194_v6 }
0x14a9   : > { %12479 = vmatmul.mubr.f32.vlgmr.msra.gmra.mxu0 %v14950_v15 }
0x151f   : > { %v10000_v16 = vpop.f32.mrf.mxu1 }
0x1521   : > { %v12375_v25 = vpop.f32.mrf.mxu1 }
0x1527   : > { %v9849_v40 = vpop.f32.mrf.mxu0 }
0x1528   : > { %v10001_v1 = vadd.f32 %v10000_v16, %v9849_v40 }
0x1529   : > { %v12340_v47 = vpop.f32.mrf.mxu0 }
0x153f   : > { %v10193_v53 = vpop.f32.mrf.mxu1 }
0x1541   : > { %v12445_v55 = vpop.f32.mrf.mxu1 }
0x1548   : > { %v10104_v39 = vpop.f32.mrf.mxu0 }
0x1549   : > { %v10105_v5 = vadd.f32 %v10104_v39, %v10001_v1 }
0x154a   : > { %v12410_v42 = vpop.f32.mrf.mxu0 }
0x154b   : > { %v10194_v12 = vadd.f32 %v10193_v53, %v10105_v5 }
0x1561   : > { %v10399_v60 = vpop.f32.mrf.mxu1 }
0x1563   : > { %v12515_v51 = vpop.f32.mrf.mxu1 }
0x1569   : > { %v10312_v0 = vpop.f32.mrf.mxu0 }
0x156a   : > { %v10313_v62 = vadd.f32 %v10312_v0, %v10194_v12 }
0x156b   : > { %v12480_v7 = vpop.f32.mrf.mxu0 }
0x156c   : > { %v10400_v14 = vadd.f32 %v10399_v60, %v10313_v62 }
0x156e   : > { %v10403_v37 = vadd.f32 %v12662_v43, %v10400_v14 }
0x1570   : > { %v10404_v44 = vmul.f32 %v10403_v37, %v10403_v37 }
0x1572   : > { %10405 = vadd.xlane.f32.xlu0 %v10404_v44 }
0x15fb   : > { %v10406_v46 = vpop.xlane.xlu0 %10405 }
0x15fc   : > { %12658 = vrsqrt.f32 %v10406_v46  ;;  %vm10409_vm9 = vcmp.eq.f32.partialorder %v10406_v46, inf  ;;  %v10412_v10 = vand.u32 2147483648, %v10406_v46  ;;  %vm10411_vm10 = vcmp.eq.f32.partialorder %v10406_v46, 0.0 }
0x1609   : > { %v12659_v48 = vpop.eup %12658 }
0x160a   : > { %v10408_v19 = vmul.f32 %v12659_v48, %v10406_v46 }
0x160c   : > { %v10410_v57 = vsel %vm10409_vm9, %v10406_v46, %v10408_v19 }
0x160d   : > { %v10413_v2 = vsel %vm10411_vm10, %v10412_v10, %v10410_v57 }
0x160e   : > { %v10414_v31 = vmul.f32 0.17677669, %v10413_v2 }
0x1610   : > { %v10415_v63 = vadd.f32 1e-06, %v10414_v31 }
0x1612   : > { %12660 = vrcp.f32 %v10415_v63 }
0x161f   : > { %v12661_v21 = vpop.eup %12660 }
0x1620   : > { %v10417_v34 = vmul.f32 %v12661_v21, %v10403_v37 }
0x1622   : > { %v10425_v13 = vmul.f32 %v10591_v26, %v10417_v34 }
0x1624   : > { %10426 = vst [vmem:[%s388_s4] sm:$0xff] %v10425_v13 }
0x1625   : > { %12836 = shalt.err (!%p12833_p10)
}
0x1626   : > { %s12837_s3 = scalar_lea.hbm %s10439_s18, 128  ;;  %s12841_s12 = scalar_lea.hbm %s15159_s7, 256 }
0x1627   : > { %p12838_p3 = scmp.ne.s32.totalorder %s10439_s18, %s12837_s3  ;;  %p12842_p8 = scmp.lt.s32.totalorder %s10439_s18, %s15159_s7 }
0x1628   : > { %p12843_p12 = scmp.lt.s32.totalorder %s12841_s12, %s12837_s3 }
0x1629   : > { %p12839_p7 = pnand %p12838_p3, %p15195_p9 }
0x162a   : > { %p12844_p0 = por %p12843_p12, %p12842_p8 }
0x162b   : > { %p12840_p5 = pneg %p12839_p7 }
0x162d   : > { %p12845_p2 = pnand %p12844_p0, %p12840_p5 }
0x162f   : > { %12848 = shalt.err (!%p12845_p2)
}
0x1630   : > { %12536 = dma.vmem_to_hbm [thread:$0]  (%p15195_p9), %s10442_s5, 128, %s10439_s18, %s10428_s20  }
0x1631 PF: > { %s10453_s17 = sand.u32 1, %s12891_s24   ;;  %p15196_p11 = scmp.ne.s32.totalorder %s15181_s22, 0 }
0x1632   : > { %p15197_p13 = scmp.ge.s32.totalorder %s12903_s27, 2  ;;  %s10454_s29 = scalar_lea.sflag [#allocation4], %s10453_s17 }
0x1634   : > { %p12559_p1 = pnand %p15197_p13, %p15196_p11 }
0x1636   : > { %p12560_p4 = pneg %p12559_p1 }
0x1638   : > { %12886 = dma.done.wait (%p12560_p4), %s10454_s29, 128  }
0x1639   : > { %12888 = vsyncadd (%p12560_p4), %s10454_s29, 4294967168  ;;  %p25_p6 = scmp.ge.s32.totalorder %s13071_s14, 4   ;;  %s15198_s24 = smov %s12895_s25 }
0x163a   : > { %s15199_s25 = smov %s12899_s26  ;;  %s15200_s26 = smov %s13082_s19 }
0x163b   : > { %s15201_s27 = smov %s13071_s14  ;;  %27 = sbr.rel (!%p25_p6) target bundleno = 14 (0xe), region = 122 }
0x1640   :  { %10459 = vsyncpa [#allocation3], 1 }
0x1641   :  { %10461 = vsyncpa [#allocation3 + $0x1], 1 }
0x1642   :  { %10462 = vsyncpa [#allocation6], 1 }
0x1643   :  { %10464 = vsyncpa [#allocation6 + $0x1], 1 }
0x1644   :  { %10465 = vsyncpa [#allocation9], 1 }
0x1645   :  { %10466 = vsyncpa [#allocation12], 1 }
0x1646   :  { %10467 = vsyncpa [#allocation4], 1 }
0x1647   :  { %10469 = vsyncpa [#allocation4 + $0x1], 1 }

</bundles_post_ra>
